<compile_context>
chip_gen: v5e
topology: v5e:2x2
jax: 0.10.0
libtpu: 0.0.40
codegen_flags: <defaults>
</compile_context>

<pallas_src>
import functools

import jax
import jax.numpy as jnp
from jax.experimental import pallas as pl
from jax.experimental.pallas import tpu as pltpu

BN_EPS = 1e-5


def _round_up(x, m):
    return (x + m - 1) // m * m


def _vmem_limit_bytes(footprint_bytes):
    # Device-aware cap: ~75% of physical VMEM (v5e/v6e: 128 MiB, v7x: 64 MiB/TC).
    try:
        cap = int(pltpu.get_tpu_info().vmem_capacity_bytes) * 3 // 4
    except Exception:  # pragma: no cover - conservative fallback, safe on v7x
        cap = 48 << 20
    return int(min(max(footprint_bytes + (16 << 20), 32 << 20), cap))


def _pick_toh(oh, ow, target_rows):
    """Largest divisor of OH whose (TOH*OW)-row tile stays within target_rows."""
    best = 1
    for d in range(1, oh + 1):
        if oh % d == 0 and d * ow <= max(target_rows, ow):
            best = d
    return best


# ---------------------------------------------------------------------------
# Shared conv-tile compute: in-kernel im2col via KH*KW shifted-window taps.
# ---------------------------------------------------------------------------
def _conv_tile(x_ref, w_ref, *, toh, ow, icp, ocp, kh, kw, stride, dilation):
    """x_ref: (1, HP, WP, ICp) bf16 full padded image; w_ref: (KH*KW, ICp, OCp) bf16.

    Returns the f32 conv result for output rows [b*TOH, (b+1)*TOH) x all OW
    columns, flattened to (TOH*OW, OCp)."""
    b = pl.program_id(1)
    row0 = b * (toh * stride)
    acc = jnp.zeros((toh * ow, ocp), jnp.float32)
    for i in range(kh):
        for j in range(kw):
            r = row0 + i * dilation          # dynamic (program_id) row offset
            c = j * dilation                 # static column offset
            if stride == 1:
                slab = x_ref[0, pl.ds(r, toh), pl.ds(c, ow), :]
            else:
                slab = x_ref[0, pl.ds(r, toh, stride=stride),
                             pl.ds(c, ow, stride=stride), :]
            lhs = slab.reshape(toh * ow, icp)
            acc = acc + jnp.dot(lhs, w_ref[i * kw + j],
                                preferred_element_type=jnp.float32)
    return acc


# ---------------------------------------------------------------------------
# Pass A: per-tile BN partial sums only (conv result never written to HBM).
# ---------------------------------------------------------------------------
def _stats_kernel(x_ref, w_ref, stats_ref, *, conv):
    y = conv(x_ref, w_ref)                                      # (TOH*OW, OCp) f32
    stats_ref[0, 0, 0:1, :] = jnp.sum(y, axis=0, keepdims=True)       # sum
    stats_ref[0, 0, 1:2, :] = jnp.sum(y * y, axis=0, keepdims=True)   # sum of squares


# ---------------------------------------------------------------------------
# Pass B: recompute conv tile, fused BN affine (pre-folded scale/shift) + h-swish.
# ---------------------------------------------------------------------------
def _bn_hswish_kernel(x_ref, w_ref, scale_ref, shift_ref, out_ref, *,
                      conv, toh, ow, ocp):
    y = conv(x_ref, w_ref)                                      # (TOH*OW, OCp) f32
    z = y * scale_ref[...] + shift_ref[...]                     # one FMA per element
    z = z * jnp.clip(z + 3.0, 0.0, 6.0) * (1.0 / 6.0)           # h-swish
    out_ref[0] = z.reshape(toh, ow, ocp)


def conv_bn_hswish(x_nchw, weight, gamma, beta, *, stride=1, padding=0,
                   dilation=1, target_rows=512):
    """x_nchw: [N, IC, H, W]; weight: [OC, IC, KH, KW] (OIHW); gamma/beta: [OC]."""
    # TODO(synk): groups != 1 (grouped / depthwise conv) not implemented.
    n, ic, h, w = x_nchw.shape
    oc, wic, kh, kw = weight.shape
    assert wic == ic, "groups != 1 not supported"

    oh = (h + 2 * padding - dilation * (kh - 1) - 1) // stride + 1
    ow = (w + 2 * padding - dilation * (kw - 1) - 1) // stride + 1

    icp = _round_up(ic, 8)        # sublane-clean contraction dim (do NOT pad to 128)
    ocp = _round_up(oc, 128)      # lane-dense output stores / full MXU result lanes
    toh = _pick_toh(oh, ow, target_rows)
    nb = oh // toh

    # NHWC, spatially padded, IC zero-padded, bf16 for the MXU.
    hp, wp = h + 2 * padding, w + 2 * padding
    x_nhwc = jnp.transpose(x_nchw, (0, 2, 3, 1)).astype(jnp.float32)
    x_pad = jnp.pad(x_nhwc, ((0, 0), (padding, padding), (padding, padding),
                             (0, icp - ic))).astype(jnp.bfloat16)

    # Per-tap weights [KH*KW, ICp, OCp], tap t = i*KW + j (zero-padded channels
    # contribute exactly 0 to the conv, the BN sums and the padded output lanes).
    w_tap = jnp.transpose(weight.astype(jnp.float32), (2, 3, 1, 0)).reshape(
        kh * kw, ic, oc)
    w_tap = jnp.pad(w_tap, ((0, 0), (0, icp - ic), (0, ocp - oc))).astype(jnp.bfloat16)

    conv = functools.partial(_conv_tile, toh=toh, ow=ow, icp=icp, ocp=ocp,
                             kh=kh, kw=kw, stride=stride, dilation=dilation)

    # TODO(synk): for very large feature maps the full padded image tile may not
    # fit VMEM; a width/height-tiled input window (with halos) would be needed.
    x_spec = pl.BlockSpec((1, hp, wp, icp), lambda i, b: (i, 0, 0, 0))
    w_spec = pl.BlockSpec((kh * kw, icp, ocp), lambda i, b: (0, 0, 0),
                          pipeline_mode=pl.Buffered(1))   # constant index_map

    x_blk = hp * wp * icp * 2                  # bf16 image tile
    w_blk = kh * kw * icp * ocp * 2            # bf16 weights (single-buffered)
    acc_b = toh * ow * ocp * 4                 # f32 conv tile (registers/spill)

    # --- Pass A: BN partial sums -------------------------------------------
    stats = pl.pallas_call(
        functools.partial(_stats_kernel, conv=conv),
        out_shape=jax.ShapeDtypeStruct((n, nb, 2, ocp), jnp.float32),
        grid=(n, nb),
        in_specs=[x_spec, w_spec],
        out_specs=pl.BlockSpec((1, 1, 2, ocp), lambda i, b: (i, b, 0, 0)),
        compiler_params=pltpu.CompilerParams(
            dimension_semantics=("parallel", "parallel"),
            vmem_limit_bytes=_vmem_limit_bytes(2 * x_blk + w_blk + 2 * acc_b)),
    )(x_pad, w_tap)

    # --- tiny JAX glue: global batch stats, folded per-channel scale/shift --
    # TOH divides OH exactly, so every tile row is a real output row and dividing
    # by the true M gives exact batch statistics.
    m_f = jnp.float32(n * oh * ow)
    mean = jnp.sum(stats[:, :, 0, :], axis=(0, 1)) / m_f                     # [OCp]
    var = jnp.maximum(jnp.sum(stats[:, :, 1, :], axis=(0, 1)) / m_f - mean * mean, 0.0)
    inv_std = jax.lax.rsqrt(var + BN_EPS)
    gamma_p = jnp.pad(gamma.astype(jnp.float32), (0, ocp - oc))
    beta_p = jnp.pad(beta.astype(jnp.float32), (0, ocp - oc))
    scale = (gamma_p * inv_std).reshape(1, ocp)
    shift = (beta_p - mean * gamma_p * inv_std).reshape(1, ocp)

    # --- Pass B: recompute conv + BN affine + h-swish, single output store --
    out = pl.pallas_call(
        functools.partial(_bn_hswish_kernel, conv=conv, toh=toh, ow=ow, ocp=ocp),
        out_shape=jax.ShapeDtypeStruct((n, oh, ow, ocp), jnp.float32),
        grid=(n, nb),
        in_specs=[x_spec, w_spec,
                  pl.BlockSpec((1, ocp), lambda i, b: (0, 0)),
                  pl.BlockSpec((1, ocp), lambda i, b: (0, 0))],
        out_specs=pl.BlockSpec((1, toh, ow, ocp), lambda i, b: (i, b, 0, 0)),
        compiler_params=pltpu.CompilerParams(
            dimension_semantics=("parallel", "parallel"),
            vmem_limit_bytes=_vmem_limit_bytes(2 * x_blk + w_blk + 3 * acc_b)),
    )(x_pad, w_tap, scale, shift)

    # TODO(synk): the OC-slice + NHWC->NCHW transpose below is an extra XLA pass
    # over the output; consumers that accept NHWC (padded-OC) should skip it.
    return jnp.transpose(out[..., :oc], (0, 3, 1, 2))                         # NCHW


def _reference(x_nchw, weight, gamma, beta, *, stride, padding, dilation):
    y = jax.lax.conv_general_dilated(
        x_nchw.astype(jnp.float32), weight.astype(jnp.float32),
        window_strides=(stride, stride),
        padding=[(padding, padding), (padding, padding)],
        rhs_dilation=(dilation, dilation),
        dimension_numbers=("NCHW", "OIHW", "NCHW"))
    mean = jnp.mean(y, axis=(0, 2, 3), keepdims=True)
    var = jnp.mean((y - mean) ** 2, axis=(0, 2, 3), keepdims=True)
    z = (y - mean) * jax.lax.rsqrt(var + BN_EPS)
    z = z * gamma.reshape(1, -1, 1, 1) + beta.reshape(1, -1, 1, 1)
    return z * jnp.clip(z + 3.0, 0.0, 6.0) / 6.0


if __name__ == "__main__":
    # Small shapes: batch=2, in_channels=4, out_channels=8, spatial=16, k=3, s=1, p=1
    N, IC, OC, H, W, K = 2, 4, 8, 16, 16, 3
    STRIDE, PAD, DIL = 1, 1, 1

    key = jax.random.PRNGKey(0)
    kx, kw_, kg, kb = jax.random.split(key, 4)
    x = jax.random.normal(kx, (N, IC, H, W), dtype=jnp.float32)
    weight = jax.random.normal(kw_, (OC, IC, K, K), dtype=jnp.float32) * 0.1
    gamma = 1.0 + 0.1 * jax.random.normal(kg, (OC,), dtype=jnp.float32)
    beta = 0.1 * jax.random.normal(kb, (OC,), dtype=jnp.float32)

    out = conv_bn_hswish(x, weight, gamma, beta, stride=STRIDE, padding=PAD, dilation=DIL)
    out = jax.block_until_ready(out)

    ref = _reference(x, weight, gamma, beta, stride=STRIDE, padding=PAD, dilation=DIL)
    assert out.shape == (N, OC, H, W), out.shape
    max_err = float(jnp.max(jnp.abs(out - ref)))
    assert jnp.allclose(out, ref, atol=1e-2, rtol=1e-2), max_err

    print("KERNEL_OK")
</pallas_src>

<mosaic_0001>
module attributes {stable_mosaic.version = 11 : i64} {
  func.func @_stats_kernel(%arg0: i32, %arg1: i32, %arg2: memref<1x18x18x8xbf16, #tpu.memory_space<vmem>>, %arg3: memref<9x8x128xbf16, #tpu.memory_space<vmem>>, %arg4: memref<1x1x2x128xf32, #tpu.memory_space<vmem>>) attributes {dimension_semantics = [#tpu.dimension_semantics<parallel>, #tpu.dimension_semantics<parallel>], iteration_bounds = array<i64: 2, 1>, scalar_prefetch = 0 : i64, scratch_operands = 0 : i64, tpu.core_type = #tpu.core_type<tc>, window_params = [{transform_indices = @transform_0, window_bounds = array<i64: 1, 18, 18, 8>}, {pipeline_mode = #tpu.pipeline_mode<synchronous>, transform_indices = @transform_1, window_bounds = array<i64: 9, 8, 128>}, {transform_indices = @transform_2, window_bounds = array<i64: 1, 1, 2, 128>}]} {
    %c16_i32 = arith.constant 16 : i32
    %0 = arith.muli %arg1, %c16_i32 : i32
    %cst = arith.constant 0.000000e+00 : f32
    %1 = vector.broadcast %cst : f32 to vector<256x128xf32>
    %c0_i32 = arith.constant 0 : i32
    %2 = arith.addi %0, %c0_i32 : i32
    %c0 = arith.constant 0 : index
    %3 = arith.index_cast %2 : i32 to index
    %c0_0 = arith.constant 0 : index
    %c0_1 = arith.constant 0 : index
    %4 = vector.load %arg2[%c0, %3, %c0_0, %c0_1] : memref<1x18x18x8xbf16, #tpu.memory_space<vmem>>, vector<1x16x16x8xbf16>
    %5 = vector.shape_cast %4 : vector<1x16x16x8xbf16> to vector<16x16x8xbf16>
    %6 = vector.shape_cast %5 : vector<16x16x8xbf16> to vector<256x8xbf16>
    %c0_2 = arith.constant 0 : index
    %c0_3 = arith.constant 0 : index
    %c0_4 = arith.constant 0 : index
    %7 = vector.load %arg3[%c0_2, %c0_3, %c0_4] : memref<9x8x128xbf16, #tpu.memory_space<vmem>>, vector<1x8x128xbf16>
    %8 = vector.shape_cast %7 : vector<1x8x128xbf16> to vector<8x128xbf16>
    %cst_5 = arith.constant dense<0.000000e+00> : vector<256x128xf32>
    %9 = tpu.matmul %6, %8, %cst_5 {dimension_numbers = #tpu.dot_dimension_numbers<[1], [0], [0], [1], [0, 0, 1, 1], [], []>} : vector<256x8xbf16>, vector<8x128xbf16>, vector<256x128xf32> -> vector<256x128xf32>
    %10 = arith.addf %1, %9 : vector<256x128xf32>
    %c0_i32_6 = arith.constant 0 : i32
    %11 = arith.addi %0, %c0_i32_6 : i32
    %c0_7 = arith.constant 0 : index
    %12 = arith.index_cast %11 : i32 to index
    %c1 = arith.constant 1 : index
    %c0_8 = arith.constant 0 : index
    %13 = vector.load %arg2[%c0_7, %12, %c1, %c0_8] : memref<1x18x18x8xbf16, #tpu.memory_space<vmem>>, vector<1x16x16x8xbf16>
    %14 = vector.shape_cast %13 : vector<1x16x16x8xbf16> to vector<16x16x8xbf16>
    %15 = vector.shape_cast %14 : vector<16x16x8xbf16> to vector<256x8xbf16>
    %c1_9 = arith.constant 1 : index
    %c0_10 = arith.constant 0 : index
    %c0_11 = arith.constant 0 : index
    %16 = vector.load %arg3[%c1_9, %c0_10, %c0_11] : memref<9x8x128xbf16, #tpu.memory_space<vmem>>, vector<1x8x128xbf16>
    %17 = vector.shape_cast %16 : vector<1x8x128xbf16> to vector<8x128xbf16>
    %cst_12 = arith.constant dense<0.000000e+00> : vector<256x128xf32>
    %18 = tpu.matmul %15, %17, %cst_12 {dimension_numbers = #tpu.dot_dimension_numbers<[1], [0], [0], [1], [0, 0, 1, 1], [], []>} : vector<256x8xbf16>, vector<8x128xbf16>, vector<256x128xf32> -> vector<256x128xf32>
    %19 = arith.addf %10, %18 : vector<256x128xf32>
    %c0_i32_13 = arith.constant 0 : i32
    %20 = arith.addi %0, %c0_i32_13 : i32
    %c0_14 = arith.constant 0 : index
    %21 = arith.index_cast %20 : i32 to index
    %c2 = arith.constant 2 : index
    %c0_15 = arith.constant 0 : index
    %22 = vector.load %arg2[%c0_14, %21, %c2, %c0_15] : memref<1x18x18x8xbf16, #tpu.memory_space<vmem>>, vector<1x16x16x8xbf16>
    %23 = vector.shape_cast %22 : vector<1x16x16x8xbf16> to vector<16x16x8xbf16>
    %24 = vector.shape_cast %23 : vector<16x16x8xbf16> to vector<256x8xbf16>
    %c2_16 = arith.constant 2 : index
    %c0_17 = arith.constant 0 : index
    %c0_18 = arith.constant 0 : index
    %25 = vector.load %arg3[%c2_16, %c0_17, %c0_18] : memref<9x8x128xbf16, #tpu.memory_space<vmem>>, vector<1x8x128xbf16>
    %26 = vector.shape_cast %25 : vector<1x8x128xbf16> to vector<8x128xbf16>
    %cst_19 = arith.constant dense<0.000000e+00> : vector<256x128xf32>
    %27 = tpu.matmul %24, %26, %cst_19 {dimension_numbers = #tpu.dot_dimension_numbers<[1], [0], [0], [1], [0, 0, 1, 1], [], []>} : vector<256x8xbf16>, vector<8x128xbf16>, vector<256x128xf32> -> vector<256x128xf32>
    %28 = arith.addf %19, %27 : vector<256x128xf32>
    %c1_i32 = arith.constant 1 : i32
    %29 = arith.addi %0, %c1_i32 : i32
    %c0_20 = arith.constant 0 : index
    %30 = arith.index_cast %29 : i32 to index
    %c0_21 = arith.constant 0 : index
    %c0_22 = arith.constant 0 : index
    %31 = vector.load %arg2[%c0_20, %30, %c0_21, %c0_22] : memref<1x18x18x8xbf16, #tpu.memory_space<vmem>>, vector<1x16x16x8xbf16>
    %32 = vector.shape_cast %31 : vector<1x16x16x8xbf16> to vector<16x16x8xbf16>
    %33 = vector.shape_cast %32 : vector<16x16x8xbf16> to vector<256x8xbf16>
    %c3 = arith.constant 3 : index
    %c0_23 = arith.constant 0 : index
    %c0_24 = arith.constant 0 : index
    %34 = vector.load %arg3[%c3, %c0_23, %c0_24] : memref<9x8x128xbf16, #tpu.memory_space<vmem>>, vector<1x8x128xbf16>
    %35 = vector.shape_cast %34 : vector<1x8x128xbf16> to vector<8x128xbf16>
    %cst_25 = arith.constant dense<0.000000e+00> : vector<256x128xf32>
    %36 = tpu.matmul %33, %35, %cst_25 {dimension_numbers = #tpu.dot_dimension_numbers<[1], [0], [0], [1], [0, 0, 1, 1], [], []>} : vector<256x8xbf16>, vector<8x128xbf16>, vector<256x128xf32> -> vector<256x128xf32>
    %37 = arith.addf %28, %36 : vector<256x128xf32>
    %c1_i32_26 = arith.constant 1 : i32
    %38 = arith.addi %0, %c1_i32_26 : i32
    %c0_27 = arith.constant 0 : index
    %39 = arith.index_cast %38 : i32 to index
    %c1_28 = arith.constant 1 : index
    %c0_29 = arith.constant 0 : index
    %40 = vector.load %arg2[%c0_27, %39, %c1_28, %c0_29] : memref<1x18x18x8xbf16, #tpu.memory_space<vmem>>, vector<1x16x16x8xbf16>
    %41 = vector.shape_cast %40 : vector<1x16x16x8xbf16> to vector<16x16x8xbf16>
    %42 = vector.shape_cast %41 : vector<16x16x8xbf16> to vector<256x8xbf16>
    %c4 = arith.constant 4 : index
    %c0_30 = arith.constant 0 : index
    %c0_31 = arith.constant 0 : index
    %43 = vector.load %arg3[%c4, %c0_30, %c0_31] : memref<9x8x128xbf16, #tpu.memory_space<vmem>>, vector<1x8x128xbf16>
    %44 = vector.shape_cast %43 : vector<1x8x128xbf16> to vector<8x128xbf16>
    %cst_32 = arith.constant dense<0.000000e+00> : vector<256x128xf32>
    %45 = tpu.matmul %42, %44, %cst_32 {dimension_numbers = #tpu.dot_dimension_numbers<[1], [0], [0], [1], [0, 0, 1, 1], [], []>} : vector<256x8xbf16>, vector<8x128xbf16>, vector<256x128xf32> -> vector<256x128xf32>
    %46 = arith.addf %37, %45 : vector<256x128xf32>
    %c1_i32_33 = arith.constant 1 : i32
    %47 = arith.addi %0, %c1_i32_33 : i32
    %c0_34 = arith.constant 0 : index
    %48 = arith.index_cast %47 : i32 to index
    %c2_35 = arith.constant 2 : index
    %c0_36 = arith.constant 0 : index
    %49 = vector.load %arg2[%c0_34, %48, %c2_35, %c0_36] : memref<1x18x18x8xbf16, #tpu.memory_space<vmem>>, vector<1x16x16x8xbf16>
    %50 = vector.shape_cast %49 : vector<1x16x16x8xbf16> to vector<16x16x8xbf16>
    %51 = vector.shape_cast %50 : vector<16x16x8xbf16> to vector<256x8xbf16>
    %c5 = arith.constant 5 : index
    %c0_37 = arith.constant 0 : index
    %c0_38 = arith.constant 0 : index
    %52 = vector.load %arg3[%c5, %c0_37, %c0_38] : memref<9x8x128xbf16, #tpu.memory_space<vmem>>, vector<1x8x128xbf16>
    %53 = vector.shape_cast %52 : vector<1x8x128xbf16> to vector<8x128xbf16>
    %cst_39 = arith.constant dense<0.000000e+00> : vector<256x128xf32>
    %54 = tpu.matmul %51, %53, %cst_39 {dimension_numbers = #tpu.dot_dimension_numbers<[1], [0], [0], [1], [0, 0, 1, 1], [], []>} : vector<256x8xbf16>, vector<8x128xbf16>, vector<256x128xf32> -> vector<256x128xf32>
    %55 = arith.addf %46, %54 : vector<256x128xf32>
    %c2_i32 = arith.constant 2 : i32
    %56 = arith.addi %0, %c2_i32 : i32
    %c0_40 = arith.constant 0 : index
    %57 = arith.index_cast %56 : i32 to index
    %c0_41 = arith.constant 0 : index
    %c0_42 = arith.constant 0 : index
    %58 = vector.load %arg2[%c0_40, %57, %c0_41, %c0_42] : memref<1x18x18x8xbf16, #tpu.memory_space<vmem>>, vector<1x16x16x8xbf16>
    %59 = vector.shape_cast %58 : vector<1x16x16x8xbf16> to vector<16x16x8xbf16>
    %60 = vector.shape_cast %59 : vector<16x16x8xbf16> to vector<256x8xbf16>
    %c6 = arith.constant 6 : index
    %c0_43 = arith.constant 0 : index
    %c0_44 = arith.constant 0 : index
    %61 = vector.load %arg3[%c6, %c0_43, %c0_44] : memref<9x8x128xbf16, #tpu.memory_space<vmem>>, vector<1x8x128xbf16>
    %62 = vector.shape_cast %61 : vector<1x8x128xbf16> to vector<8x128xbf16>
    %cst_45 = arith.constant dense<0.000000e+00> : vector<256x128xf32>
    %63 = tpu.matmul %60, %62, %cst_45 {dimension_numbers = #tpu.dot_dimension_numbers<[1], [0], [0], [1], [0, 0, 1, 1], [], []>} : vector<256x8xbf16>, vector<8x128xbf16>, vector<256x128xf32> -> vector<256x128xf32>
    %64 = arith.addf %55, %63 : vector<256x128xf32>
    %c2_i32_46 = arith.constant 2 : i32
    %65 = arith.addi %0, %c2_i32_46 : i32
    %c0_47 = arith.constant 0 : index
    %66 = arith.index_cast %65 : i32 to index
    %c1_48 = arith.constant 1 : index
    %c0_49 = arith.constant 0 : index
    %67 = vector.load %arg2[%c0_47, %66, %c1_48, %c0_49] : memref<1x18x18x8xbf16, #tpu.memory_space<vmem>>, vector<1x16x16x8xbf16>
    %68 = vector.shape_cast %67 : vector<1x16x16x8xbf16> to vector<16x16x8xbf16>
    %69 = vector.shape_cast %68 : vector<16x16x8xbf16> to vector<256x8xbf16>
    %c7 = arith.constant 7 : index
    %c0_50 = arith.constant 0 : index
    %c0_51 = arith.constant 0 : index
    %70 = vector.load %arg3[%c7, %c0_50, %c0_51] : memref<9x8x128xbf16, #tpu.memory_space<vmem>>, vector<1x8x128xbf16>
    %71 = vector.shape_cast %70 : vector<1x8x128xbf16> to vector<8x128xbf16>
    %cst_52 = arith.constant dense<0.000000e+00> : vector<256x128xf32>
    %72 = tpu.matmul %69, %71, %cst_52 {dimension_numbers = #tpu.dot_dimension_numbers<[1], [0], [0], [1], [0, 0, 1, 1], [], []>} : vector<256x8xbf16>, vector<8x128xbf16>, vector<256x128xf32> -> vector<256x128xf32>
    %73 = arith.addf %64, %72 : vector<256x128xf32>
    %c2_i32_53 = arith.constant 2 : i32
    %74 = arith.addi %0, %c2_i32_53 : i32
    %c0_54 = arith.constant 0 : index
    %75 = arith.index_cast %74 : i32 to index
    %c2_55 = arith.constant 2 : index
    %c0_56 = arith.constant 0 : index
    %76 = vector.load %arg2[%c0_54, %75, %c2_55, %c0_56] : memref<1x18x18x8xbf16, #tpu.memory_space<vmem>>, vector<1x16x16x8xbf16>
    %77 = vector.shape_cast %76 : vector<1x16x16x8xbf16> to vector<16x16x8xbf16>
    %78 = vector.shape_cast %77 : vector<16x16x8xbf16> to vector<256x8xbf16>
    %c8 = arith.constant 8 : index
    %c0_57 = arith.constant 0 : index
    %c0_58 = arith.constant 0 : index
    %79 = vector.load %arg3[%c8, %c0_57, %c0_58] : memref<9x8x128xbf16, #tpu.memory_space<vmem>>, vector<1x8x128xbf16>
    %80 = vector.shape_cast %79 : vector<1x8x128xbf16> to vector<8x128xbf16>
    %cst_59 = arith.constant dense<0.000000e+00> : vector<256x128xf32>
    %81 = tpu.matmul %78, %80, %cst_59 {dimension_numbers = #tpu.dot_dimension_numbers<[1], [0], [0], [1], [0, 0, 1, 1], [], []>} : vector<256x8xbf16>, vector<8x128xbf16>, vector<256x128xf32> -> vector<256x128xf32>
    %82 = arith.addf %73, %81 : vector<256x128xf32>
    %cst_60 = arith.constant dense<0.000000e+00> : vector<128xf32>
    %83 = vector.multi_reduction <add>, %82, %cst_60 [0] : vector<256x128xf32> to vector<128xf32>
    %84 = vector.shape_cast %83 : vector<128xf32> to vector<1x128xf32>
    %c0_61 = arith.constant 0 : index
    %c0_62 = arith.constant 0 : index
    %c0_63 = arith.constant 0 : index
    %c0_64 = arith.constant 0 : index
    %85 = vector.load %arg4[%c0_61, %c0_62, %c0_63, %c0_64] : memref<1x1x2x128xf32, #tpu.memory_space<vmem>>, vector<1x1x1x128xf32>
    %86 = vector.shape_cast %85 : vector<1x1x1x128xf32> to vector<1x128xf32>
    %87 = vector.shape_cast %84 : vector<1x128xf32> to vector<1x1x1x128xf32>
    tpu.vector_store %arg4[%c0_61, %c0_62, %c0_63, %c0_64], %87 {strides = array<i32>} : memref<1x1x2x128xf32, #tpu.memory_space<vmem>>, vector<1x1x1x128xf32>,
    %88 = arith.mulf %82, %82 : vector<256x128xf32>
    %cst_65 = arith.constant dense<0.000000e+00> : vector<128xf32>
    %89 = vector.multi_reduction <add>, %88, %cst_65 [0] : vector<256x128xf32> to vector<128xf32>
    %90 = vector.shape_cast %89 : vector<128xf32> to vector<1x128xf32>
    %c0_66 = arith.constant 0 : index
    %c0_67 = arith.constant 0 : index
    %c1_68 = arith.constant 1 : index
    %c0_69 = arith.constant 0 : index
    %91 = vector.load %arg4[%c0_66, %c0_67, %c1_68, %c0_69] : memref<1x1x2x128xf32, #tpu.memory_space<vmem>>, vector<1x1x1x128xf32>
    %92 = vector.shape_cast %91 : vector<1x1x1x128xf32> to vector<1x128xf32>
    %93 = vector.shape_cast %90 : vector<1x128xf32> to vector<1x1x1x128xf32>
    tpu.vector_store %arg4[%c0_66, %c0_67, %c1_68, %c0_69], %93 {strides = array<i32>} : memref<1x1x2x128xf32, #tpu.memory_space<vmem>>, vector<1x1x1x128xf32>,
    return
  }
  func.func @transform_0(%arg0: i32, %arg1: i32) -> (i32, i32, i32, i32) {
    %c0_i32 = arith.constant 0 : i32
    %c0_i32_0 = arith.constant 0 : i32
    %c0_i32_1 = arith.constant 0 : i32
    %c0_i32_2 = arith.constant 0 : i32
    return %arg0, %c0_i32, %c0_i32_0, %c0_i32_1 : i32, i32, i32, i32
  }
  func.func @transform_1(%arg0: i32, %arg1: i32) -> (i32, i32, i32) {
    %c0_i32 = arith.constant 0 : i32
    %c0_i32_0 = arith.constant 0 : i32
    %c0_i32_1 = arith.constant 0 : i32
    %c0_i32_2 = arith.constant 0 : i32
    return %c0_i32, %c0_i32_0, %c0_i32_1 : i32, i32, i32
  }
  func.func @transform_2(%arg0: i32, %arg1: i32) -> (i32, i32, i32, i32) {
    %c0_i32 = arith.constant 0 : i32
    %c0_i32_0 = arith.constant 0 : i32
    %c0_i32_1 = arith.constant 0 : i32
    return %arg0, %arg1, %c0_i32, %c0_i32_0 : i32, i32, i32, i32
  }
}

</mosaic_0001>

<bundles_post_ra>
// kernel: tpu_custom_call.1
= control target key start
LH: loop header
LB: loop body
LE: loop exit
PB: predicated region body
PF: predicated region fallthrough
CT: control target
= control target key end

     0   :  { %7 = vsyncpa [#allocation3], 0  ;;  %s6537_s0 = inlined_call_operand.vmem [shape: bf16[2,18,18,8], index: 0, kind: input, shape index: {}]   ;;  %s6538_s1 = inlined_call_operand.vmem [shape: bf16[9,8,128], index: 1, kind: input, shape index: {}]   ;;  %s6539_s2 = inlined_call_operand.hbm [shape: f32[2,1,2,128], index: 2, kind: output, shape index: {}]  }
   0x1   :  { %9 = vsyncpa [#allocation3 + $0x1], 0  ;;  %s5128_s9 = smov 0   ;;  %s5130_s10 = smov 0  }
   0x2   :  { %s5132_s11 = smov 0   ;;  %s5134_s12 = smov 0  }
   0x3   :  { %s5136_s13 = smov 0   ;;  %s5138_s14 = smov 0  }
   0x4 LB: > { %s4281_s15 = sadd.s32 4294967295, %s5111_s14   ;;  %s4282_s16 = sadd.s32 4294967294, %s5111_s14   ;;  %s5111_s14 = sphi %s5138_s14, %s15_s14   ;;  %s5107_s13 = sphi %s5136_s13, %s6556_s13   ;;  %s5103_s12 = sphi %s5134_s12, %s6555_s12   ;;  %s5099_s11 = sphi %s5132_s11, %s6554_s11   ;;  %s5095_s10 = sphi %s5130_s10, %s6553_s10   ;;  %s5091_s9 = sphi %s5128_s9, %s6552_s9  }
   0x5   : > { %s27_s17 = sadd.s32 1, %s5107_s13  ;;  %s83_s18 = sadd.s32 1, %s5099_s11 }
   0x6   : > { %p29_p0 = scmp.ge.s32.totalorder %s27_s17, 2  ;;  %p93_p1 = scmp.ne.s32.totalorder %s5099_s11, %s5095_s10 }
   0x7   : > { %p94_p2 = scmp.eq.s32.totalorder %s4281_s15, 1  ;;  %p99_p3 = scmp.ne.s32.totalorder %s5095_s10, %s5091_s9 }
   0x8   : > { %s6558_s17 = smov (%p29_p0, %s27_s17), 0  ;;  %p100_p5 = scmp.eq.s32.totalorder %s4282_s16, 1 }
   0x9   : > { %p5168_p4 = por %p94_p2, %p93_p1  ;;  %s78_s20 = ssub.s32 %s5107_s13, %s6558_s17 }
   0xa   : > { %p4285_p6 = scmp.ge.s32.totalorder %s5111_s14, 1  ;;  %p81_p7 = scmp.eq.s32.totalorder %s78_s20, 0 }
   0xb   : > { %p5175_p8 = por %p100_p5, %p99_p3  ;;  %p129_p9 = scmp.lt.s32.totalorder %s5111_s14, 3 }
   0xc   : > { %s5181_s22 = scalar_select %p81_p7, %s5099_s11, %s83_s18  }
   0xd   : > { %p130_p10 = pnand %p4285_p6, %p129_p9 }
   0xf   : > { %133 = sbr.rel (%p130_p10) target bundleno = 782 (0x30e), region = 28 }
  0x14   : > { %v4288_v0 = vld [vmem:[%s6538_s1 + $0x4] sm:$0xf]  ;;  %vm696_vm0 = vcmask 1043456   ;;  %p151_p11 = scmp.lt.s32.totalorder %s5103_s12, 1  ;;  %v4401_v2 = vld [vmem:[%s6538_s1 + $0x8] sm:$0xf] }
  0x15   : > { %v698_v1 = vsel %vm696_vm0, %v4288_v0, 0  ;;  %v1271_v3 = vsel %vm696_vm0, %v4401_v2, 0  ;;  %v4450_v4 = vld [vmem:[%s6538_s1 + $0xc] sm:$0xf]  ;;  %v193_v5 = vld [vmem:[%s6538_s1] sm:$0xf] }
  0x16   : > { %4924 = vmatpush.bf16.msra.mxu1 %v698_v1  ;;  %4925 = vmatpush.bf16.msra.mxu2 %v698_v1  ;;  %s152_s27 = scalar_select %p151_p11, %s5103_s12, 1  ;;  %v4579_v6 = vld [vmem:[%s6538_s1 + $0x10] sm:$0xf]  ;;  %v1561_v7 = vsel %vm696_vm0, %v4450_v4, 0  ;;  %v918_v8 = vsel %vm696_vm0, %v193_v5, 0  ;;  %vm647_vm4 = vcmask 64512  }
  0x17   : > { %4926 = vmatpush.bf16.msra.mxu3 %v698_v1  ;;  %707 = vmatpush.bf16.msra.mxu0 %v698_v1  ;;  %v2215_v9 = vsel %vm696_vm0, %v4579_v6, 0  ;;  %vm210_vm1 = vsmask.f32 3328  ;;  %vm211_vm2 = vsmask.f32 7440  ;;  %vm1057_vm5 = vcmask 1042432  }
  0x18   : > { %s4927_s6 = smul.u32 216, %s152_s27  ;;  %vm5220_vm3 = vmor %vm210_vm1, %vm211_vm2  ;;  %vm1058_vm6 = vcmask 1046532   ;;  %s148_s28 = sand.u32 1, %s5095_s10  }
  0x19   : > { %vm5394_vm7 = vmor %vm1057_vm5, %vm1058_vm6  ;;  %s4286_s29 = sshll.u32 %s148_s28, 1  ;;  %s4873_s30 = sshll.u32 %s5103_s12, 1 }
  0x1a   : > { %1280 = vmatpush.bf16.msrb.mxu2 %v1271_v3  ;;  %927 = vmatpush.bf16.msrb.mxu1 %v918_v8  ;;  %s5208_s15 = scalar_lea.vmem %s6537_s0, %s4927_s6  ;;  %s4198_s5 = scalar_lea.hbm %s6539_s2, %s4873_s30 }
  0x1b   : > { %1570 = vmatpush.bf16.msrb.mxu3 %v1561_v7  ;;  %2224 = vmatpush.bf16.msrb.mxu0 %v2215_v9  ;;  %v169_v10 = vld [vmem:[%s5208_s15 + $0x30] sm:$0xf]  ;;  %v170_v11 = vld [vmem:[%s5208_s15 + $0x34] sm:$0xf]  ;;  %v198_v12 = vld [vmem:[%s5208_s15 + $0x38] sm:$0x1] }
  0x1c   : > { %v310_v13 = vshrl.u32 %v169_v10, 16  ;;  %v313_v14 = vshll.u32 %v169_v10, 16  ;;  %v319_v15 = vshll.u32 %v170_v11, 16  ;;  %v323_v16 = vshrl.u32 %v170_v11, 16  ;;  %v177_v17 = vld [vmem:[%s5208_s15 + $0x60] sm:$0xf] }
  0x1d   : > { %v329_v18 = vshll.u32 %v198_v12, 16  ;;  %v178_v19 = vld [vmem:[%s5208_s15 + $0x64] sm:$0xf]  ;;  %v202_v20 = vld [vmem:[%s5208_s15 + $0x68] sm:$0x1]  ;;  %v406_v21 = vshrl.u32 %v177_v17, 16 }
  0x1e   : > { %v312_v22 = vrot.slane %v310_v13, 4  ;;  %v315_v23 = vrot.slane %v313_v14, 5  ;;  %v321_v24 = vrot.slane %v319_v15, 5  ;;  %v325_v25 = vrot.slane %v323_v16, 4  ;;  %v185_v26 = vld [vmem:[%s5208_s15 + $0x90] sm:$0xf] }
  0x1f   : > { %v331_v27 = vrot.slane %v329_v18, 5  ;;  %v408_v28 = vrot.slane %v406_v21, 4  ;;  %v409_v29 = vshll.u32 %v177_v17, 16  ;;  %v415_v30 = vshll.u32 %v178_v19, 16  ;;  %v186_v35 = vld [vmem:[%s5208_s15 + $0x94] sm:$0xf] }
  0x20   : > { %v316_v31 = vor.u32 %v315_v23, %v312_v22  ;;  %v326_v32 = vor.u32 %v325_v25, %v321_v24  ;;  %v419_v33 = vshrl.u32 %v178_v19, 16  ;;  %v425_v34 = vshll.u32 %v202_v20, 16  ;;  %v206_v45 = vld [vmem:[%s5208_s15 + $0x98] sm:$0x1]  ;;  %v161_v61 = vld [vmem:[%s5208_s15] sm:$0xf] }
  0x21   : > { %v411_v37 = vrot.slane %v409_v29, 5  ;;  %v417_v38 = vrot.slane %v415_v30, 5  ;;  %v502_v39 = vshrl.u32 %v185_v26, 16  ;;  %v505_v47 = vshll.u32 %v185_v26, 16  ;;  %v5233_v1 = vld [vmem:[%s5208_s15 + $0x4] sm:$0xf] }
  0x22   : > { %v317_v40 = vrot.slane %v316_v31, 4  ;;  %v327_v41 = vrot.slane %v326_v32, 4  ;;  %v421_v42 = vrot.slane %v419_v33, 4  ;;  %v427_v43 = vrot.slane %v425_v34, 5  ;;  %v5236_v2 = vld [vmem:[%s5208_s15 + $0x8] sm:$0x1] }
  0x23   : > { %v412_v44 = vor.u32 %v411_v37, %v408_v28  ;;  %v504_v46 = vrot.slane %v502_v39, 4  ;;  %v511_v48 = vshll.u32 %v186_v35, 16  ;;  %v515_v52 = vshrl.u32 %v186_v35, 16  ;;  %v171_v19 = vld [vmem:[%s5208_s15 + $0x3c] sm:$0xf]  ;;  %s150_s6 = scalar_lea.vmem [#allocation2], %s4286_s29 }
  0x24   : > { %v322_v49 = vsel %vm5220_vm3, %v317_v40, %v321_v24  ;;  %v332_v50 = vsel %vm5220_vm3, %v327_v41, %v331_v27  ;;  %v422_v51 = vor.u32 %v421_v42, %v417_v38  ;;  %v507_v56 = vrot.slane %v505_v47, 5  ;;  %v5248_v20 = vld [vmem:[%s5208_s15 + $0x40] sm:$0xf]  ;;  %v5253_v25 = vld [vmem:[%s5208_s15 + $0x44] sm:$0x1]  ;;  %s4200_s7 = sshll.u32 %s150_s6, 4  ;;  %s4201_s7 = int_to_ptr.vmem [resolvable:$true] %s4200_s7 }
  0x25   : > { %v607_v53 = vunpack.c.l.b16 %v322_v49  ;;  %v608_v54 = vunpack.c.l.b16 %v332_v50  ;;  %v413_v55 = vrot.slane %v412_v44, 4  ;;  %v513_v58 = vrot.slane %v511_v48, 5  ;;  %v179_v33 = vld [vmem:[%s5208_s15 + $0x6c] sm:$0xf]  ;;  %v203_v47 = vld [vmem:[%s5208_s15 + $0x74] sm:$0x1] }
  0x26   : > { %v423_v57 = vrot.slane %v422_v51, 4  ;;  %v517_v59 = vrot.slane %v515_v52, 4  ;;  %v521_v60 = vshll.u32 %v206_v45, 16  ;;  %v508_v0 = vor.u32 %v507_v56, %v504_v46  ;;  %s4202_s8 = sshll.u32 %s4198_s5, 4  ;;  %s4187_s12 = scalar_lea.sflag [#allocation3], %s148_s28  ;;  %s4203_s8 = int_to_ptr.hbm [resolvable:$true] %s4202_s8 }
  0x27   : > { %v635_v62 = vpack.c.b16 %v608_v54, %v607_v53  ;;  %v418_v63 = vsel %vm5220_vm3, %v413_v55, %v417_v38  ;;  %v214_v9 = vshrl.u32 %v161_v61, 16  ;;  %v217_v10 = vshll.u32 %v161_v61, 16  ;;  %v187_v61 = vld [vmem:[%s5208_s15 + $0x9c] sm:$0xf]  ;;  %s5053_s23 = scalar_lea.hbm %s6539_s2, 4 }
  0x28   : > { %v428_v3 = vsel %vm5220_vm3, %v423_v57, %v427_v43  ;;  %v615_v4 = vunpack.c.l.b16 %v418_v63  ;;  %v518_v5 = vor.u32 %v517_v59, %v513_v58  ;;  %v523_v6 = vrot.slane %v521_v60, 5  ;;  %v180_v43 = vld [vmem:[%s5208_s15 + $0x70] sm:$0xf] }
  0x29   : > { %4293 = vmatmul.msk.bf16.vlgmr.msra.gmra.mxu1 %vm647_vm4, %v635_v62  ;;  %v616_v7 = vunpack.c.l.b16 %v428_v3  ;;  %v509_v8 = vrot.slane %v508_v0, 4  ;;  %v223_v12 = vshll.u32 %v5233_v1, 16  ;;  %v227_v13 = vshrl.u32 %v5233_v1, 16  ;;  %v188_v3 = vld [vmem:[%s5208_s15 + $0xa0] sm:$0xf] }
  0x2a   : > { %v519_v11 = vrot.slane %v518_v5, 4  ;;  %v233_v14 = vshll.u32 %v5236_v2, 16  ;;  %v216_v17 = vrot.slane %v214_v9, 4  ;;  %v219_v18 = vrot.slane %v217_v10, 5 }
  0x2b   : > { %v639_v15 = vpack.c.b16 %v616_v7, %v615_v4  ;;  %v514_v16 = vsel %vm5220_vm3, %v509_v8, %v513_v58  ;;  %v225_v23 = vrot.slane %v223_v12, 5  ;;  %v229_v24 = vrot.slane %v227_v13, 4  ;;  %v207_v8 = vld [vmem:[%s5208_s15 + $0xa4] sm:$0x1] }
  0x2c   : > { %v524_v21 = vsel %vm5220_vm3, %v519_v11, %v523_v6  ;;  %v623_v22 = vunpack.c.l.b16 %v514_v16  ;;  %v220_v27 = vor.u32 %v219_v18, %v216_v17  ;;  %v235_v28 = vrot.slane %v233_v14, 5 }
  0x2d   : > { %4297 = vmatmul.msk.bf16.vlgmr.msra.gmra.mxu2 %vm647_vm4, %v639_v15  ;;  %v624_v26 = vunpack.c.l.b16 %v524_v21  ;;  %v230_v29 = vor.u32 %v229_v24, %v225_v23  ;;  %v334_v30 = vshrl.u32 %v171_v19, 16  ;;  %v337_v31 = vshll.u32 %v171_v19, 16 }
  0x2e   : > { %v343_v32 = vshll.u32 %v5248_v20, 16  ;;  %v221_v35 = vrot.slane %v220_v27, 4  ;;  %v347_v37 = vshrl.u32 %v5248_v20, 16  ;;  %v353_v38 = vshll.u32 %v5253_v25, 16 }
  0x2f   : > { %v643_v34 = vpack.c.b16 %v624_v26, %v623_v22  ;;  %v231_v39 = vrot.slane %v230_v29, 4  ;;  %v336_v40 = vrot.slane %v334_v30, 4  ;;  %v339_v41 = vrot.slane %v337_v31, 5  ;;  %v163_v22 = vld [vmem:[%s5208_s15 + $0xc] sm:$0xf] }
  0x30   : > { %v345_v42 = vrot.slane %v343_v32, 5  ;;  %v226_v44 = vsel %vm5220_vm3, %v221_v35, %v225_v23  ;;  %v349_v45 = vrot.slane %v347_v37, 4  ;;  %v355_v46 = vrot.slane %v353_v38, 5  ;;  %v5282_v32 = vld [vmem:[%s5208_s15 + $0x14] sm:$0x1] }
  0x31   : > { %4301 = vmatmul.msk.bf16.vlgmr.msra.gmra.mxu3 %vm647_vm4, %v643_v34  ;;  %v430_v48 = vshrl.u32 %v179_v33, 16  ;;  %v236_v49 = vsel %vm5220_vm3, %v231_v39, %v235_v28  ;;  %v599_v50 = vunpack.c.l.b16 %v226_v44  ;;  %v340_v51 = vor.u32 %v339_v41, %v336_v40  ;;  %v5279_v28 = vld [vmem:[%s5208_s15 + $0x10] sm:$0xf] }
  0x32   : > { %v433_v52 = vshll.u32 %v179_v33, 16  ;;  %v600_v53 = vunpack.c.l.b16 %v236_v49  ;;  %v350_v54 = vor.u32 %v349_v45, %v345_v42  ;;  %v439_v56 = vshll.u32 %v180_v43, 16 }
  0x33   : > { %v432_v55 = vrot.slane %v430_v48, 4  ;;  %v341_v57 = vrot.slane %v340_v51, 4  ;;  %v443_v59 = vshrl.u32 %v180_v43, 16  ;;  %v449_v60 = vshll.u32 %v203_v47, 16  ;;  %v5292_v47 = vld [vmem:[%s5208_s15 + $0x4c] sm:$0xf] }
  0x34   : > { %v435_v58 = vrot.slane %v433_v52, 5  ;;  %v631_v62 = vpack.c.b16 %v600_v53, %v599_v50  ;;  %v351_v63 = vrot.slane %v350_v54, 4  ;;  %v441_v0 = vrot.slane %v439_v56, 5  ;;  %v5297_v56 = vld [vmem:[%s5208_s15 + $0x50] sm:$0x1] }
  0x35   : > { %v346_v4 = vsel %vm5220_vm3, %v341_v57, %v345_v42  ;;  %v445_v6 = vrot.slane %v443_v59, 4  ;;  %v451_v7 = vrot.slane %v449_v60, 5  ;;  %v526_v11 = vshrl.u32 %v187_v61, 16  ;;  %v173_v42 = vld [vmem:[%s5208_s15 + $0x48] sm:$0xf] }
  0x36   : > { %v436_v5 = vor.u32 %v435_v58, %v432_v55  ;;  %4289 = vmatmul.msk.bf16.vlgmr.msra.gmra.mxu0 %vm647_vm4, %v631_v62  ;;  %v356_v9 = vsel %vm5220_vm3, %v351_v63, %v355_v46  ;;  %v609_v10 = vunpack.c.l.b16 %v346_v4  ;;  %v529_v12 = vshll.u32 %v187_v61, 16 }
  0x37   : > { %v610_v13 = vunpack.c.l.b16 %v356_v9  ;;  %v446_v15 = vor.u32 %v445_v6, %v441_v0  ;;  %v535_v16 = vshll.u32 %v188_v3, 16  ;;  %v528_v17 = vrot.slane %v526_v11, 4 }
  0x38   : > { %v437_v14 = vrot.slane %v436_v5, 4  ;;  %v531_v18 = vrot.slane %v529_v12, 5  ;;  %v539_v19 = vshrl.u32 %v188_v3, 16  ;;  %v545_v21 = vshll.u32 %v207_v8, 16  ;;  %v181_v3 = vld [vmem:[%s5208_s15 + $0x78] sm:$0xf] }
  0x39   : > { %v636_v23 = vpack.c.b16 %v610_v13, %v609_v10  ;;  %v447_v26 = vrot.slane %v446_v15, 4  ;;  %v537_v27 = vrot.slane %v535_v16, 5  ;;  %v238_v35 = vshrl.u32 %v163_v22, 16  ;;  %v182_v8 = vld [vmem:[%s5208_s15 + $0x7c] sm:$0xf] }
  0x3a   : > { %v442_v24 = vsel %vm5220_vm3, %v437_v14, %v441_v0  ;;  %v532_v30 = vor.u32 %v531_v18, %v528_v17  ;;  %v541_v31 = vrot.slane %v539_v19, 4  ;;  %v547_v34 = vrot.slane %v545_v21, 5  ;;  %v204_v16 = vld [vmem:[%s5208_s15 + $0x80] sm:$0x1] }
  0x3b   : > { %v617_v29 = vunpack.c.l.b16 %v442_v24  ;;  %4294 = vmatmul.msk.bf16.gmra.mxu1 %vm647_vm4, %v636_v23  ;;  %v452_v33 = vsel %vm5220_vm3, %v447_v26, %v451_v7  ;;  %v241_v37 = vshll.u32 %v163_v22, 16  ;;  %v247_v41 = vshll.u32 %v5279_v28, 16 }
  0x3c   : > { %v618_v38 = vunpack.c.l.b16 %v452_v33  ;;  %v533_v39 = vrot.slane %v532_v30, 4  ;;  %v542_v40 = vor.u32 %v541_v31, %v537_v27  ;;  %v240_v43 = vrot.slane %v238_v35, 4 }
  0x3d   : > { %v243_v44 = vrot.slane %v241_v37, 5  ;;  %v251_v45 = vshrl.u32 %v5279_v28, 16  ;;  %v257_v46 = vshll.u32 %v5282_v32, 16  ;;  %v249_v51 = vrot.slane %v247_v41, 5 }
  0x3e   : > { %v640_v48 = vpack.c.b16 %v618_v38, %v617_v29  ;;  %v538_v49 = vsel %vm5220_vm3, %v533_v39, %v537_v27  ;;  %v543_v50 = vrot.slane %v542_v40, 4  ;;  %v358_v58 = vshrl.u32 %v173_v42, 16  ;;  %v190_v39 = vld [vmem:[%s5208_s15 + $0xac] sm:$0xf]  ;;  %v208_v40 = vld [vmem:[%s5208_s15 + $0xb0] sm:$0x1] }
  0x3f   : > { %v625_v52 = vunpack.c.l.b16 %v538_v49  ;;  %v244_v53 = vor.u32 %v243_v44, %v240_v43  ;;  %v253_v54 = vrot.slane %v251_v45, 4  ;;  %v259_v55 = vrot.slane %v257_v46, 5 }
  0x40   : > { %4298 = vmatmul.msk.bf16.gmra.mxu2 %vm647_vm4, %v640_v48  ;;  %v548_v57 = vsel %vm5220_vm3, %v543_v50, %v547_v34  ;;  %v361_v59 = vshll.u32 %v173_v42, 16  ;;  %v367_v60 = vshll.u32 %v5292_v47, 16  ;;  %v371_v0 = vshrl.u32 %v5292_v47, 16  ;;  %v189_v34 = vld [vmem:[%s5208_s15 + $0xa8] sm:$0xf] }
  0x41   : > { %v626_v61 = vunpack.c.l.b16 %v548_v57  ;;  %v245_v62 = vrot.slane %v244_v53, 4  ;;  %v254_v63 = vor.u32 %v253_v54, %v249_v51  ;;  %v360_v4 = vrot.slane %v358_v58, 4 }
  0x42   : > { %v363_v5 = vrot.slane %v361_v59, 5  ;;  %v369_v6 = vrot.slane %v367_v60, 5  ;;  %v377_v7 = vshll.u32 %v5297_v56, 16  ;;  %v373_v12 = vrot.slane %v371_v0, 4  ;;  %v165_v59 = vld [vmem:[%s5208_s15 + $0x18] sm:$0xf] }
  0x43   : > { %v644_v9 = vpack.c.b16 %v626_v61, %v625_v52  ;;  %v250_v10 = vsel %vm5220_vm3, %v245_v62, %v249_v51  ;;  %v255_v11 = vrot.slane %v254_v63, 4  ;;  %v454_v17 = vshrl.u32 %v181_v3, 16  ;;  %v5325_v63 = vld [vmem:[%s5208_s15 + $0x1c] sm:$0xf]  ;;  %v5328_v0 = vld [vmem:[%s5208_s15 + $0x20] sm:$0x1] }
  0x44   : > { %v601_v13 = vunpack.c.l.b16 %v250_v10  ;;  %v364_v14 = vor.u32 %v363_v5, %v360_v4  ;;  %v379_v15 = vrot.slane %v377_v7, 5  ;;  %v374_v19 = vor.u32 %v373_v12, %v369_v6 }
  0x45   : > { %4302 = vmatmul.msk.bf16.gmra.mxu3 %vm647_vm4, %v644_v9  ;;  %v260_v18 = vsel %vm5220_vm3, %v255_v11, %v259_v55  ;;  %v457_v21 = vshll.u32 %v181_v3, 16  ;;  %v463_v22 = vshll.u32 %v182_v8, 16  ;;  %v456_v26 = vrot.slane %v454_v17, 4 }
  0x46   : > { %v602_v23 = vunpack.c.l.b16 %v260_v18  ;;  %v365_v24 = vrot.slane %v364_v14, 4  ;;  %v467_v27 = vshrl.u32 %v182_v8, 16  ;;  %v375_v29 = vrot.slane %v374_v19, 4 }
  0x47   : > { %v459_v30 = vrot.slane %v457_v21, 5  ;;  %v465_v31 = vrot.slane %v463_v22, 5  ;;  %v473_v33 = vshll.u32 %v204_v16, 16  ;;  %v550_v48 = vshrl.u32 %v189_v34, 16  ;;  %v5338_v21 = vld [vmem:[%s5208_s15 + $0x58] sm:$0xf] }
  0x48   : > { %v632_v35 = vpack.c.b16 %v602_v23, %v601_v13  ;;  %v370_v37 = vsel %vm5220_vm3, %v365_v24, %v369_v6  ;;  %v469_v38 = vrot.slane %v467_v27, 4  ;;  %v380_v41 = vsel %vm5220_vm3, %v375_v29, %v379_v15  ;;  %v175_v15 = vld [vmem:[%s5208_s15 + $0x54] sm:$0xf]  ;;  %v5343_v27 = vld [vmem:[%s5208_s15 + $0x5c] sm:$0x1] }
  0x49   : > { %v611_v42 = vunpack.c.l.b16 %v370_v37  ;;  %v460_v43 = vor.u32 %v459_v30, %v456_v26  ;;  %v475_v44 = vrot.slane %v473_v33, 5  ;;  %v612_v45 = vunpack.c.l.b16 %v380_v41 }
  0x4a   : > { %4290 = vmatmul.msk.bf16.gmra.mxu0 %vm647_vm4, %v632_v35  ;;  %v470_v46 = vor.u32 %v469_v38, %v465_v31  ;;  %v553_v49 = vshll.u32 %v189_v34, 16  ;;  %v559_v51 = vshll.u32 %v190_v39, 16  ;;  %v563_v52 = vshrl.u32 %v190_v39, 16  ;;  %v183_v39 = vld [vmem:[%s5208_s15 + $0x84] sm:$0xf] }
  0x4b   : > { %v461_v50 = vrot.slane %v460_v43, 4  ;;  %v569_v53 = vshll.u32 %v208_v40, 16  ;;  %v637_v54 = vpack.c.b16 %v612_v45, %v611_v42  ;;  %v552_v57 = vrot.slane %v550_v48, 4 }
  0x4c   : > { %v471_v55 = vrot.slane %v470_v46, 4  ;;  %v555_v58 = vrot.slane %v553_v49, 5  ;;  %v561_v61 = vrot.slane %v559_v51, 5  ;;  %v565_v62 = vrot.slane %v563_v52, 4  ;;  %v184_v49 = vld [vmem:[%s5208_s15 + $0x88] sm:$0xf] }
  0x4d   : > { %v466_v60 = vsel %vm5220_vm3, %v461_v50, %v465_v31  ;;  %4295 = vmatmul.msk.bf16.gmra.mxu1 %vm647_vm4, %v637_v54  ;;  %v571_v6 = vrot.slane %v569_v53, 5  ;;  %v262_v9 = vshrl.u32 %v165_v59, 16  ;;  %v265_v10 = vshll.u32 %v165_v59, 16  ;;  %v205_v53 = vld [vmem:[%s5208_s15 + $0x8c] sm:$0x1] }
  0x4e   : > { %v476_v3 = vsel %vm5220_vm3, %v471_v55, %v475_v44  ;;  %v619_v4 = vunpack.c.l.b16 %v466_v60  ;;  %v556_v5 = vor.u32 %v555_v58, %v552_v57  ;;  %v566_v8 = vor.u32 %v565_v62, %v561_v61 }
  0x4f   : > { %v620_v7 = vunpack.c.l.b16 %v476_v3  ;;  %v271_v12 = vshll.u32 %v5325_v63, 16  ;;  %v275_v13 = vshrl.u32 %v5325_v63, 16  ;;  %v281_v14 = vshll.u32 %v5328_v0, 16 }
  0x50   : > { %v557_v11 = vrot.slane %v556_v5, 4  ;;  %v567_v17 = vrot.slane %v566_v8, 4  ;;  %v264_v18 = vrot.slane %v262_v9, 4  ;;  %v267_v19 = vrot.slane %v265_v10, 5  ;;  %v191_v8 = vld [vmem:[%s5208_s15 + $0xb4] sm:$0xf] }
  0x51   : > { %v641_v16 = vpack.c.b16 %v620_v7, %v619_v4  ;;  %v273_v23 = vrot.slane %v271_v12, 5  ;;  %v277_v24 = vrot.slane %v275_v13, 4  ;;  %v283_v26 = vrot.slane %v281_v14, 5  ;;  %v192_v12 = vld [vmem:[%s5208_s15 + $0xb8] sm:$0xf] }
  0x52   : > { %v562_v22 = vsel %vm5220_vm3, %v557_v11, %v561_v61  ;;  %v572_v29 = vsel %vm5220_vm3, %v567_v17, %v571_v6  ;;  %v268_v31 = vor.u32 %v267_v19, %v264_v18  ;;  %v382_v33 = vshrl.u32 %v175_v15, 16  ;;  %v209_v17 = vld [vmem:[%s5208_s15 + $0xbc] sm:$0x1] }
  0x53   : > { %4299 = vmatmul.msk.bf16.gmra.mxu2 %vm647_vm4, %v641_v16  ;;  %v627_v30 = vunpack.c.l.b16 %v562_v22  ;;  %v628_v34 = vunpack.c.l.b16 %v572_v29  ;;  %v278_v35 = vor.u32 %v277_v24, %v273_v23  ;;  %v385_v37 = vshll.u32 %v175_v15, 16 }
  0x54   : > { %v391_v38 = vshll.u32 %v5338_v21, 16  ;;  %v269_v40 = vrot.slane %v268_v31, 4  ;;  %v384_v41 = vrot.slane %v382_v33, 4  ;;  %v395_v42 = vshrl.u32 %v5338_v21, 16 }
  0x55   : > { %v401_v43 = vshll.u32 %v5343_v27, 16  ;;  %v645_v44 = vpack.c.b16 %v628_v34, %v627_v30  ;;  %v279_v45 = vrot.slane %v278_v35, 4  ;;  %v387_v46 = vrot.slane %v385_v37, 5  ;;  %v167_v37 = vld [vmem:[%s5208_s15 + $0x24] sm:$0xf] }
  0x56   : > { %v393_v48 = vrot.slane %v391_v38, 5  ;;  %v274_v50 = vsel %vm5220_vm3, %v269_v40, %v273_v23  ;;  %v397_v51 = vrot.slane %v395_v42, 4  ;;  %v478_v54 = vshrl.u32 %v183_v39, 16  ;;  %v5371_v42 = vld [vmem:[%s5208_s15 + $0x28] sm:$0xf] }
  0x57   : > { %v403_v52 = vrot.slane %v401_v43, 5  ;;  %4303 = vmatmul.msk.bf16.gmra.mxu3 %vm647_vm4, %v645_v44  ;;  %v284_v55 = vsel %vm5220_vm3, %v279_v45, %v283_v26  ;;  %v603_v57 = vunpack.c.l.b16 %v274_v50  ;;  %v388_v58 = vor.u32 %v387_v46, %v384_v41 }
  0x58   : > { %v481_v59 = vshll.u32 %v183_v39, 16  ;;  %v604_v60 = vunpack.c.l.b16 %v284_v55  ;;  %v398_v61 = vor.u32 %v397_v51, %v393_v48  ;;  %v480_v62 = vrot.slane %v478_v54, 4 }
  0x59   : > { %v487_v3 = vshll.u32 %v184_v49, 16  ;;  %v389_v4 = vrot.slane %v388_v58, 4  ;;  %v491_v6 = vshrl.u32 %v184_v49, 16  ;;  %v497_v7 = vshll.u32 %v205_v53, 16 }
  0x5a   : > { %v483_v5 = vrot.slane %v481_v59, 5  ;;  %v633_v9 = vpack.c.b16 %v604_v60, %v603_v57  ;;  %v399_v10 = vrot.slane %v398_v61, 4  ;;  %v574_v22 = vshrl.u32 %v191_v8, 16  ;;  %v1009_v61 = vld [vmem:[%s5208_s15] sm:$0xe] }
  0x5b   : > { %v489_v11 = vrot.slane %v487_v3, 5  ;;  %v394_v13 = vsel %vm5220_vm3, %v389_v4, %v393_v48  ;;  %v493_v15 = vrot.slane %v491_v6, 4  ;;  %v499_v16 = vrot.slane %v497_v7, 5  ;;  %v5375_v48 = vld [vmem:[%s5208_s15 + $0x2c] sm:$0x1] }
  0x5c   : > { %v484_v14 = vor.u32 %v483_v5, %v480_v62  ;;  %4291 = vmatmul.msk.bf16.gmra.mxu0 %vm647_vm4, %v633_v9  ;;  %v404_v18 = vsel %vm5220_vm3, %v399_v10, %v403_v52  ;;  %v613_v19 = vunpack.c.l.b16 %v394_v13  ;;  %v577_v23 = vshll.u32 %v191_v8, 16  ;;  %v4531_v6 = vld [vmem:[%s5208_s15 + $0xc] sm:$0xf] }
  0x5d   : > { %v614_v24 = vunpack.c.l.b16 %v404_v18  ;;  %v494_v29 = vor.u32 %v493_v15, %v489_v11  ;;  %v583_v30 = vshll.u32 %v192_v12, 16  ;;  %v576_v31 = vrot.slane %v574_v22, 4 }
  0x5e   : > { %v485_v26 = vrot.slane %v484_v14, 4  ;;  %v579_v33 = vrot.slane %v577_v23, 5  ;;  %v587_v34 = vshrl.u32 %v192_v12, 16  ;;  %v593_v35 = vshll.u32 %v209_v17, 16  ;;  %v4532_v12 = vld [vmem:[%s5208_s15 + $0x10] sm:$0xf] }
  0x5f   : > { %v638_v38 = vpack.c.b16 %v614_v24, %v613_v19  ;;  %v495_v40 = vrot.slane %v494_v29, 4  ;;  %v585_v41 = vrot.slane %v583_v30, 5  ;;  %v1065_v43 = vrot.slane %v5236_v2, 5 }
  0x60   : > { %v490_v39 = vsel %vm5220_vm3, %v485_v26, %v489_v11  ;;  %v580_v45 = vor.u32 %v579_v33, %v576_v31  ;;  %v589_v46 = vrot.slane %v587_v34, 4  ;;  %v595_v50 = vrot.slane %v593_v35, 5  ;;  %v4677_v11 = vld [vmem:[%s6538_s1 + $0x18] sm:$0xf] }
  0x61   : > { %v621_v44 = vunpack.c.l.b16 %v490_v39  ;;  %4296 = vmatmul.msk.bf16.gmra.mxu1 %vm647_vm4, %v638_v38  ;;  %v500_v49 = vsel %vm5220_vm3, %v495_v40, %v499_v16  ;;  %v286_v51 = vshrl.u32 %v167_v37, 16  ;;  %v289_v52 = vshll.u32 %v167_v37, 16  ;;  %v4533_v38 = vld [vmem:[%s5208_s15 + $0x14] sm:$0x1] }
  0x62   : > { %v622_v53 = vunpack.c.l.b16 %v500_v49  ;;  %v581_v54 = vrot.slane %v580_v45, 4  ;;  %v590_v55 = vor.u32 %v589_v46, %v585_v41  ;;  %v295_v2 = vshll.u32 %v5371_v42, 16  ;;  %v4806_v45 = vld [vmem:[%s6538_s1 + $0x1c] sm:$0xf] }
  0x63   : > { %v288_v57 = vrot.slane %v286_v51, 4  ;;  %v291_v58 = vrot.slane %v289_v52, 5  ;;  %v299_v59 = vshrl.u32 %v5371_v42, 16  ;;  %v305_v60 = vshll.u32 %v5375_v48, 16  ;;  %v4876_v51 = vld [vmem:[%s5208_s15] sm:$0xff] }
  0x64   : > { %v642_v62 = vpack.c.b16 %v622_v53, %v621_v44  ;;  %v586_v3 = vsel %vm5220_vm3, %v581_v54, %v585_v41  ;;  %v591_v4 = vrot.slane %v590_v55, 4  ;;  %v297_v5 = vrot.slane %v295_v2, 5  ;;  %v4855_v2 = vld [vmem:[%s6538_s1 + $0x20] sm:$0xf] }
  0x65   : > { %v629_v7 = vunpack.c.l.b16 %v586_v3  ;;  %v292_v8 = vor.u32 %v291_v58, %v288_v57  ;;  %v301_v9 = vrot.slane %v299_v59, 4  ;;  %v307_v10 = vrot.slane %v305_v60, 5 }
  0x66   : > { %4300 = vmatmul.msk.bf16.gmra.mxu2 %vm647_vm4, %v642_v62  ;;  %v596_v13 = vsel %vm5220_vm3, %v591_v4, %v595_v50  ;;  %v4385_v14 = vrot.slane %v1009_v61, 9  ;;  %v1062_v19 = vrot.slane %v5233_v1, 5  ;;  %v2903_v22 = vsel %vm696_vm0, %v4677_v11, 0  ;;  %v4628_v50 = vld [vmem:[%s6538_s1 + $0x14] sm:$0xf] }
  0x67   : > { %v630_v15 = vunpack.c.l.b16 %v596_v13  ;;  %v293_v16 = vrot.slane %v292_v8, 4  ;;  %v302_v17 = vor.u32 %v301_v9, %v297_v5  ;;  %v1733_v23 = vshrl.u32 %v4531_v6, 16  ;;  %2912 = vmatpush.bf16.msra.mxu2 %v2903_v22  ;;  %v1010_v8 = vld [vmem:[%s5208_s15 + $0xc] sm:$0xe] }
  0x68   : > { %v1736_v24 = vshll.u32 %v4531_v6, 16  ;;  %v1742_v26 = vshll.u32 %v4532_v12, 16  ;;  %v1063_v33 = vsel %vm5394_vm7, %v4385_v14, %v1062_v19  ;;  %v1064_v35 = vrot.slane %v1062_v19, 4  ;;  %v4535_v6 = vld [vmem:[%s5208_s15 + $0x1c] sm:$0xf] }
  0x69   : > { %v646_v29 = vpack.c.b16 %v630_v15, %v629_v7  ;;  %v298_v30 = vsel %vm5220_vm3, %v293_v16, %v297_v5  ;;  %v303_v31 = vrot.slane %v302_v17, 4  ;;  %v1174_v37 = vunpack.c.l.b16 %v1063_v33  ;;  %v4534_v5 = vld [vmem:[%s5208_s15 + $0x18] sm:$0xf]  ;;  %v4892_v15 = vld [vmem:[%s5208_s15 + $0xc] sm:$0xff] }
  0x6a   : > { %v605_v34 = vunpack.c.l.b16 %v298_v30  ;;  %v1735_v1 = vrot.slane %v1733_v23, 4  ;;  %v1738_v40 = vrot.slane %v1736_v24, 5  ;;  %v1744_v41 = vrot.slane %v1742_v26, 5  ;;  %v4536_v30 = vld [vmem:[%s5208_s15 + $0x20] sm:$0x1] }
  0x6b   : > { %4304 = vmatmul.msk.bf16.gmra.mxu3 %vm647_vm4, %v646_v29  ;;  %v308_v39 = vsel %vm5220_vm3, %v303_v31, %v307_v10  ;;  %v1746_v44 = vshrl.u32 %v4532_v12, 16  ;;  %v1066_v49 = vsel %vm5394_vm7, %v1064_v35, %v1065_v43  ;;  %v1752_v55 = vshll.u32 %v4533_v38, 16  ;;  %v4877_v35 = vld [vmem:[%s5208_s15 + $0xc] sm:$0xff] }
  0x6c   : > { %v606_v46 = vunpack.c.l.b16 %v308_v39  ;;  %v1175_v52 = vunpack.c.l.b16 %v1066_v49  ;;  %v1739_v53 = vor.u32 %v1738_v40, %v1735_v1  ;;  %v3557_v58 = vsel %vm696_vm0, %v4806_v45, 0 }
  0x6d   : > { %v1748_v54 = vrot.slane %v1746_v44, 4  ;;  %3566 = vmatpush.bf16.msra.mxu3 %v3557_v58  ;;  %v2613_v60 = vsel %vm696_vm0, %v4628_v50, 0  ;;  %v3955_v61 = vsel %vm696_vm0, %v4855_v2, 0  ;;  %v1754_v4 = vrot.slane %v1752_v55, 5  ;;  %v1011_v50 = vld [vmem:[%s5208_s15 + $0x18] sm:$0xe] }
  0x6e   : > { %v634_v57 = vpack.c.b16 %v606_v46, %v605_v34  ;;  %v1206_v43 = vpack.c.b16 %v1175_v52, %v1174_v37  ;;  %2622 = vmatpush.bf16.msra.mxu1 %v2613_v60  ;;  %v1740_v62 = vrot.slane %v1739_v53, 4  ;;  %3964 = vmatpush.bf16.msra.mxu0 %v3955_v61  ;;  %v1069_v7 = vrot.slane %v5279_v28, 5  ;;  %v4538_v46 = vld [vmem:[%s5208_s15 + $0x28] sm:$0xf] }
  0x6f   : > { %v1749_v59 = vor.u32 %v1748_v54, %v1744_v41  ;;  %v1757_v9 = vshrl.u32 %v4534_v5, 16  ;;  %v1760_v10 = vshll.u32 %v4534_v5, 16  ;;  %v1766_v13 = vshll.u32 %v4535_v6, 16 }
  0x70   : > { %4292 = vmatmul.msk.bf16.gmra.mxu0 %vm647_vm4, %v634_v57  ;;  %v1745_v11 = vsel %vm5220_vm3, %v1740_v62, %v1744_v41  ;;  %v1770_v14 = vshrl.u32 %v4535_v6, 16  ;;  %v4386_v16 = vrot.slane %v1010_v8, 9  ;;  %v1071_v17 = vrot.slane %v1069_v7, 4  ;;  %v4537_v41 = vld [vmem:[%s5208_s15 + $0x24] sm:$0xf] }
  0x71   : > { %4369 = vmatmul.msk.bf16.vlgmr.msrb.gmra.mxu1 %vm647_vm4, %v4876_v51  ;;  %v1750_v3 = vrot.slane %v1749_v59, 4  ;;  %v1072_v28 = vrot.slane %v5282_v32, 5  ;;  %v2118_v19 = vunpack.c.l.b16 %v1745_v11  ;;  %v1759_v23 = vrot.slane %v1757_v9, 4  ;;  %v4539_v6 = vld [vmem:[%s5208_s15 + $0x2c] sm:$0x1] }
  0x72   : > { %v1762_v24 = vrot.slane %v1760_v10, 5  ;;  %v1768_v26 = vrot.slane %v1766_v13, 5  ;;  %v1772_v29 = vrot.slane %v1770_v14, 4  ;;  %v1070_v31 = vsel %vm5394_vm7, %v4386_v16, %v1069_v7 }
  0x73   : > { %v1755_v12 = vsel %vm5220_vm3, %v1750_v3, %v1754_v4  ;;  %v1073_v33 = vsel %vm5394_vm7, %v1071_v17, %v1072_v28  ;;  %v1776_v38 = vshll.u32 %v4536_v30, 16  ;;  %v1176_v1 = vunpack.c.l.b16 %v1070_v31 }
  0x74   : > { %v2119_v22 = vunpack.c.l.b16 %v1755_v12  ;;  %v1763_v32 = vor.u32 %v1762_v24, %v1759_v23  ;;  %v1773_v37 = vor.u32 %v1772_v29, %v1768_v26  ;;  %v1177_v39 = vunpack.c.l.b16 %v1073_v33  ;;  %v4878_v12 = vld [vmem:[%s5208_s15 + $0x18] sm:$0xff]  ;;  %v1012_v29 = vld [vmem:[%s5208_s15 + $0x24] sm:$0xe] }
  0x75   : > { %v1778_v45 = vrot.slane %v1776_v38, 5  ;;  %v1076_v51 = vrot.slane %v5325_v63, 5  ;;  %v1781_v52 = vshrl.u32 %v4537_v41, 16  ;;  %v1784_v54 = vshll.u32 %v4537_v41, 16 }
  0x76   : > { %4402 = vmatmul.msk.bf16.vlgmr.msrb.gmra.mxu2 %vm647_vm4, %v1206_v43  ;;  %v2150_v34 = vpack.c.b16 %v2119_v22, %v2118_v19  ;;  %v1764_v40 = vrot.slane %v1763_v32, 4  ;;  %v1774_v44 = vrot.slane %v1773_v37, 4  ;;  %v1207_v49 = vpack.c.b16 %v1177_v39, %v1176_v1  ;;  %v4893_v43 = vld [vmem:[%s5208_s15 + $0x18] sm:$0xff]  ;;  %v4540_v19 = vld [vmem:[%s5208_s15 + $0x30] sm:$0xf]  ;;  %v4894_v32 = vld [vmem:[%s5208_s15 + $0x24] sm:$0xff] }
  0x77   : > { %v1790_v55 = vshll.u32 %v4538_v46, 16  ;;  %v1794_v2 = vshrl.u32 %v4538_v46, 16  ;;  %v4387_v58 = vrot.slane %v1011_v50, 9  ;;  %v1078_v60 = vrot.slane %v1076_v51, 4  ;;  %v4541_v22 = vld [vmem:[%s5208_s15 + $0x34] sm:$0xf] }
  0x78   : > { %v1769_v53 = vsel %vm5220_vm3, %v1764_v40, %v1768_v26  ;;  %v1779_v57 = vsel %vm5220_vm3, %v1774_v44, %v1778_v45  ;;  %v1079_v63 = vrot.slane %v5328_v0, 5  ;;  %v1783_v61 = vrot.slane %v1781_v52, 4  ;;  %v4542_v45 = vld [vmem:[%s5208_s15 + $0x38] sm:$0x1] }
  0x79   : > { %v2120_v59 = vunpack.c.l.b16 %v1769_v53  ;;  %v2121_v62 = vunpack.c.l.b16 %v1779_v57  ;;  %v1786_v3 = vrot.slane %v1784_v54, 5  ;;  %v1792_v4 = vrot.slane %v1790_v55, 5  ;;  %v4544_v57 = vld [vmem:[%s5208_s15 + $0x40] sm:$0xf] }
  0x7a   : > { %v1796_v5 = vrot.slane %v1794_v2, 4  ;;  %v1077_v7 = vsel %vm5394_vm7, %v4387_v58, %v1076_v51  ;;  %v1080_v8 = vsel %vm5394_vm7, %v1078_v60, %v1079_v63  ;;  %v1800_v0 = vshll.u32 %v4539_v6, 16  ;;  %v4543_v2 = vld [vmem:[%s5208_s15 + $0x3c] sm:$0xf]  ;;  %v4983_v63 = vld [vmem:[%s5208_s15 + $0x34] sm:$0xf] }
  0x7b   : > { %4515 = vmatmul.msk.bf16.vlgmr.msrb.gmra.mxu3 %vm647_vm4, %v4892_v15  ;;  %v2151_v9 = vpack.c.b16 %v2121_v62, %v2120_v59  ;;  %v1787_v10 = vor.u32 %v1786_v3, %v1783_v61  ;;  %v1178_v13 = vunpack.c.l.b16 %v1077_v7  ;;  %v1179_v14 = vunpack.c.l.b16 %v1080_v8  ;;  %v1013_v62 = vld [vmem:[%s5208_s15 + $0x30] sm:$0xe] }
  0x7c   : > { %v1797_v11 = vor.u32 %v1796_v5, %v1792_v4  ;;  %v1802_v17 = vrot.slane %v1800_v0, 5  ;;  %v1083_v23 = vrot.slane %v5371_v42, 5  ;;  %v1805_v30 = vshrl.u32 %v4540_v19, 16  ;;  %v4984_v0 = vld [vmem:[%s5208_s15 + $0x38] sm:$0x1] }
  0x7d   : > { %v1788_v15 = vrot.slane %v1787_v10, 4  ;;  %v1208_v28 = vpack.c.b16 %v1179_v14, %v1178_v13  ;;  %v1808_v31 = vshll.u32 %v4540_v19, 16  ;;  %v1814_v33 = vshll.u32 %v4541_v22, 16  ;;  %v4895_v13 = vld [vmem:[%s5208_s15 + $0x30] sm:$0xff] }
  0x7e   : > { %v1798_v16 = vrot.slane %v1797_v11, 4  ;;  %v1085_v37 = vrot.slane %v1083_v23, 4  ;;  %v1086_v42 = vrot.slane %v5375_v48, 5  ;;  %v1807_v39 = vrot.slane %v1805_v30, 4  ;;  %v4879_v48 = vld [vmem:[%s5208_s15 + $0x24] sm:$0xff] }
  0x7f   : > { %v1793_v24 = vsel %vm5220_vm3, %v1788_v15, %v1792_v4  ;;  %v1810_v40 = vrot.slane %v1808_v31, 5  ;;  %v1816_v41 = vrot.slane %v1814_v33, 5  ;;  %v1824_v53 = vshll.u32 %v4542_v45, 16  ;;  %v4880_v33 = vld [vmem:[%s5208_s15 + $0x30] sm:$0xff] }
  0x80   : > { %4580 = vmatmul.msk.bf16.vlgmr.msrb.gmra.mxu0 %vm647_vm4, %v2150_v34  ;;  %v1803_v26 = vsel %vm5220_vm3, %v1798_v16, %v1802_v17  ;;  %v1818_v34 = vshrl.u32 %v4541_v22, 16  ;;  %v2122_v38 = vunpack.c.l.b16 %v1793_v24  ;;  %v1090_v61 = vrot.slane %v4983_v63, 5  ;;  %v4545_v22 = vld [vmem:[%s5208_s15 + $0x44] sm:$0x1] }
  0x81   : > { %4370 = vmatmul.msk.bf16.gmra.mxu1 %vm647_vm4, %v4877_v35  ;;  %v4388_v35 = vrot.slane %v1012_v29, 9  ;;  %v2123_v1 = vunpack.c.l.b16 %v1803_v26  ;;  %v1811_v51 = vor.u32 %v1810_v40, %v1807_v39  ;;  %v1826_v59 = vrot.slane %v1824_v53, 5  ;;  %v4546_v39 = vld [vmem:[%s5208_s15 + $0x48] sm:$0xf]  ;;  %v4547_v40 = vld [vmem:[%s5208_s15 + $0x4c] sm:$0xf] }
  0x82   : > { %v1820_v44 = vrot.slane %v1818_v34, 4  ;;  %v1829_v3 = vshrl.u32 %v4543_v2, 16  ;;  %v1832_v4 = vshll.u32 %v4543_v2, 16  ;;  %v1838_v5 = vshll.u32 %v4544_v57, 16  ;;  %v4896_v2 = vld [vmem:[%s5208_s15 + $0x3c] sm:$0xff] }
  0x83   : > { %v1084_v46 = vsel %vm5394_vm7, %v4388_v35, %v1083_v23  ;;  %v2152_v50 = vpack.c.b16 %v2123_v1, %v2122_v38  ;;  %v1812_v58 = vrot.slane %v1811_v51, 4  ;;  %v1842_v6 = vshrl.u32 %v4544_v57, 16 }
  0x84   : > { %v1821_v52 = vor.u32 %v1820_v44, %v1816_v41  ;;  %v1180_v54 = vunpack.c.l.b16 %v1084_v46  ;;  %v4389_v10 = vrot.slane %v1013_v62, 9  ;;  %v1092_v11 = vrot.slane %v1090_v61, 4 }
  0x85   : > { %v1817_v8 = vsel %vm5220_vm3, %v1812_v58, %v1816_v41  ;;  %v1831_v14 = vrot.slane %v1829_v3, 4  ;;  %v1834_v15 = vrot.slane %v1832_v4, 5  ;;  %v1840_v16 = vrot.slane %v1838_v5, 5  ;;  %v4548_v4 = vld [vmem:[%s5208_s15 + $0x50] sm:$0x1] }
  0x86   : > { %4403 = vmatmul.msk.bf16.gmra.mxu2 %vm647_vm4, %v1207_v49  ;;  %v1087_v49 = vsel %vm5394_vm7, %v1085_v37, %v1086_v42  ;;  %v1844_v17 = vrot.slane %v1842_v6, 4  ;;  %v1091_v23 = vsel %vm5394_vm7, %v4389_v10, %v1090_v61  ;;  %v1848_v30 = vshll.u32 %v4545_v22, 16 }
  0x87   : > { %v1181_v55 = vunpack.c.l.b16 %v1087_v49  ;;  %v1835_v26 = vor.u32 %v1834_v15, %v1831_v14  ;;  %v1853_v51 = vshrl.u32 %v4546_v39, 16  ;;  %v1862_v53 = vshll.u32 %v4547_v40, 16 }
  0x88   : > { %v1845_v29 = vor.u32 %v1844_v17, %v1840_v16  ;;  %v1850_v1 = vrot.slane %v1848_v30, 5 }
  0x89   : > { %v1209_v60 = vpack.c.b16 %v1181_v55, %v1180_v54  ;;  %v1836_v42 = vrot.slane %v1835_v26, 4  ;;  %v1866_v54 = vshrl.u32 %v4547_v40, 16  ;;  %v1864_v62 = vrot.slane %v1862_v53, 5 }
  0x8a   : > { %v1846_v38 = vrot.slane %v1845_v29, 4  ;;  %v1104_v26 = vrot.slane %v5292_v47, 5 }
  0x8b   : > { %4516 = vmatmul.msk.bf16.gmra.mxu3 %vm647_vm4, %v4893_v43  ;;  %v1822_v43 = vrot.slane %v1821_v52, 4  ;;  %v1841_v45 = vsel %vm5220_vm3, %v1836_v42, %v1840_v16  ;;  %v1856_v52 = vshll.u32 %v4546_v39, 16  ;;  %v1868_v3 = vrot.slane %v1866_v54, 4  ;;  %v4551_v54 = vld [vmem:[%s5208_s15 + $0x5c] sm:$0x1] }
  0x8c   : > { %v1851_v46 = vsel %vm5220_vm3, %v1846_v38, %v1850_v1  ;;  %v2126_v55 = vunpack.c.l.b16 %v1841_v45  ;;  %v4897_v1 = vld [vmem:[%s5208_s15 + $0x48] sm:$0xff]  ;;  %v1106_v40 = vrot.slane %v1104_v26, 4 }
  0x8d   : > { %v2127_v57 = vunpack.c.l.b16 %v1851_v46  ;;  %v1858_v61 = vrot.slane %v1856_v52, 5  ;;  %v1869_v10 = vor.u32 %v1868_v3, %v1864_v62 }
  0x8f   : > { %v1870_v16 = vrot.slane %v1869_v10, 4 }
  0x90   : > { %4581 = vmatmul.msk.bf16.gmra.mxu0 %vm647_vm4, %v2151_v9  ;;  %v1827_v9 = vsel %vm5220_vm3, %v1822_v43, %v1826_v59 }
  0x91   : > { %4371 = vmatmul.msk.bf16.gmra.mxu1 %vm647_vm4, %v4878_v12  ;;  %v1093_v12 = vrot.slane %v4984_v0, 5  ;;  %v2125_v19 = vunpack.c.l.b16 %v1827_v9 }
  0x93   : > { %v1094_v24 = vsel %vm5394_vm7, %v1092_v11, %v1093_v12  ;;  %v1872_v11 = vshll.u32 %v4548_v4, 16  ;;  %v4881_v12 = vld [vmem:[%s5208_s15 + $0x3c] sm:$0xff] }
  0x94   : > { %v1183_v35 = vunpack.c.l.b16 %v1094_v24  ;;  %v4550_v24 = vld [vmem:[%s5208_s15 + $0x58] sm:$0xf]  ;;  %v4552_v4 = vld [vmem:[%s5208_s15 + $0x60] sm:$0xf] }
  0x95   : > { %v1874_v17 = vrot.slane %v1872_v11, 5  ;;  %v1890_v42 = vshrl.u32 %v4550_v24, 16 }
  0x96   : > { %4404 = vmatmul.msk.bf16.gmra.mxu2 %vm647_vm4, %v1208_v28  ;;  %v2124_v28 = vunpack.c.l.b16 %v1817_v8  ;;  %v2154_v8 = vpack.c.b16 %v2127_v57, %v2126_v55 }
  0x97   : > { %v1875_v30 = vsel %vm5220_vm3, %v1870_v16, %v1874_v17  ;;  %v1892_v52 = vrot.slane %v1890_v42, 4 }
  0x98   : > { %v2153_v31 = vpack.c.b16 %v2125_v19, %v2124_v28  ;;  %v2129_v46 = vunpack.c.l.b16 %v1875_v30 }
  0x9b   : > { %4517 = vmatmul.msk.bf16.gmra.mxu3 %vm647_vm4, %v4894_v32  ;;  %v1182_v32 = vunpack.c.l.b16 %v1091_v23  ;;  %v4549_v23 = vld [vmem:[%s5208_s15 + $0x54] sm:$0xf] }
  0x9d   : > { %v1210_v44 = vpack.c.b16 %v1183_v35, %v1182_v32  ;;  %v1880_v32 = vshll.u32 %v4549_v23, 16  ;;  %v1886_v35 = vshll.u32 %v4550_v24, 16 }
  0xa0   : > { %4582 = vmatmul.msk.bf16.gmra.mxu0 %vm647_vm4, %v2152_v50  ;;  %v1097_v50 = vrot.slane %v5248_v20, 5  ;;  %v1855_v20 = vrot.slane %v1853_v51, 4  ;;  %v1888_v51 = vrot.slane %v1886_v35, 5  ;;  %v1114_v35 = vrot.slane %v5343_v27, 5 }
  0xa1   : > { %4372 = vmatmul.msk.bf16.gmra.mxu1 %vm647_vm4, %v4879_v48  ;;  %v1014_v48 = vld [vmem:[%s5208_s15 + $0x3c] sm:$0xe] }
  0xa2   : > { %v4390_v43 = vrot.slane %v1014_v48, 9  ;;  %v1099_v59 = vrot.slane %v1097_v50, 4  ;;  %v1882_v48 = vrot.slane %v1880_v32, 5 }
  0xa4   : > { %v1098_v5 = vsel %vm5394_vm7, %v4390_v43, %v1097_v50  ;;  %v4882_v43 = vld [vmem:[%s5208_s15 + $0x48] sm:$0xff] }
  0xa6   : > { %v5489_v7 = vpop.f32.mrf.mxu1  ;;  %4405 = vmatmul.msk.bf16.gmra.mxu2 %vm647_vm4, %v1209_v60  ;;  %v1100_v60 = vrot.slane %v5253_v25, 5  ;;  %v1859_v25 = vor.u32 %v1858_v61, %v1855_v20  ;;  %v1896_v20 = vshll.u32 %v4551_v54, 16  ;;  %v4883_v54 = vld [vmem:[%s5208_s15 + $0x54] sm:$0xff] }
  0xa8   : > { %v1101_v6 = vsel %vm5394_vm7, %v1099_v59, %v1100_v60  ;;  %v1860_v15 = vrot.slane %v1859_v25, 4  ;;  %v1893_v60 = vor.u32 %v1892_v52, %v1888_v51  ;;  %v1898_v10 = vrot.slane %v1896_v20, 5 }
  0xa9   : > { %v1185_v14 = vunpack.c.l.b16 %v1101_v6 }
  0xaa   : > { %v1865_v29 = vsel %vm5220_vm3, %v1860_v15, %v1864_v62  ;;  %v1894_v25 = vrot.slane %v1893_v60, 4  ;;  %v1111_v15 = vrot.slane %v5338_v21, 5 }
  0xab   : > { %4518 = vmatmul.msk.bf16.gmra.mxu3 %vm647_vm4, %v4895_v13  ;;  %v1184_v13 = vunpack.c.l.b16 %v1098_v5  ;;  %v2128_v45 = vunpack.c.l.b16 %v1865_v29  ;;  %v4553_v5 = vld [vmem:[%s5208_s15 + $0x64] sm:$0xf] }
  0xac   : > { %v1914_v16 = vshrl.u32 %v4553_v5, 16  ;;  %v1899_v24 = vsel %vm5220_vm3, %v1894_v25, %v1898_v10  ;;  %v1113_v32 = vrot.slane %v1111_v15, 4  ;;  %v4985_v10 = vld [vmem:[%s5208_s15 + $0x64] sm:$0xf] }
  0xad   : > { %v1211_v19 = vpack.c.b16 %v1185_v14, %v1184_v13  ;;  %v2155_v57 = vpack.c.b16 %v2129_v46, %v2128_v45  ;;  %v1904_v13 = vshll.u32 %v4552_v4, 16  ;;  %v1910_v14 = vshll.u32 %v4553_v5, 16 }
  0xae   : > { %v5505_v34 = vpop.f32.mrf.mxu1  ;;  %v1916_v42 = vrot.slane %v1914_v16, 4 }
  0xaf   : > { %v1906_v30 = vrot.slane %v1904_v13, 5  ;;  %v1017_v13 = vld [vmem:[%s5208_s15 + $0x60] sm:$0xe] }
  0xb0   : > { %v5507_v37 = vpop.f32.mrf.mxu2  ;;  %4583 = vmatmul.msk.bf16.gmra.mxu0 %vm647_vm4, %v2153_v31  ;;  %v1015_v31 = vld [vmem:[%s5208_s15 + $0x48] sm:$0xe] }
  0xb1   : > { %4373 = vmatmul.msk.bf16.gmra.mxu1 %vm647_vm4, %v4880_v33  ;;  %v1877_v33 = vshrl.u32 %v4549_v23, 16  ;;  %v4391_v47 = vrot.slane %v1015_v31, 9  ;;  %v1912_v31 = vrot.slane %v1910_v14, 5 }
  0xb3   : > { %v5513_v41 = vpop.f32.mrf.mxu0  ;;  %v1879_v50 = vrot.slane %v1877_v33, 4  ;;  %v4898_v33 = vld [vmem:[%s5208_s15 + $0x54] sm:$0xff]  ;;  %v1917_v27 = vor.u32 %v1916_v42, %v1912_v31 }
  0xb4   : > { %v5519_v49 = vpop.f32.mrf.mxu3 }
  0xb5   : > { %v1883_v59 = vor.u32 %v1882_v48, %v1879_v50  ;;  %v1115_v48 = vsel %vm5394_vm7, %v1113_v32, %v1114_v35  ;;  %v1918_v60 = vrot.slane %v1917_v27, 4 }
  0xb6   : > { %4406 = vmatmul.msk.bf16.gmra.mxu2 %vm647_vm4, %v1210_v44  ;;  %v1107_v44 = vrot.slane %v5297_v56, 5 }
  0xb8   : > { %v5525_v58 = vpop.f32.mrf.mxu1  ;;  %v5528_v63 = vpop.f32.mrf.mxu2  ;;  %v1108_v56 = vsel %vm5394_vm7, %v1106_v40, %v1107_v44  ;;  %v4554_v40 = vld [vmem:[%s5208_s15 + $0x68] sm:$0x1] }
  0xb9   : > { %v1187_v62 = vunpack.c.l.b16 %v1108_v56 }
  0xbb   : > { %4519 = vmatmul.msk.bf16.gmra.mxu3 %vm647_vm4, %v4896_v2  ;;  %v5536_v9 = vpop.f32.mrf.mxu0  ;;  %v1105_v2 = vsel %vm5394_vm7, %v4391_v47, %v1104_v26  ;;  %v2131_v47 = vunpack.c.l.b16 %v1899_v24 }
  0xbc   : > { %v5538_v0 = vpop.f32.mrf.mxu3  ;;  %v1186_v61 = vunpack.c.l.b16 %v1105_v2 }
  0xbe   : > { %v1212_v11 = vpack.c.b16 %v1187_v62, %v1186_v61  ;;  %v4555_v61 = vld [vmem:[%s5208_s15 + $0x6c] sm:$0xf]  ;;  %v4556_v62 = vld [vmem:[%s5208_s15 + $0x70] sm:$0xf] }
  0xbf   : > { %v1925_v14 = vshrl.u32 %v4555_v61, 16  ;;  %v1934_v16 = vshll.u32 %v4556_v62, 16 }
  0xc0   : > { %4584 = vmatmul.msk.bf16.gmra.mxu0 %vm647_vm4, %v2154_v8  ;;  %v5542_v28 = vpop.f32.mrf.mxu1  ;;  %v1884_v8 = vrot.slane %v1883_v59, 4 }
  0xc1   : > { %4374 = vmatmul.msk.bf16.gmra.mxu1 %vm647_vm4, %v4881_v12  ;;  %v1901_v12 = vshrl.u32 %v4552_v4, 16  ;;  %v1927_v35 = vrot.slane %v1925_v14, 4  ;;  %v4559_v14 = vld [vmem:[%s5208_s15 + $0x7c] sm:$0xf] }
  0xc2   : > { %v1889_v23 = vsel %vm5220_vm3, %v1884_v8, %v1888_v51  ;;  %v1920_v51 = vshll.u32 %v4554_v40, 16 }
  0xc3   : > { %v5545_v22 = vpop.f32.mrf.mxu2  ;;  %v1903_v29 = vrot.slane %v1901_v12, 4 }
  0xc4   : > { %v1922_v20 = vrot.slane %v1920_v51, 5 }
  0xc5   : > { %v1907_v46 = vor.u32 %v1906_v30, %v1903_v29  ;;  %v4899_v30 = vld [vmem:[%s5208_s15 + $0x60] sm:$0xff] }
  0xc6   : > { %4407 = vmatmul.msk.bf16.gmra.mxu2 %vm647_vm4, %v1211_v19  ;;  %v1016_v19 = vld [vmem:[%s5208_s15 + $0x54] sm:$0xe]  ;;  %v1923_v25 = vsel %vm5220_vm3, %v1918_v60, %v1922_v20 }
  0xc7   : > { %v5555_v38 = vpop.f32.mrf.mxu0  ;;  %v4392_v21 = vrot.slane %v1016_v19, 9  ;;  %v1908_v59 = vrot.slane %v1907_v46, 4  ;;  %v1938_v19 = vshrl.u32 %v4556_v62, 16  ;;  %v4557_v46 = vld [vmem:[%s5208_s15 + $0x74] sm:$0x1] }
  0xc8   : > { %v5559_v39 = vpop.f32.mrf.mxu3 }
  0xc9   : > { %v1112_v50 = vsel %vm5394_vm7, %v4392_v21, %v1111_v15  ;;  %v1913_v8 = vsel %vm5220_vm3, %v1908_v59, %v1912_v31  ;;  %v1928_v15 = vshll.u32 %v4555_v61, 16  ;;  %v4393_v21 = vrot.slane %v1017_v13, 9  ;;  %v4558_v13 = vld [vmem:[%s5208_s15 + $0x78] sm:$0xf] }
  0xca   : > { %v5562_v53 = vpop.f32.mrf.mxu1  ;;  %v1188_v56 = vunpack.c.l.b16 %v1112_v50  ;;  %v2132_v31 = vunpack.c.l.b16 %v1913_v8 }
  0xcb   : > { %4520 = vmatmul.msk.bf16.gmra.mxu3 %vm647_vm4, %v4897_v1  ;;  %v5566_v55 = vpop.f32.mrf.mxu2  ;;  %v2130_v1 = vunpack.c.l.b16 %v1889_v23  ;;  %v4986_v23 = vld [vmem:[%s5208_s15 + $0x68] sm:$0x1]  ;;  %v1930_v42 = vrot.slane %v1928_v15, 5  ;;  %v4987_v15 = vld [vmem:[%s5208_s15 + $0x70] sm:$0xf] }
  0xcc   : > { %v1121_v24 = vrot.slane %v4986_v23, 5  ;;  %v1018_v23 = vld [vmem:[%s5208_s15 + $0x6c] sm:$0xe] }
  0xcd   : > { %v2156_v52 = vpack.c.b16 %v2131_v47, %v2130_v1  ;;  %v1936_v1 = vrot.slane %v1934_v16, 5  ;;  %v1940_v47 = vrot.slane %v1938_v19, 4  ;;  %v1931_v51 = vor.u32 %v1930_v42, %v1927_v35  ;;  %v4988_v42 = vld [vmem:[%s5208_s15 + $0x74] sm:$0x1] }
  0xce   : > { %v1125_v16 = vrot.slane %v4987_v15, 5 }
  0xcf   : > { %v5573_v3 = vpop.f32.mrf.mxu0 }
  0xd0   : > { %4585 = vmatmul.msk.bf16.gmra.mxu0 %vm647_vm4, %v2155_v57  ;;  %v5578_v6 = vpop.f32.mrf.mxu3  ;;  %v1189_v57 = vunpack.c.l.b16 %v1115_v48 }
  0xd1   : > { %4375 = vmatmul.msk.bf16.gmra.mxu1 %vm647_vm4, %v4882_v43 }
  0xd2   : > { %v5582_v17 = vpop.f32.mrf.mxu1  ;;  %v1213_v4 = vpack.c.b16 %v1189_v57, %v1188_v56  ;;  %v4884_v57 = vld [vmem:[%s5208_s15 + $0x60] sm:$0xff] }
  0xd6   : > { %v5589_v26 = vpop.f32.mrf.mxu2  ;;  %4408 = vmatmul.msk.bf16.gmra.mxu2 %vm647_vm4, %v1212_v11  ;;  %v1118_v11 = vrot.slane %v4985_v10, 5 }
  0xd8   : > { %v1120_v32 = vrot.slane %v1118_v11, 4  ;;  %v1119_v50 = vsel %vm5394_vm7, %v4393_v21, %v1118_v11  ;;  %v1962_v21 = vshrl.u32 %v4559_v14, 16 }
  0xd9   : > { %v5595_v44 = vpop.f32.mrf.mxu0  ;;  %v1190_v20 = vunpack.c.l.b16 %v1119_v50  ;;  %v4394_v50 = vrot.slane %v1018_v23, 9 }
  0xda   : > { %v5597_v45 = vpop.f32.mrf.mxu3  ;;  %v1122_v48 = vsel %vm5394_vm7, %v1120_v32, %v1121_v24 }
  0xdb   : > { %4521 = vmatmul.msk.bf16.gmra.mxu3 %vm647_vm4, %v4898_v33  ;;  %v2133_v33 = vunpack.c.l.b16 %v1923_v25  ;;  %v1191_v61 = vunpack.c.l.b16 %v1122_v48  ;;  %v1127_v48 = vrot.slane %v1125_v16, 4 }
  0xdd   : > { %v2157_v27 = vpack.c.b16 %v2133_v33, %v2132_v31  ;;  %v1214_v11 = vpack.c.b16 %v1191_v61, %v1190_v20  ;;  %v1952_v31 = vshll.u32 %v4558_v13, 16  ;;  %v1958_v33 = vshll.u32 %v4559_v14, 16 }
  0xde   : > { %v5605_v2 = vpop.f32.mrf.mxu1  ;;  %v5607_v43 = vpop.f32.mrf.mxu2  ;;  %v1964_v20 = vrot.slane %v1962_v21, 4 }
  0xe0   : > { %4586 = vmatmul.msk.bf16.gmra.mxu0 %vm647_vm4, %v2156_v52  ;;  %v1941_v52 = vor.u32 %v1940_v47, %v1936_v1  ;;  %v1128_v47 = vrot.slane %v4988_v42, 5 }
  0xe1   : > { %4376 = vmatmul.msk.bf16.gmra.mxu1 %vm647_vm4, %v4883_v54  ;;  %v5613_v5 = vpop.f32.mrf.mxu0  ;;  %v1944_v54 = vshll.u32 %v4557_v46, 16  ;;  %v4900_v46 = vld [vmem:[%s5208_s15 + $0x6c] sm:$0xff] }
  0xe2   : > { %v5620_v12 = vpop.f32.mrf.mxu3  ;;  %v1942_v8 = vrot.slane %v1941_v52, 4 }
  0xe3   : > { %v1946_v25 = vrot.slane %v1944_v54, 5 }
  0xe6   : > { %4409 = vmatmul.msk.bf16.gmra.mxu2 %vm647_vm4, %v1213_v4  ;;  %v5625_v29 = vpop.f32.mrf.mxu1  ;;  %v1932_v4 = vrot.slane %v1931_v51, 4 }
  0xe8   : > { %v1937_v19 = vsel %vm5220_vm3, %v1932_v4, %v1936_v1  ;;  %v4560_v4 = vld [vmem:[%s5208_s15 + $0x80] sm:$0x1] }
  0xe9   : > { %v5628_v40 = vpop.f32.mrf.mxu2 }
  0xeb   : > { %4522 = vmatmul.msk.bf16.gmra.mxu3 %vm647_vm4, %v4899_v30  ;;  %v1949_v30 = vshrl.u32 %v4558_v13, 16  ;;  %v4885_v13 = vld [vmem:[%s5208_s15 + $0x6c] sm:$0xff] }
  0xed   : > { %v5636_v56 = vpop.f32.mrf.mxu0  ;;  %v1951_v54 = vrot.slane %v1949_v30, 4 }
  0xee   : > { %v5639_v59 = vpop.f32.mrf.mxu3  ;;  %v929_v60 = vpop.f32.mrf.mxu1 }
  0xef   : > { %v930_v62 = vadd.f32 %v929_v60, %v5513_v41  ;;  %v1947_v41 = vsel %vm5220_vm3, %v1942_v8, %v1946_v25  ;;  %v1960_v60 = vrot.slane %v1958_v33, 5  ;;  %v1126_v8 = vsel %vm5394_vm7, %v4394_v50, %v1125_v16 }
  0xf0   : > { %4587 = vmatmul.msk.bf16.gmra.mxu0 %vm647_vm4, %v2157_v27  ;;  %v2134_v27 = vunpack.c.l.b16 %v1937_v19  ;;  %v2135_v51 = vunpack.c.l.b16 %v1947_v41  ;;  %v1968_v19 = vshll.u32 %v4560_v4, 16 }
  0xf1   : > { %v5643_v10 = vpop.f32.mrf.mxu2  ;;  %4377 = vmatmul.msk.bf16.gmra.mxu1 %vm647_vm4, %v4884_v57  ;;  %v1954_v57 = vrot.slane %v1952_v31, 5  ;;  %v1965_v15 = vor.u32 %v1964_v20, %v1960_v60 }
  0xf2   : > { %v2158_v25 = vpack.c.b16 %v2135_v51, %v2134_v27  ;;  %v1970_v42 = vrot.slane %v1968_v19, 5  ;;  %v4562_v27 = vld [vmem:[%s5208_s15 + $0x88] sm:$0xf]  ;;  %v4989_v51 = vld [vmem:[%s5208_s15 + $0x7c] sm:$0xf] }
  0xf3   : > { %v1955_v14 = vor.u32 %v1954_v57, %v1951_v54  ;;  %v1019_v54 = vld [vmem:[%s5208_s15 + $0x78] sm:$0xe] }
  0xf5   : > { %v5654_v24 = vpop.f32.mrf.mxu0  ;;  %v1956_v21 = vrot.slane %v1955_v14, 4 }
  0xf6   : > { %v5656_v32 = vpop.f32.mrf.mxu3  ;;  %4410 = vmatmul.msk.bf16.gmra.mxu2 %vm647_vm4, %v1214_v11  ;;  %v931_v35 = vpop.f32.mrf.mxu1 }
  0xf7   : > { %v932_v1 = vadd.f32 %v931_v35, %v5536_v9  ;;  %v1129_v9 = vsel %vm5394_vm7, %v1127_v48, %v1128_v47  ;;  %v1966_v35 = vrot.slane %v1965_v15, 4  ;;  %v4561_v47 = vld [vmem:[%s5208_s15 + $0x84] sm:$0xf]  ;;  %v4901_v15 = vld [vmem:[%s5208_s15 + $0x78] sm:$0xff] }
  0xf8   : > { %v1193_v30 = vunpack.c.l.b16 %v1129_v9  ;;  %v1976_v57 = vshll.u32 %v4561_v47, 16  ;;  %v1986_v9 = vshrl.u32 %v4562_v27, 16 }
  0xf9   : > { %v1282_v52 = vpop.f32.mrf.mxu2  ;;  %v1971_v4 = vsel %vm5220_vm3, %v1966_v35, %v1970_v42 }
  0xfa   : > { %v1362_v61 = vadd.f32 %v1282_v52, %v930_v62  ;;  %v1192_v62 = vunpack.c.l.b16 %v1126_v8  ;;  %v1132_v52 = vrot.slane %v4989_v51, 5  ;;  %v1982_v8 = vshll.u32 %v4562_v27, 16 }
  0xfb   : > { %4523 = vmatmul.msk.bf16.gmra.mxu3 %vm647_vm4, %v4900_v46  ;;  %v1988_v35 = vrot.slane %v1986_v9, 4 }
  0xfc   : > { %v1215_v48 = vpack.c.b16 %v1193_v30, %v1192_v62 }
  0xfd   : > { %v2226_v11 = vpop.f32.mrf.mxu0 }
  0xfe   : > { %v1572_v41 = vpop.f32.mrf.mxu3  ;;  %v934_v23 = vpop.f32.mrf.mxu1 }
  0xff   : > { %v1652_v31 = vadd.f32 %v1572_v41, %v1362_v61  ;;  %v935_v16 = vadd.f32 %v934_v23, %v5555_v38  ;;  %v1973_v38 = vshrl.u32 %v4561_v47, 16  ;;  %v1961_v61 = vsel %vm5220_vm3, %v1956_v21, %v1960_v60 }
 0x100   : > { %4588 = vmatmul.msk.bf16.gmra.mxu0 %vm647_vm4, %v2158_v25  ;;  %v4990_v25 = vld [vmem:[%s5208_s15 + $0x80] sm:$0x1]  ;;  %v4395_v41 = vrot.slane %v1019_v54, 9  ;;  %v1134_v23 = vrot.slane %v1132_v52, 4  ;;  %v2136_v62 = vunpack.c.l.b16 %v1961_v61  ;;  %v2137_v60 = vunpack.c.l.b16 %v1971_v4 }
 0x101   : > { %v1284_v33 = vpop.f32.mrf.mxu2  ;;  %4378 = vmatmul.msk.bf16.gmra.mxu1 %vm647_vm4, %v4885_v13  ;;  %v5673_v46 = vadd.f32 %v2226_v11, %v1652_v31  ;;  %v1135_v11 = vrot.slane %v4990_v25, 5  ;;  %v1975_v30 = vrot.slane %v1973_v38, 4  ;;  %v1978_v31 = vrot.slane %v1976_v57, 5  ;;  %v4886_v38 = vld [vmem:[%s5208_s15 + $0x78] sm:$0xff] }
 0x102   : > { %v1363_v50 = vadd.f32 %v1284_v33, %v932_v1  ;;  %v1984_v21 = vrot.slane %v1982_v8, 5  ;;  %v2159_v27 = vpack.c.b16 %v2137_v60, %v2136_v62  ;;  %v4565_v62 = vld [vmem:[%s5208_s15 + $0x94] sm:$0xf]  ;;  %v4991_v60 = vld [vmem:[%s5208_s15 + $0x88] sm:$0xf] }
 0x103   : > { %v1979_v51 = vor.u32 %v1978_v31, %v1975_v30  ;;  %v1139_v30 = vrot.slane %v4991_v60, 5  ;;  %v1020_v31 = vld [vmem:[%s5208_s15 + $0x84] sm:$0xe] }
 0x104   : > { %v1989_v57 = vor.u32 %v1988_v35, %v1984_v21 }
 0x105   : > { %v2228_v20 = vpop.f32.mrf.mxu0  ;;  %v1980_v25 = vrot.slane %v1979_v51, 4 }
 0x106   : > { %v1574_v1 = vpop.f32.mrf.mxu3  ;;  %4411 = vmatmul.msk.bf16.gmra.mxu2 %vm647_vm4, %v1215_v48  ;;  %v936_v13 = vpop.f32.mrf.mxu1  ;;  %v4563_v48 = vld [vmem:[%s5208_s15 + $0x8c] sm:$0x1] }
 0x107   : > { %v1653_v14 = vadd.f32 %v1574_v1, %v1363_v50  ;;  %v937_v19 = vadd.f32 %v936_v13, %v5573_v3  ;;  %v1133_v50 = vsel %vm5394_vm7, %v4395_v41, %v1132_v52  ;;  %v1136_v3 = vsel %vm5394_vm7, %v1134_v23, %v1135_v11 }
 0x108   : > { %v1992_v61 = vshll.u32 %v4563_v48, 16  ;;  %v1195_v8 = vunpack.c.l.b16 %v1136_v3  ;;  %v1990_v1 = vrot.slane %v1989_v57, 4  ;;  %v2010_v3 = vshrl.u32 %v4565_v62, 16  ;;  %v4902_v57 = vld [vmem:[%s5208_s15 + $0x84] sm:$0xff] }
 0x109   : > { %v1287_v33 = vpop.f32.mrf.mxu2  ;;  %v5686_v42 = vadd.f32 %v2228_v20, %v1653_v14  ;;  %v4564_v14 = vld [vmem:[%s5208_s15 + $0x90] sm:$0xf] }
 0x10a   : > { %v1364_v47 = vadd.f32 %v1287_v33, %v935_v16  ;;  %v1194_v16 = vunpack.c.l.b16 %v1133_v50  ;;  %v1994_v13 = vrot.slane %v1992_v61, 5  ;;  %v1997_v33 = vshrl.u32 %v4564_v14, 16 }
 0x10b   : > { %4524 = vmatmul.msk.bf16.gmra.mxu3 %vm647_vm4, %v4901_v15  ;;  %v2000_v48 = vshll.u32 %v4564_v14, 16  ;;  %v2006_v50 = vshll.u32 %v4565_v62, 16  ;;  %v4396_v61 = vrot.slane %v1020_v31, 9 }
 0x10c   : > { %v1216_v23 = vpack.c.b16 %v1195_v8, %v1194_v16  ;;  %v1999_v8 = vrot.slane %v1997_v33, 4 }
 0x10d   : > { %v2231_v54 = vpop.f32.mrf.mxu0 }
 0x10e   : > { %v1577_v4 = vpop.f32.mrf.mxu3  ;;  %v939_v20 = vpop.f32.mrf.mxu1 }
 0x10f   : > { %v1654_v9 = vadd.f32 %v1577_v4, %v1364_v47  ;;  %v940_v52 = vadd.f32 %v939_v20, %v5595_v44  ;;  %v1985_v44 = vsel %vm5220_vm3, %v1980_v25, %v1984_v21  ;;  %v1995_v47 = vsel %vm5220_vm3, %v1990_v1, %v1994_v13 }
 0x110   : > { %4589 = vmatmul.msk.bf16.gmra.mxu0 %vm647_vm4, %v2159_v27  ;;  %v4992_v27 = vld [vmem:[%s5208_s15 + $0x8c] sm:$0x1]  ;;  %v1141_v4 = vrot.slane %v1139_v30, 4  ;;  %v2138_v20 = vunpack.c.l.b16 %v1985_v44  ;;  %v2139_v16 = vunpack.c.l.b16 %v1995_v47  ;;  %v2002_v25 = vrot.slane %v2000_v48, 5  ;;  %v4887_v44 = vld [vmem:[%s5208_s15 + $0x84] sm:$0xff] }
 0x111   : > { %v1289_v11 = vpop.f32.mrf.mxu2  ;;  %4379 = vmatmul.msk.bf16.gmra.mxu1 %vm647_vm4, %v4886_v38  ;;  %v5699_v15 = vadd.f32 %v2231_v54, %v1654_v9  ;;  %v1142_v51 = vrot.slane %v4992_v27, 5  ;;  %v2012_v1 = vrot.slane %v2010_v3, 4 }
 0x112   : > { %v1365_v41 = vadd.f32 %v1289_v11, %v937_v19  ;;  %v2008_v11 = vrot.slane %v2006_v50, 5  ;;  %v2160_v62 = vpack.c.b16 %v2139_v16, %v2138_v20  ;;  %v2003_v31 = vor.u32 %v2002_v25, %v1999_v8  ;;  %v4568_v20 = vld [vmem:[%s5208_s15 + $0xa0] sm:$0xf]  ;;  %v4993_v16 = vld [vmem:[%s5208_s15 + $0x94] sm:$0xf] }
 0x113   : > { %v1146_v8 = vrot.slane %v4993_v16, 5 }
 0x114   : > { %v2013_v33 = vor.u32 %v2012_v1, %v2008_v11 }
 0x115   : > { %v2233_v35 = vpop.f32.mrf.mxu0 }
 0x116   : > { %v1579_v19 = vpop.f32.mrf.mxu3  ;;  %4412 = vmatmul.msk.bf16.gmra.mxu2 %vm647_vm4, %v1216_v23  ;;  %v941_v54 = vpop.f32.mrf.mxu1  ;;  %v4566_v23 = vld [vmem:[%s5208_s15 + $0x98] sm:$0x1] }
 0x117   : > { %v1655_v38 = vadd.f32 %v1579_v19, %v1365_v41  ;;  %v942_v21 = vadd.f32 %v941_v54, %v5613_v5  ;;  %v1140_v41 = vsel %vm5394_vm7, %v4396_v61, %v1139_v30  ;;  %v1143_v5 = vsel %vm5394_vm7, %v1141_v4, %v1142_v51 }
 0x118   : > { %v2016_v47 = vshll.u32 %v4566_v23, 16  ;;  %v1197_v50 = vunpack.c.l.b16 %v1143_v5  ;;  %v2004_v51 = vrot.slane %v2003_v31, 4  ;;  %v2014_v19 = vrot.slane %v2013_v33, 4  ;;  %v4903_v33 = vld [vmem:[%s5208_s15 + $0x90] sm:$0xff] }
 0x119   : > { %v1292_v9 = vpop.f32.mrf.mxu2  ;;  %v5712_v13 = vadd.f32 %v2233_v35, %v1655_v38  ;;  %v4567_v38 = vld [vmem:[%s5208_s15 + $0x9c] sm:$0xf]  ;;  %v2034_v5 = vshrl.u32 %v4568_v20, 16 }
 0x11a   : > { %v1366_v14 = vadd.f32 %v1292_v9, %v940_v52  ;;  %v1196_v52 = vunpack.c.l.b16 %v1140_v41  ;;  %v2018_v54 = vrot.slane %v2016_v47, 5  ;;  %v1021_v9 = vld [vmem:[%s5208_s15 + $0x90] sm:$0xe]  ;;  %v2024_v25 = vshll.u32 %v4567_v38, 16 }
 0x11b   : > { %4525 = vmatmul.msk.bf16.gmra.mxu3 %vm647_vm4, %v4902_v57  ;;  %v2030_v41 = vshll.u32 %v4568_v20, 16 }
 0x11c   : > { %v1217_v4 = vpack.c.b16 %v1197_v50, %v1196_v52  ;;  %v2019_v23 = vsel %vm5220_vm3, %v2014_v19, %v2018_v54  ;;  %v2036_v19 = vrot.slane %v2034_v5, 4 }
 0x11d   : > { %v2236_v60 = vpop.f32.mrf.mxu0 }
 0x11e   : > { %v1582_v48 = vpop.f32.mrf.mxu3  ;;  %v944_v35 = vpop.f32.mrf.mxu1 }
 0x11f   : > { %v1656_v3 = vadd.f32 %v1582_v48, %v1366_v14  ;;  %v945_v30 = vadd.f32 %v944_v35, %v5636_v56  ;;  %v2021_v56 = vshrl.u32 %v4567_v38, 16  ;;  %v2009_v14 = vsel %vm5220_vm3, %v2004_v51, %v2008_v11 }
 0x120   : > { %4590 = vmatmul.msk.bf16.gmra.mxu0 %vm647_vm4, %v2160_v62  ;;  %v4994_v62 = vld [vmem:[%s5208_s15 + $0x98] sm:$0x1]  ;;  %v4397_v48 = vrot.slane %v1021_v9, 9  ;;  %v1148_v35 = vrot.slane %v1146_v8, 4  ;;  %v2140_v52 = vunpack.c.l.b16 %v2009_v14  ;;  %v2141_v11 = vunpack.c.l.b16 %v2019_v23 }
 0x121   : > { %v1294_v27 = vpop.f32.mrf.mxu2  ;;  %4380 = vmatmul.msk.bf16.gmra.mxu1 %vm647_vm4, %v4887_v44  ;;  %v5725_v57 = vadd.f32 %v2236_v60, %v1656_v3  ;;  %v1149_v60 = vrot.slane %v4994_v62, 5  ;;  %v2023_v50 = vrot.slane %v2021_v56, 4  ;;  %v2026_v3 = vrot.slane %v2024_v25, 5  ;;  %v4888_v56 = vld [vmem:[%s5208_s15 + $0x90] sm:$0xff] }
 0x122   : > { %v1367_v61 = vadd.f32 %v1294_v27, %v942_v21  ;;  %v2032_v51 = vrot.slane %v2030_v41, 5  ;;  %v2161_v20 = vpack.c.b16 %v2141_v11, %v2140_v52  ;;  %v4571_v11 = vld [vmem:[%s5208_s15 + $0xac] sm:$0xf] }
 0x123   : > { %v2027_v16 = vor.u32 %v2026_v3, %v2023_v50  ;;  %v1022_v50 = vld [vmem:[%s5208_s15 + $0x9c] sm:$0xe] }
 0x124   : > { %v2037_v25 = vor.u32 %v2036_v19, %v2032_v51 }
 0x125   : > { %v2238_v1 = vpop.f32.mrf.mxu0 }
 0x126   : > { %v1584_v21 = vpop.f32.mrf.mxu3  ;;  %4413 = vmatmul.msk.bf16.gmra.mxu2 %vm647_vm4, %v1217_v4  ;;  %v946_v44 = vpop.f32.mrf.mxu1  ;;  %v4569_v4 = vld [vmem:[%s5208_s15 + $0xa4] sm:$0x1] }
 0x127   : > { %v1657_v31 = vadd.f32 %v1584_v21, %v1367_v61  ;;  %v947_v47 = vadd.f32 %v946_v44, %v5654_v24  ;;  %v1147_v61 = vsel %vm5394_vm7, %v4397_v48, %v1146_v8  ;;  %v1150_v24 = vsel %vm5394_vm7, %v1148_v35, %v1149_v60  ;;  %v4570_v44 = vld [vmem:[%s5208_s15 + $0xa8] sm:$0xf]  ;;  %v4995_v35 = vld [vmem:[%s5208_s15 + $0xa0] sm:$0xf] }
 0x128   : > { %v2040_v14 = vshll.u32 %v4569_v4, 16  ;;  %v1199_v41 = vunpack.c.l.b16 %v1150_v24  ;;  %v2028_v8 = vrot.slane %v2027_v16, 4  ;;  %v2038_v60 = vrot.slane %v2037_v25, 4 }
 0x129   : > { %v1297_v27 = vpop.f32.mrf.mxu2  ;;  %v5738_v54 = vadd.f32 %v2238_v1, %v1657_v31  ;;  %v1153_v52 = vrot.slane %v4995_v35, 5  ;;  %v2048_v19 = vshll.u32 %v4570_v44, 16  ;;  %v2058_v24 = vshrl.u32 %v4571_v11, 16 }
 0x12a   : > { %v1368_v38 = vadd.f32 %v1297_v27, %v945_v30  ;;  %v1198_v30 = vunpack.c.l.b16 %v1147_v61  ;;  %v2042_v21 = vrot.slane %v2040_v14, 5  ;;  %v2033_v3 = vsel %vm5220_vm3, %v2028_v8, %v2032_v51 }
 0x12b   : > { %4526 = vmatmul.msk.bf16.gmra.mxu3 %vm647_vm4, %v4903_v33  ;;  %v2045_v27 = vshrl.u32 %v4570_v44, 16  ;;  %v2054_v61 = vshll.u32 %v4571_v11, 16  ;;  %v1155_v25 = vrot.slane %v1153_v52, 4  ;;  %v2142_v51 = vunpack.c.l.b16 %v2033_v3  ;;  %v4572_v11 = vld [vmem:[%s5208_s15 + $0xb0] sm:$0x1]  ;;  %v4889_v3 = vld [vmem:[%s5208_s15 + $0x9c] sm:$0xff] }
 0x12c   : > { %v1218_v48 = vpack.c.b16 %v1199_v41, %v1198_v30  ;;  %v2043_v4 = vsel %vm5220_vm3, %v2038_v60, %v2042_v21  ;;  %v2050_v8 = vrot.slane %v2048_v19, 5  ;;  %v2060_v21 = vrot.slane %v2058_v24, 4 }
 0x12d   : > { %v2241_v9 = vpop.f32.mrf.mxu0  ;;  %v2143_v41 = vunpack.c.l.b16 %v2043_v4  ;;  %v2056_v60 = vrot.slane %v2054_v61, 5  ;;  %v2064_v4 = vshll.u32 %v4572_v11, 16 }
 0x12e   : > { %v1587_v1 = vpop.f32.mrf.mxu3  ;;  %v949_v23 = vpop.f32.mrf.mxu1 }
 0x12f   : > { %v1658_v5 = vadd.f32 %v1587_v1, %v1368_v38  ;;  %v4904_v1 = vld [vmem:[%s5208_s15 + $0x9c] sm:$0xff]  ;;  %v950_v30 = vadd.f32 %v949_v23, %v5489_v7  ;;  %v2162_v7 = vpack.c.b16 %v2143_v41, %v2142_v51  ;;  %v2066_v51 = vrot.slane %v2064_v4, 5 }
 0x130   : > { %4591 = vmatmul.msk.bf16.gmra.mxu0 %vm647_vm4, %v2161_v20  ;;  %v4996_v20 = vld [vmem:[%s5208_s15 + $0xa4] sm:$0x1] }
 0x131   : > { %v1299_v62 = vpop.f32.mrf.mxu2  ;;  %4381 = vmatmul.msk.bf16.gmra.mxu1 %vm647_vm4, %v4888_v56  ;;  %v5750_v31 = vadd.f32 %v2241_v9, %v1658_v5  ;;  %v1156_v16 = vrot.slane %v4996_v20, 5  ;;  %v4398_v56 = vrot.slane %v1022_v50, 9  ;;  %v2047_v5 = vrot.slane %v2045_v27, 4 }
 0x132   : > { %v1369_v33 = vadd.f32 %v1299_v62, %v947_v47 }
 0x133   : > { %v2051_v23 = vor.u32 %v2050_v8, %v2047_v5 }
 0x135   : > { %v2243_v38 = vpop.f32.mrf.mxu0 }
 0x136   : > { %v1589_v47 = vpop.f32.mrf.mxu3  ;;  %4414 = vmatmul.msk.bf16.gmra.mxu2 %vm647_vm4, %v1218_v48  ;;  %v951_v9 = vpop.f32.mrf.mxu1  ;;  %v1154_v48 = vsel %vm5394_vm7, %v4398_v56, %v1153_v52  ;;  %v4573_v52 = vld [vmem:[%s5208_s15 + $0xb4] sm:$0xf]  ;;  %v2052_v56 = vrot.slane %v2051_v23, 4 }
 0x137   : > { %v1659_v14 = vadd.f32 %v1589_v47, %v1369_v33  ;;  %v1157_v33 = vsel %vm5394_vm7, %v1155_v25, %v1156_v16  ;;  %v1200_v27 = vunpack.c.l.b16 %v1154_v48  ;;  %v4574_v47 = vld [vmem:[%s5208_s15 + $0xb8] sm:$0xf]  ;;  %v952_v16 = vadd.f32 %v951_v9, %v5505_v34 }
 0x138   : > { %v1201_v19 = vunpack.c.l.b16 %v1157_v33  ;;  %v2069_v5 = vshrl.u32 %v4573_v52, 16  ;;  %v2072_v8 = vshll.u32 %v4573_v52, 16  ;;  %v2082_v48 = vshrl.u32 %v4574_v47, 16  ;;  %v1023_v33 = vld [vmem:[%s5208_s15 + $0xa8] sm:$0xe] }
 0x139   : > { %v1302_v62 = vpop.f32.mrf.mxu2  ;;  %v5763_v44 = vadd.f32 %v2243_v38, %v1659_v14  ;;  %v2061_v38 = vor.u32 %v2060_v21, %v2056_v60  ;;  %v4997_v21 = vld [vmem:[%s5208_s15 + $0xac] sm:$0xf]  ;;  %v2057_v9 = vsel %vm5220_vm3, %v2052_v56, %v2056_v60 }
 0x13a   : > { %v1370_v35 = vadd.f32 %v1302_v62, %v950_v30  ;;  %v1219_v14 = vpack.c.b16 %v1201_v19, %v1200_v27  ;;  %v2078_v62 = vshll.u32 %v4574_v47, 16  ;;  %v2071_v27 = vrot.slane %v2069_v5, 4 }
 0x13b   : > { %4527 = vmatmul.msk.bf16.gmra.mxu3 %vm647_vm4, %v4904_v1  ;;  %v2062_v1 = vrot.slane %v2061_v38, 4  ;;  %v2074_v19 = vrot.slane %v2072_v8, 5  ;;  %v2084_v47 = vrot.slane %v2082_v48, 4  ;;  %v4890_v48 = vld [vmem:[%s5208_s15 + $0xa8] sm:$0xff] }
 0x13c   : > { %v2080_v38 = vrot.slane %v2078_v62, 5 }
 0x13d   : > { %v2246_v50 = vpop.f32.mrf.mxu0  ;;  %v2067_v11 = vsel %vm5220_vm3, %v2062_v1, %v2066_v51 }
 0x13e   : > { %v1592_v61 = vpop.f32.mrf.mxu3  ;;  %v954_v24 = vpop.f32.mrf.mxu1  ;;  %v2145_v56 = vunpack.c.l.b16 %v2067_v11  ;;  %v2085_v8 = vor.u32 %v2084_v47, %v2080_v38 }
 0x13f   : > { %v1660_v20 = vadd.f32 %v1592_v61, %v1370_v35  ;;  %v1160_v35 = vrot.slane %v4997_v21, 5  ;;  %v4905_v61 = vld [vmem:[%s5208_s15 + $0xa8] sm:$0xff]  ;;  %v955_v60 = vadd.f32 %v954_v24, %v5525_v58 }
 0x140   : > { %4592 = vmatmul.msk.bf16.gmra.mxu0 %vm647_vm4, %v2162_v7  ;;  %v4998_v7 = vld [vmem:[%s5208_s15 + $0xb0] sm:$0x1] }
 0x141   : > { %v1304_v25 = vpop.f32.mrf.mxu2  ;;  %4382 = vmatmul.msk.bf16.gmra.mxu1 %vm647_vm4, %v4889_v3  ;;  %v5777_v30 = vadd.f32 %v2246_v50, %v1660_v20  ;;  %v1163_v23 = vrot.slane %v4998_v7, 5  ;;  %v4399_v20 = vrot.slane %v1023_v33, 9  ;;  %v1162_v52 = vrot.slane %v1160_v35, 4 }
 0x142   : > { %v1371_v41 = vadd.f32 %v1304_v25, %v952_v16  ;;  %v2144_v16 = vunpack.c.l.b16 %v2057_v9  ;;  %v4575_v25 = vld [vmem:[%s5208_s15 + $0xbc] sm:$0x1] }
 0x143   : > { %v1164_v5 = vsel %vm5394_vm7, %v1162_v52, %v1163_v23  ;;  %v2088_v58 = vshll.u32 %v4575_v25, 16  ;;  %v4577_v52 = vld [vmem:[%s5208_s15 + $0xc4] sm:$0xf] }
 0x144   : > { %v2163_v24 = vpack.c.b16 %v2145_v56, %v2144_v16  ;;  %v1203_v11 = vunpack.c.l.b16 %v1164_v5  ;;  %v1024_v16 = vld [vmem:[%s5208_s15 + $0xb4] sm:$0xe]  ;;  %v5000_v56 = vld [vmem:[%s5208_s15 + $0xb8] sm:$0xf]  ;;  %v2106_v5 = vshrl.u32 %v4577_v52, 16 }
 0x145   : > { %v2248_v34 = vpop.f32.mrf.mxu0  ;;  %v1167_v25 = vrot.slane %v5000_v56, 5 }
 0x146   : > { %v1594_v50 = vpop.f32.mrf.mxu3  ;;  %4415 = vmatmul.msk.bf16.gmra.mxu2 %vm647_vm4, %v1219_v14  ;;  %v956_v3 = vpop.f32.mrf.mxu1  ;;  %v2075_v14 = vor.u32 %v2074_v19, %v2071_v27  ;;  %v2090_v27 = vrot.slane %v2088_v58, 5  ;;  %v4576_v19 = vld [vmem:[%s5208_s15 + $0xc0] sm:$0xf]  ;;  %v5001_v58 = vld [vmem:[%s5208_s15 + $0x14] sm:$0x1] }
 0x147   : > { %v1661_v4 = vadd.f32 %v1594_v50, %v1371_v41  ;;  %v1161_v41 = vsel %vm5394_vm7, %v4399_v20, %v1160_v35  ;;  %v2086_v35 = vrot.slane %v2085_v8, 4  ;;  %v957_v23 = vadd.f32 %v956_v3, %v5542_v28 }
 0x148   : > { %v1202_v9 = vunpack.c.l.b16 %v1161_v41  ;;  %v2076_v50 = vrot.slane %v2075_v14, 4  ;;  %v2093_v3 = vshrl.u32 %v4576_v19, 16  ;;  %v2096_v14 = vshll.u32 %v4576_v19, 16  ;;  %v4906_v19 = vld [vmem:[%s5208_s15 + $0xb4] sm:$0xff] }
 0x149   : > { %v1307_v1 = vpop.f32.mrf.mxu2  ;;  %v5790_v51 = vadd.f32 %v2248_v34, %v1661_v4  ;;  %v4999_v4 = vld [vmem:[%s5208_s15 + $0x10] sm:$0xf]  ;;  %v2091_v28 = vsel %vm5220_vm3, %v2086_v35, %v2090_v27  ;;  %v2102_v41 = vshll.u32 %v4577_v52, 16  ;;  %v1169_v35 = vrot.slane %v1167_v25, 4  ;;  %v4596_v27 = vld [vmem:[%s5208_s15 + $0xc] sm:$0xe] }
 0x14a   : > { %v1372_v21 = vadd.f32 %v1307_v1, %v955_v60  ;;  %v1220_v60 = vpack.c.b16 %v1203_v11, %v1202_v9  ;;  %v5002_v9 = vld [vmem:[%s5208_s15 + $0xbc] sm:$0x1]  ;;  %v4612_v52 = vrot.slane %v4596_v27, 9 }
 0x14b   : > { %4528 = vmatmul.msk.bf16.gmra.mxu3 %vm647_vm4, %v4905_v61  ;;  %v2404_v61 = vrot.slane %v4999_v4, 5  ;;  %v2095_v4 = vrot.slane %v2093_v3, 4 }
 0x14d   : > { %v2251_v62 = vpop.f32.mrf.mxu0  ;;  %v2406_v8 = vrot.slane %v2404_v61, 4 }
 0x14e   : > { %v1597_v33 = vpop.f32.mrf.mxu3  ;;  %v959_v34 = vpop.f32.mrf.mxu1 }
 0x14f   : > { %v1662_v7 = vadd.f32 %v1597_v33, %v1372_v21  ;;  %v2081_v21 = vsel %vm5220_vm3, %v2076_v50, %v2080_v38  ;;  %v4400_v33 = vrot.slane %v1024_v16, 9  ;;  %v960_v56 = vadd.f32 %v959_v34, %v5562_v53 }
 0x150   : > { %4593 = vmatmul.msk.bf16.gmra.mxu0 %vm647_vm4, %v2163_v24  ;;  %v2407_v24 = vrot.slane %v5001_v58, 5  ;;  %v2146_v38 = vunpack.c.l.b16 %v2081_v21  ;;  %v2104_v16 = vrot.slane %v2102_v41, 5  ;;  %v2108_v58 = vrot.slane %v2106_v5, 4  ;;  %v4578_v21 = vld [vmem:[%s5208_s15 + $0xc8] sm:$0x1] }
 0x151   : > { %v1309_v20 = vpop.f32.mrf.mxu2  ;;  %4383 = vmatmul.msk.bf16.gmra.mxu1 %vm647_vm4, %v4890_v48  ;;  %v5806_v1 = vadd.f32 %v2251_v62, %v1662_v7  ;;  %v1170_v62 = vrot.slane %v5002_v9, 5  ;;  %v2147_v7 = vunpack.c.l.b16 %v2091_v28  ;;  %v2405_v28 = vsel %vm5394_vm7, %v4612_v52, %v2404_v61  ;;  %v4758_v41 = vld [vmem:[%s5208_s15 + $0x18] sm:$0xf] }
 0x152   : > { %v1373_v47 = vadd.f32 %v1309_v20, %v957_v23  ;;  %v2098_v20 = vrot.slane %v2096_v14, 5  ;;  %v2516_v53 = vunpack.c.l.b16 %v2405_v28  ;;  %v2112_v27 = vshll.u32 %v4578_v21, 16 }
 0x153   : > { %v1171_v14 = vsel %vm5394_vm7, %v1169_v35, %v1170_v62  ;;  %v2164_v5 = vpack.c.b16 %v2147_v7, %v2146_v38  ;;  %v3075_v62 = vshrl.u32 %v4758_v41, 16  ;;  %v3078_v35 = vshll.u32 %v4758_v41, 16 }
 0x155   : > { %v2253_v48 = vpop.f32.mrf.mxu0  ;;  %v3077_v21 = vrot.slane %v3075_v62, 4 }
 0x156   : > { %v1599_v11 = vpop.f32.mrf.mxu3  ;;  %4416 = vmatmul.msk.bf16.gmra.mxu2 %vm647_vm4, %v1220_v60  ;;  %v961_v50 = vpop.f32.mrf.mxu1  ;;  %v1168_v60 = vsel %vm5394_vm7, %v4400_v33, %v1167_v25  ;;  %v5830_v25 = vld [vmem:[%s5208_s15 + $0x1c] sm:$0xf]  ;;  %v2109_v33 = vor.u32 %v2108_v58, %v2104_v16 }
 0x157   : > { %v1663_v23 = vadd.f32 %v1599_v11, %v1373_v47  ;;  %v2408_v47 = vsel %vm5394_vm7, %v2406_v8, %v2407_v24  ;;  %v2099_v11 = vor.u32 %v2098_v20, %v2095_v4  ;;  %v4891_v24 = vld [vmem:[%s5208_s15 + $0xb4] sm:$0xff]  ;;  %v3088_v38 = vshrl.u32 %v5830_v25, 16 }
 0x158   : > { %v2517_v34 = vunpack.c.l.b16 %v2408_v47  ;;  %v962_v4 = vadd.f32 %v961_v50, %v5582_v17 }
 0x159   : > { %v1312_v9 = vpop.f32.mrf.mxu2  ;;  %v5834_v52 = vadd.f32 %v2253_v48, %v1663_v23  ;;  %v2100_v48 = vrot.slane %v2099_v11, 4  ;;  %v2110_v23 = vrot.slane %v2109_v33, 4  ;;  %v3090_v41 = vrot.slane %v3088_v38, 4 }
 0x15a   : > { %v1374_v3 = vadd.f32 %v1312_v9, %v960_v56  ;;  %v5832_v61 = vpack.c.b16 %v2517_v34, %v2516_v53  ;;  %v1204_v56 = vunpack.c.l.b16 %v1168_v60  ;;  %v1205_v9 = vunpack.c.l.b16 %v1171_v14 }
 0x15b   : > { %4529 = vmatmul.msk.bf16.gmra.mxu3 %vm647_vm4, %v4906_v19  ;;  %6546 = vst [vmem:[#allocation5_spill] sm:$0xff] %v5834_v52  ;;  %v3084_v19 = vshll.u32 %v5830_v25, 16  ;;  %v2114_v60 = vrot.slane %v2112_v27, 5  ;;  %v3080_v14 = vrot.slane %v3078_v35, 5  ;;  %v2105_v17 = vsel %vm5220_vm3, %v2100_v48, %v2104_v16  ;;  %v4823_v48 = vld [vmem:[%s5208_s15 + $0x18] sm:$0xe] }
 0x15c   : > { %v1221_v58 = vpack.c.b16 %v1205_v9, %v1204_v56  ;;  %v4907_v9 = vld [vmem:[%s5208_s15 + $0xc0] sm:$0xff]  ;;  %v2148_v16 = vunpack.c.l.b16 %v2105_v17 }
 0x15d   : > { %v2256_v8 = vpop.f32.mrf.mxu0  ;;  %v3086_v34 = vrot.slane %v3084_v19, 5  ;;  %v2115_v50 = vsel %vm5220_vm3, %v2110_v23, %v2114_v60  ;;  %v3081_v27 = vor.u32 %v3080_v14, %v3077_v21  ;;  %v4761_v23 = vld [vmem:[%s5208_s15 + $0x24] sm:$0xf]  ;;  %v5860_v60 = vld [vmem:[%s5208_s15 + $0x28] sm:$0xf] }
 0x15e   : > { %v1602_v28 = vpop.f32.mrf.mxu3  ;;  %v964_v47 = vpop.f32.mrf.mxu1  ;;  %v2149_v35 = vunpack.c.l.b16 %v2115_v50 }
 0x15f   : > { %v1664_v7 = vadd.f32 %v1602_v28, %v1374_v3  ;;  %v5845_v3 = vld [vmem:[%s5208_s15 + $0x20] sm:$0x1]  ;;  %v965_v62 = vadd.f32 %v964_v47, %v5605_v2  ;;  %v3082_v38 = vrot.slane %v3081_v27, 4  ;;  %v5003_v47 = vld [vmem:[%s5208_s15 + $0x1c] sm:$0xf] }
 0x160   : > { %4594 = vmatmul.msk.bf16.gmra.mxu0 %vm647_vm4, %v2164_v5  ;;  %v2411_v14 = vrot.slane %v5003_v47, 5  ;;  %v4597_v27 = vld [vmem:[%s5208_s15 + $0x18] sm:$0xe] }
 0x161   : > { %v1314_v20 = vpop.f32.mrf.mxu2  ;;  %4384 = vmatmul.msk.bf16.gmra.mxu1 %vm647_vm4, %v4891_v24  ;;  %v5842_v52 = vadd.f32 %v2256_v8, %v1664_v7  ;;  %v3091_v24 = vor.u32 %v3090_v41, %v3086_v34  ;;  %v3094_v8 = vshll.u32 %v5845_v3, 16  ;;  %v3087_v17 = vsel %vm5220_vm3, %v3082_v38, %v3086_v34 }
 0x162   : > { %v1375_v53 = vadd.f32 %v1314_v20, %v962_v4  ;;  %v2165_v20 = vpack.c.b16 %v2149_v35, %v2148_v16  ;;  %v3749_v34 = vrot.slane %v5845_v3, 5  ;;  %v5004_v16 = vld [vmem:[%s5208_s15 + $0x20] sm:$0x1]  ;;  %v4613_v38 = vrot.slane %v4597_v27, 9 }
 0x163   : > { %v3092_v7 = vrot.slane %v3091_v24, 4  ;;  %v3096_v4 = vrot.slane %v3094_v8, 5  ;;  %v3099_v24 = vshrl.u32 %v4761_v23, 16  ;;  %v3102_v8 = vshll.u32 %v4761_v23, 16 }
 0x164   : > { %v2414_v35 = vrot.slane %v5004_v16, 5  ;;  %v2412_v27 = vsel %vm5394_vm7, %v4613_v38, %v2411_v14  ;;  %v4764_v38 = vld [vmem:[%s5208_s15 + $0x30] sm:$0xf] }
 0x165   : > { %v2258_v5 = vpop.f32.mrf.mxu0  ;;  %v3097_v50 = vsel %vm5220_vm3, %v3092_v7, %v3096_v4  ;;  %v2413_v7 = vrot.slane %v2411_v14, 4  ;;  %v3104_v3 = vrot.slane %v3102_v8, 5 }
 0x166   : > { %v1604_v11 = vpop.f32.mrf.mxu3  ;;  %4417 = vmatmul.msk.bf16.gmra.mxu2 %vm647_vm4, %v1221_v58  ;;  %v966_v33 = vpop.f32.mrf.mxu1  ;;  %v3746_v58 = vrot.slane %v5830_v25, 5  ;;  %v3461_v23 = vunpack.c.l.b16 %v3097_v50 }
 0x167   : > { %v1665_v56 = vadd.f32 %v1604_v11, %v1375_v53  ;;  %v4839_v11 = vrot.slane %v4823_v48, 9  ;;  %v4908_v48 = vld [vmem:[%s5208_s15 + $0x18] sm:$0xff]  ;;  %v2415_v50 = vsel %vm5394_vm7, %v2413_v7, %v2414_v35  ;;  %v5900_v7 = vld [vmem:[%s5208_s15 + $0x34] sm:$0xf] }
 0x169   : > { %v1317_v28 = vpop.f32.mrf.mxu2  ;;  %v5862_v21 = vadd.f32 %v2258_v5, %v1665_v56  ;;  %v3108_v5 = vshll.u32 %v5860_v60, 16  ;;  %v3112_v56 = vshrl.u32 %v5860_v60, 16 }
 0x16a   : > { %v1376_v19 = vadd.f32 %v1317_v28, %v965_v62  ;;  %v3748_v62 = vrot.slane %v3746_v58, 4 }
 0x16b   : > { %4530 = vmatmul.msk.bf16.gmra.mxu3 %vm647_vm4, %v4907_v9  ;;  %v967_v9 = vadd.f32 %v966_v33, %v5625_v29  ;;  %v3101_v33 = vrot.slane %v3099_v24, 4  ;;  %v5883_v47 = vrot.slane %v3108_v5, 5 }
 0x16d   : > { %v2261_v2 = vpop.f32.mrf.mxu0  ;;  %v3105_v5 = vor.u32 %v3104_v3, %v3101_v33  ;;  %v4824_v33 = vld [vmem:[%s5208_s15 + $0x24] sm:$0xe] }
 0x16e   : > { %v1607_v53 = vpop.f32.mrf.mxu3  ;;  %v969_v41 = vpop.f32.mrf.mxu1 }
 0x16f   : > { %v1666_v25 = vadd.f32 %v1607_v53, %v1376_v19  ;;  %v3460_v19 = vunpack.c.l.b16 %v3087_v17  ;;  %v3114_v53 = vrot.slane %v3112_v56, 4  ;;  %v970_v14 = vadd.f32 %v969_v41, %v5507_v37 }
 0x170   : > { %4595 = vmatmul.msk.bf16.gmra.mxu0 %vm647_vm4, %v2165_v20  ;;  %v3747_v20 = vsel %vm5394_vm7, %v4839_v11, %v3746_v58  ;;  %v3753_v37 = vrot.slane %v5860_v60, 5 }
 0x171   : > { %v1319_v28 = vpop.f32.mrf.mxu2  ;;  %4629 = vmatmul.msk.bf16.vlgmr.msra.gmra.mxu1 %vm647_vm4, %v5832_v61  ;;  %v5881_v29 = vadd.f32 %v2261_v2, %v1666_v25  ;;  %v3750_v61 = vsel %vm5394_vm7, %v3748_v62, %v3749_v34  ;;  %v3492_v2 = vpack.c.b16 %v3461_v23, %v3460_v19  ;;  %v3858_v11 = vunpack.c.l.b16 %v3747_v20 }
 0x172   : > { %v1377_v4 = vadd.f32 %v1319_v28, %v967_v9  ;;  %v5892_v9 = vld [vmem:[%s5208_s15 + $0x2c] sm:$0x1]  ;;  %v3859_v8 = vunpack.c.l.b16 %v3750_v61  ;;  %v3115_v56 = vor.u32 %v3114_v53, %v5883_v47  ;;  %v2518_v62 = vunpack.c.l.b16 %v2412_v27 }
 0x173   : > { %v2519_v34 = vunpack.c.l.b16 %v2415_v50  ;;  %v3118_v16 = vshll.u32 %v5892_v9, 16  ;;  %v3123_v53 = vshrl.u32 %v4764_v38, 16  ;;  %v3126_v61 = vshll.u32 %v4764_v38, 16 }
 0x174   : > { %v3890_v19 = vpack.c.b16 %v3859_v8, %v3858_v11  ;;  %v3132_v27 = vshll.u32 %v5900_v7, 16  ;;  %v3136_v50 = vshrl.u32 %v5900_v7, 16  ;;  %v5005_v11 = vld [vmem:[%s5208_s15 + $0x28] sm:$0xf]  ;;  %v3756_v60 = vrot.slane %v5892_v9, 5 }
 0x175   : > { %v2263_v17 = vpop.f32.mrf.mxu0  ;;  %v2549_v23 = vpack.c.b16 %v2519_v34, %v2518_v62  ;;  %v3120_v20 = vrot.slane %v3118_v16, 5  ;;  %v2418_v8 = vrot.slane %v5005_v11, 5  ;;  %v4840_v62 = vrot.slane %v4824_v33, 9  ;;  %v4909_v11 = vld [vmem:[%s5208_s15 + $0x24] sm:$0xff] }
 0x176   : > { %v1609_v58 = vpop.f32.mrf.mxu3  ;;  %4742 = vmatmul.msk.bf16.vlgmr.msra.gmra.mxu2 %vm647_vm4, %v4908_v48  ;;  %v971_v24 = vpop.f32.mrf.mxu1  ;;  %v3116_v48 = vrot.slane %v3115_v56, 4  ;;  %v3128_v33 = vrot.slane %v3126_v61, 5  ;;  %v5921_v9 = vrot.slane %v3132_v27, 5 }
 0x177   : > { %v1667_v25 = vadd.f32 %v1609_v58, %v1377_v4  ;;  %v3106_v4 = vrot.slane %v3105_v5, 4  ;;  %v5006_v5 = vld [vmem:[%s5208_s15 + $0x2c] sm:$0x1] }
 0x178   : > { %v2421_v56 = vrot.slane %v5006_v5, 5  ;;  %v3121_v16 = vsel %vm5220_vm3, %v3116_v48, %v3120_v20  ;;  %v3754_v20 = vsel %vm5394_vm7, %v4840_v62, %v3753_v37 }
 0x179   : > { %v1322_v35 = vpop.f32.mrf.mxu2  ;;  %v5905_v41 = vadd.f32 %v2263_v17, %v1667_v25  ;;  %v4598_v17 = vld [vmem:[%s5208_s15 + $0x24] sm:$0xe]  ;;  %v972_v25 = vadd.f32 %v971_v24, %v5528_v63  ;;  %v3111_v34 = vsel %vm5220_vm3, %v3106_v4, %v5883_v47  ;;  %v2420_v24 = vrot.slane %v2418_v8, 4 }
 0x17a   : > { %v1378_v28 = vadd.f32 %v1322_v35, %v970_v14  ;;  %v3755_v35 = vrot.slane %v3753_v37, 4  ;;  %v4614_v63 = vrot.slane %v4598_v17, 9  ;;  %v3462_v47 = vunpack.c.l.b16 %v3111_v34 }
 0x17b   : > { %4807 = vmatmul.msk.bf16.vlgmr.msra.gmra.mxu3 %vm647_vm4, %v3492_v2  ;;  %6547 = vst [vmem:[#allocation6_spill] sm:$0xff] %v5905_v41  ;;  %v3463_v4 = vunpack.c.l.b16 %v3121_v16  ;;  %v5927_v41 = vld [vmem:[%s5208_s15 + $0x38] sm:$0x1] }
 0x17c   : > { %v3142_v37 = vshll.u32 %v5927_v41, 16 }
 0x17d   : > { %v2266_v3 = vpop.f32.mrf.mxu0  ;;  %v3493_v17 = vpack.c.b16 %v3463_v4, %v3462_v47  ;;  %v5007_v4 = vld [vmem:[%s5208_s15 + $0x34] sm:$0xf] }
 0x17e   : > { %v1612_v58 = vpop.f32.mrf.mxu3  ;;  %v974_v2 = vpop.f32.mrf.mxu1 }
 0x17f   : > { %v1668_v14 = vadd.f32 %v1612_v58, %v1378_v28  ;;  %v3125_v28 = vrot.slane %v3123_v53, 4  ;;  %v3138_v58 = vrot.slane %v3136_v50, 4  ;;  %v2422_v50 = vsel %vm5394_vm7, %v2420_v24, %v2421_v56  ;;  %v5946_v24 = vld [vmem:[%s5208_s15 + $0x40] sm:$0xf] }
 0x180   : > { %4856 = vmatmul.msk.bf16.vlgmr.msra.gmra.mxu0 %vm647_vm4, %v3890_v19 }
 0x181   : > { %v1324_v38 = vpop.f32.mrf.mxu2  ;;  %4630 = vmatmul.msk.bf16.gmra.mxu1 %vm647_vm4, %v2549_v23  ;;  %v5924_v5 = vadd.f32 %v2266_v3, %v1668_v14  ;;  %v3757_v23 = vsel %vm5394_vm7, %v3755_v35, %v3756_v60  ;;  %v3129_v53 = vor.u32 %v3128_v33, %v3125_v28  ;;  %v2419_v3 = vsel %vm5394_vm7, %v4614_v63, %v2418_v8 }
 0x182   : > { %v1379_v19 = vadd.f32 %v1324_v38, %v972_v25  ;;  %v3139_v14 = vor.u32 %v3138_v58, %v5921_v9  ;;  %v975_v60 = vadd.f32 %v974_v2, %v5545_v22  ;;  %v3860_v25 = vunpack.c.l.b16 %v3754_v20  ;;  %v4825_v58 = vld [vmem:[%s5208_s15 + $0x30] sm:$0xe] }
 0x183   : > { %v3861_v34 = vunpack.c.l.b16 %v3757_v23  ;;  %v2520_v35 = vunpack.c.l.b16 %v2419_v3  ;;  %v2521_v8 = vunpack.c.l.b16 %v2422_v50  ;;  %v3130_v28 = vrot.slane %v3129_v53, 4 }
 0x184   : > { %v3140_v56 = vrot.slane %v3139_v14, 4  ;;  %v3144_v33 = vrot.slane %v3142_v37, 5  ;;  %v3760_v63 = vrot.slane %v5900_v7, 5  ;;  %v2425_v20 = vrot.slane %v5007_v4, 5  ;;  %v4599_v7 = vld [vmem:[%s5208_s15 + $0x30] sm:$0xe] }
 0x185   : > { %v2268_v48 = vpop.f32.mrf.mxu0  ;;  %v2550_v47 = vpack.c.b16 %v2521_v8, %v2520_v35  ;;  %v4841_v50 = vrot.slane %v4825_v58, 9 }
 0x186   : > { %v1614_v61 = vpop.f32.mrf.mxu3  ;;  %4743 = vmatmul.msk.bf16.gmra.mxu2 %vm647_vm4, %v4909_v11  ;;  %v976_v27 = vpop.f32.mrf.mxu1  ;;  %v4767_v11 = vld [vmem:[%s5208_s15 + $0x3c] sm:$0xf]  ;;  %v3145_v3 = vsel %vm5220_vm3, %v3140_v56, %v3144_v33  ;;  %v4910_v33 = vld [vmem:[%s5208_s15 + $0x30] sm:$0xff] }
 0x187   : > { %v1669_v62 = vadd.f32 %v1614_v61, %v1379_v19  ;;  %v3891_v19 = vpack.c.b16 %v3861_v34, %v3860_v25  ;;  %v3135_v61 = vsel %vm5220_vm3, %v3130_v28, %v5921_v9  ;;  %v3147_v14 = vshrl.u32 %v4767_v11, 16  ;;  %v5008_v34 = vld [vmem:[%s5208_s15 + $0x38] sm:$0x1] }
 0x188   : > { %v3762_v25 = vrot.slane %v3760_v63, 4  ;;  %v3763_v9 = vrot.slane %v5927_v41, 5  ;;  %v3464_v8 = vunpack.c.l.b16 %v3135_v61  ;;  %v2427_v28 = vrot.slane %v2425_v20, 4 }
 0x189   : > { %v1327_v16 = vpop.f32.mrf.mxu2  ;;  %v5948_v22 = vadd.f32 %v2268_v48, %v1669_v62  ;;  %v3150_v48 = vshll.u32 %v4767_v11, 16  ;;  %v3156_v62 = vshll.u32 %v5946_v24, 16  ;;  %v3465_v58 = vunpack.c.l.b16 %v3145_v3 }
 0x18a   : > { %v1380_v38 = vadd.f32 %v1327_v16, %v975_v60  ;;  %v977_v60 = vadd.f32 %v976_v27, %v5566_v55  ;;  %v2428_v16 = vrot.slane %v5008_v34, 5  ;;  %v3761_v11 = vsel %vm5394_vm7, %v4841_v50, %v3760_v63 }
 0x18b   : > { %4808 = vmatmul.msk.bf16.gmra.mxu3 %vm647_vm4, %v3493_v17  ;;  %v3160_v17 = vshrl.u32 %v5946_v24, 16  ;;  %v3149_v55 = vrot.slane %v3147_v14, 4  ;;  %v3152_v27 = vrot.slane %v3150_v48, 5  ;;  %v5969_v41 = vrot.slane %v3156_v62, 5 }
 0x18c   : > { %v2429_v3 = vsel %vm5394_vm7, %v2427_v28, %v2428_v16  ;;  %v3862_v50 = vunpack.c.l.b16 %v3761_v11  ;;  %v4826_v11 = vld [vmem:[%s5208_s15 + $0x3c] sm:$0xe] }
 0x18d   : > { %v2271_v2 = vpop.f32.mrf.mxu0  ;;  %v3162_v4 = vrot.slane %v3160_v17, 4  ;;  %v3153_v62 = vor.u32 %v3152_v27, %v3149_v55 }
 0x18e   : > { %v1617_v23 = vpop.f32.mrf.mxu3  ;;  %v979_v53 = vpop.f32.mrf.mxu1 }
 0x18f   : > { %v1670_v37 = vadd.f32 %v1617_v23, %v1380_v38  ;;  %v4615_v38 = vrot.slane %v4599_v7, 9  ;;  %v5978_v7 = vld [vmem:[%s5208_s15 + $0x44] sm:$0x1]  ;;  %v3163_v17 = vor.u32 %v3162_v4, %v5969_v41  ;;  %v3154_v28 = vrot.slane %v3153_v62, 4 }
 0x190   : > { %4857 = vmatmul.msk.bf16.gmra.mxu0 %vm647_vm4, %v3891_v19 }
 0x191   : > { %v1329_v35 = vpop.f32.mrf.mxu2  ;;  %4631 = vmatmul.msk.bf16.gmra.mxu1 %vm647_vm4, %v2550_v47  ;;  %v5967_v19 = vadd.f32 %v2271_v2, %v1670_v37  ;;  %v3764_v47 = vsel %vm5394_vm7, %v3762_v25, %v3763_v9  ;;  %v2426_v61 = vsel %vm5394_vm7, %v4615_v38, %v2425_v20  ;;  %v3494_v2 = vpack.c.b16 %v3465_v58, %v3464_v8  ;;  %v5986_v38 = vld [vmem:[%s5208_s15 + $0x4c] sm:$0xf] }
 0x192   : > { %v1381_v56 = vadd.f32 %v1329_v35, %v977_v60  ;;  %v3863_v48 = vunpack.c.l.b16 %v3764_v47  ;;  %v980_v20 = vadd.f32 %v979_v53, %v5589_v26  ;;  %v2522_v60 = vunpack.c.l.b16 %v2426_v61  ;;  %v4770_v35 = vld [vmem:[%s5208_s15 + $0x48] sm:$0xf] }
 0x193   : > { %v2523_v25 = vunpack.c.l.b16 %v2429_v3  ;;  %v3166_v9 = vshll.u32 %v5978_v7, 16  ;;  %v3767_v26 = vrot.slane %v5946_v24, 5  ;;  %v3171_v27 = vshrl.u32 %v4770_v35, 16 }
 0x194   : > { %v3892_v8 = vpack.c.b16 %v3863_v48, %v3862_v50  ;;  %v3174_v4 = vshll.u32 %v4770_v35, 16  ;;  %v3180_v47 = vshll.u32 %v5986_v38, 16  ;;  %v3184_v61 = vshrl.u32 %v5986_v38, 16  ;;  %v5010_v48 = vld [vmem:[%s5208_s15 + $0x44] sm:$0x1] }
 0x195   : > { %v2273_v23 = vpop.f32.mrf.mxu0  ;;  %v3168_v58 = vrot.slane %v3166_v9, 5  ;;  %v2435_v62 = vrot.slane %v5010_v48, 5  ;;  %v3770_v24 = vrot.slane %v5978_v7, 5  ;;  %v3769_v9 = vrot.slane %v3767_v26, 4  ;;  %v6013_v48 = vld [vmem:[%s5208_s15 + $0x50] sm:$0x1] }
 0x196   : > { %v1619_v63 = vpop.f32.mrf.mxu3  ;;  %4744 = vmatmul.msk.bf16.gmra.mxu2 %vm647_vm4, %v4910_v33  ;;  %v981_v14 = vpop.f32.mrf.mxu1  ;;  %v2551_v33 = vpack.c.b16 %v2523_v25, %v2522_v60  ;;  %v3159_v60 = vsel %vm5220_vm3, %v3154_v28, %v5969_v41  ;;  %v3176_v35 = vrot.slane %v3174_v4, 5  ;;  %v6007_v7 = vrot.slane %v3180_v47, 5 }
 0x197   : > { %v1671_v37 = vadd.f32 %v1619_v63, %v1381_v56  ;;  %v3164_v56 = vrot.slane %v3163_v17, 4  ;;  %v3466_v41 = vunpack.c.l.b16 %v3159_v60 }
 0x199   : > { %v1332_v34 = vpop.f32.mrf.mxu2  ;;  %v5991_v53 = vadd.f32 %v2273_v23, %v1671_v37  ;;  %v4600_v23 = vld [vmem:[%s5208_s15 + $0x3c] sm:$0xe]  ;;  %v982_v37 = vadd.f32 %v981_v14, %v5607_v43  ;;  %v3169_v25 = vsel %vm5220_vm3, %v3164_v56, %v3168_v58 }
 0x19a   : > { %v1382_v16 = vadd.f32 %v1332_v34, %v980_v20  ;;  %v4842_v20 = vrot.slane %v4826_v11, 9  ;;  %v3186_v11 = vrot.slane %v3184_v61, 4  ;;  %v4616_v43 = vrot.slane %v4600_v23, 9 }
 0x19b   : > { %4809 = vmatmul.msk.bf16.gmra.mxu3 %vm647_vm4, %v3494_v2  ;;  %v5009_v2 = vld [vmem:[%s5208_s15 + $0x40] sm:$0xf]  ;;  %v3467_v28 = vunpack.c.l.b16 %v3169_v25 }
 0x19c   : > { %v2432_v50 = vrot.slane %v5009_v2, 5  ;;  %v3768_v58 = vsel %vm5394_vm7, %v4842_v20, %v3767_v26  ;;  %v3190_v26 = vshll.u32 %v6013_v48, 16 }
 0x19d   : > { %v2276_v55 = vpop.f32.mrf.mxu0  ;;  %v3495_v23 = vpack.c.b16 %v3467_v28, %v3466_v41  ;;  %v5011_v28 = vld [vmem:[%s5208_s15 + $0x4c] sm:$0xf] }
 0x19e   : > { %v1622_v3 = vpop.f32.mrf.mxu3  ;;  %v984_v63 = vpop.f32.mrf.mxu1  ;;  %v2434_v14 = vrot.slane %v2432_v50, 4 }
 0x19f   : > { %v1672_v17 = vadd.f32 %v1622_v3, %v1382_v16  ;;  %v3173_v16 = vrot.slane %v3171_v27, 4  ;;  %v4911_v3 = vld [vmem:[%s5208_s15 + $0x3c] sm:$0xff] }
 0x1a0   : > { %4858 = vmatmul.msk.bf16.gmra.mxu0 %vm647_vm4, %v3892_v8  ;;  %v2436_v61 = vsel %vm5394_vm7, %v2434_v14, %v2435_v62  ;;  %v6032_v14 = vld [vmem:[%s5208_s15 + $0x58] sm:$0xf] }
 0x1a1   : > { %v1334_v34 = vpop.f32.mrf.mxu2  ;;  %4632 = vmatmul.msk.bf16.gmra.mxu1 %vm647_vm4, %v2551_v33  ;;  %v6010_v2 = vadd.f32 %v2276_v55, %v1672_v17  ;;  %v3771_v33 = vsel %vm5394_vm7, %v3769_v9, %v3770_v24  ;;  %v3177_v27 = vor.u32 %v3176_v35, %v3173_v16  ;;  %v2433_v55 = vsel %vm5394_vm7, %v4616_v43, %v2432_v50 }
 0x1a2   : > { %v1383_v8 = vadd.f32 %v1334_v34, %v982_v37  ;;  %v3187_v17 = vor.u32 %v3186_v11, %v6007_v7  ;;  %v985_v24 = vadd.f32 %v984_v63, %v5628_v40  ;;  %v3864_v37 = vunpack.c.l.b16 %v3768_v58  ;;  %v4827_v11 = vld [vmem:[%s5208_s15 + $0x48] sm:$0xe] }
 0x1a3   : > { %v3865_v60 = vunpack.c.l.b16 %v3771_v33  ;;  %v2524_v9 = vunpack.c.l.b16 %v2433_v55  ;;  %v2525_v50 = vunpack.c.l.b16 %v2436_v61  ;;  %v3178_v16 = vrot.slane %v3177_v27, 4 }
 0x1a4   : > { %v3188_v62 = vrot.slane %v3187_v17, 4  ;;  %v3192_v35 = vrot.slane %v3190_v26, 5  ;;  %v3774_v43 = vrot.slane %v5986_v38, 5  ;;  %v2439_v58 = vrot.slane %v5011_v28, 5  ;;  %v4601_v38 = vld [vmem:[%s5208_s15 + $0x48] sm:$0xe] }
 0x1a5   : > { %v2278_v56 = vpop.f32.mrf.mxu0  ;;  %v2552_v41 = vpack.c.b16 %v2525_v50, %v2524_v9  ;;  %v4843_v61 = vrot.slane %v4827_v11, 9 }
 0x1a6   : > { %v1624_v4 = vpop.f32.mrf.mxu3  ;;  %4745 = vmatmul.msk.bf16.gmra.mxu2 %vm647_vm4, %v4911_v3  ;;  %v986_v47 = vpop.f32.mrf.mxu1  ;;  %v4773_v3 = vld [vmem:[%s5208_s15 + $0x54] sm:$0xf]  ;;  %v3193_v55 = vsel %vm5220_vm3, %v3188_v62, %v3192_v35  ;;  %v4912_v35 = vld [vmem:[%s5208_s15 + $0x48] sm:$0xff] }
 0x1a7   : > { %v1673_v20 = vadd.f32 %v1624_v4, %v1383_v8  ;;  %v3893_v8 = vpack.c.b16 %v3865_v60, %v3864_v37  ;;  %v3183_v4 = vsel %vm5220_vm3, %v3178_v16, %v6007_v7  ;;  %v3195_v17 = vshrl.u32 %v4773_v3, 16  ;;  %v5012_v60 = vld [vmem:[%s5208_s15 + $0x50] sm:$0x1] }
 0x1a8   : > { %v3776_v37 = vrot.slane %v3774_v43, 4  ;;  %v3777_v7 = vrot.slane %v6013_v48, 5  ;;  %v3468_v50 = vunpack.c.l.b16 %v3183_v4  ;;  %v2441_v16 = vrot.slane %v2439_v58, 4 }
 0x1a9   : > { %v1337_v25 = vpop.f32.mrf.mxu2  ;;  %v6034_v40 = vadd.f32 %v2278_v56, %v1673_v20  ;;  %v3198_v56 = vshll.u32 %v4773_v3, 16  ;;  %v3204_v20 = vshll.u32 %v6032_v14, 16  ;;  %v3469_v11 = vunpack.c.l.b16 %v3193_v55 }
 0x1aa   : > { %v1384_v34 = vadd.f32 %v1337_v25, %v985_v24  ;;  %v987_v24 = vadd.f32 %v986_v47, %v5643_v10  ;;  %v2442_v25 = vrot.slane %v5012_v60, 5  ;;  %v3775_v3 = vsel %vm5394_vm7, %v4843_v61, %v3774_v43 }
 0x1ab   : > { %4810 = vmatmul.msk.bf16.gmra.mxu3 %vm647_vm4, %v3495_v23  ;;  %v3208_v23 = vshrl.u32 %v6032_v14, 16  ;;  %v3197_v10 = vrot.slane %v3195_v17, 4  ;;  %v3200_v47 = vrot.slane %v3198_v56, 5  ;;  %v6055_v48 = vrot.slane %v3204_v20, 5 }
 0x1ac   : > { %v2443_v55 = vsel %vm5394_vm7, %v2441_v16, %v2442_v25  ;;  %v3866_v61 = vunpack.c.l.b16 %v3775_v3  ;;  %v4828_v3 = vld [vmem:[%s5208_s15 + $0x54] sm:$0xe] }
 0x1ad   : > { %v2281_v63 = vpop.f32.mrf.mxu0  ;;  %v3210_v28 = vrot.slane %v3208_v23, 4  ;;  %v3201_v20 = vor.u32 %v3200_v47, %v3197_v10 }
 0x1ae   : > { %v1627_v33 = vpop.f32.mrf.mxu3  ;;  %v989_v27 = vpop.f32.mrf.mxu1 }
 0x1af   : > { %v1674_v26 = vadd.f32 %v1627_v33, %v1384_v34  ;;  %v4617_v34 = vrot.slane %v4601_v38, 9  ;;  %v6064_v38 = vld [vmem:[%s5208_s15 + $0x5c] sm:$0x1]  ;;  %v3211_v23 = vor.u32 %v3210_v28, %v6055_v48  ;;  %v3202_v16 = vrot.slane %v3201_v20, 4 }
 0x1b0   : > { %4859 = vmatmul.msk.bf16.gmra.mxu0 %vm647_vm4, %v3893_v8 }
 0x1b1   : > { %v1339_v9 = vpop.f32.mrf.mxu2  ;;  %4633 = vmatmul.msk.bf16.gmra.mxu1 %vm647_vm4, %v2552_v41  ;;  %v6053_v8 = vadd.f32 %v2281_v63, %v1674_v26  ;;  %v3778_v41 = vsel %vm5394_vm7, %v3776_v37, %v3777_v7  ;;  %v2440_v4 = vsel %vm5394_vm7, %v4617_v34, %v2439_v58  ;;  %v3496_v63 = vpack.c.b16 %v3469_v11, %v3468_v50  ;;  %v6072_v34 = vld [vmem:[%s5208_s15 + $0x64] sm:$0xf] }
 0x1b2   : > { %v1385_v62 = vadd.f32 %v1339_v9, %v987_v24  ;;  %v3867_v56 = vunpack.c.l.b16 %v3778_v41  ;;  %v990_v58 = vadd.f32 %v989_v27, %v5519_v49  ;;  %v2526_v24 = vunpack.c.l.b16 %v2440_v4  ;;  %v4776_v9 = vld [vmem:[%s5208_s15 + $0x60] sm:$0xf] }
 0x1b3   : > { %v2527_v37 = vunpack.c.l.b16 %v2443_v55  ;;  %v3214_v7 = vshll.u32 %v6064_v38, 16  ;;  %v3781_v49 = vrot.slane %v6032_v14, 5  ;;  %v3219_v47 = vshrl.u32 %v4776_v9, 16 }
 0x1b4   : > { %v3894_v50 = vpack.c.b16 %v3867_v56, %v3866_v61  ;;  %v3222_v28 = vshll.u32 %v4776_v9, 16  ;;  %v3228_v41 = vshll.u32 %v6072_v34, 16  ;;  %v3232_v4 = vshrl.u32 %v6072_v34, 16  ;;  %v5014_v56 = vld [vmem:[%s5208_s15 + $0x5c] sm:$0x1] }
 0x1b5   : > { %v2283_v33 = vpop.f32.mrf.mxu0  ;;  %v3216_v11 = vrot.slane %v3214_v7, 5  ;;  %v2449_v20 = vrot.slane %v5014_v56, 5  ;;  %v3784_v14 = vrot.slane %v6064_v38, 5  ;;  %v3783_v7 = vrot.slane %v3781_v49, 4  ;;  %v6099_v56 = vld [vmem:[%s5208_s15 + $0x68] sm:$0x1] }
 0x1b6   : > { %v1629_v43 = vpop.f32.mrf.mxu3  ;;  %4746 = vmatmul.msk.bf16.gmra.mxu2 %vm647_vm4, %v4912_v35  ;;  %v991_v17 = vpop.f32.mrf.mxu1  ;;  %v2553_v35 = vpack.c.b16 %v2527_v37, %v2526_v24  ;;  %v3207_v24 = vsel %vm5220_vm3, %v3202_v16, %v6055_v48  ;;  %v3224_v9 = vrot.slane %v3222_v28, 5  ;;  %v6093_v38 = vrot.slane %v3228_v41, 5 }
 0x1b7   : > { %v1675_v26 = vadd.f32 %v1629_v43, %v1385_v62  ;;  %v3212_v62 = vrot.slane %v3211_v23, 4  ;;  %v3470_v48 = vunpack.c.l.b16 %v3207_v24 }
 0x1b9   : > { %v1342_v60 = vpop.f32.mrf.mxu2  ;;  %v6077_v27 = vadd.f32 %v2283_v33, %v1675_v26  ;;  %v4602_v33 = vld [vmem:[%s5208_s15 + $0x54] sm:$0xe]  ;;  %v992_v26 = vadd.f32 %v991_v17, %v5538_v0  ;;  %v3217_v37 = vsel %vm5220_vm3, %v3212_v62, %v3216_v11 }
 0x1ba   : > { %v1386_v25 = vadd.f32 %v1342_v60, %v990_v58  ;;  %v4844_v58 = vrot.slane %v4828_v3, 9  ;;  %v3234_v3 = vrot.slane %v3232_v4, 4  ;;  %v4618_v0 = vrot.slane %v4602_v33, 9 }
 0x1bb   : > { %4811 = vmatmul.msk.bf16.gmra.mxu3 %vm647_vm4, %v3496_v63  ;;  %v5013_v63 = vld [vmem:[%s5208_s15 + $0x58] sm:$0xf]  ;;  %v3471_v16 = vunpack.c.l.b16 %v3217_v37 }
 0x1bc   : > { %v2446_v61 = vrot.slane %v5013_v63, 5  ;;  %v3782_v11 = vsel %vm5394_vm7, %v4844_v58, %v3781_v49  ;;  %v3238_v49 = vshll.u32 %v6099_v56, 16 }
 0x1bd   : > { %v2286_v10 = vpop.f32.mrf.mxu0  ;;  %v3497_v33 = vpack.c.b16 %v3471_v16, %v3470_v48 }
 0x1be   : > { %v1632_v55 = vpop.f32.mrf.mxu3  ;;  %v994_v43 = vpop.f32.mrf.mxu1  ;;  %v2448_v17 = vrot.slane %v2446_v61, 4 }
 0x1bf   : > { %v1676_v23 = vadd.f32 %v1632_v55, %v1386_v25  ;;  %v3221_v25 = vrot.slane %v3219_v47, 4  ;;  %v4913_v55 = vld [vmem:[%s5208_s15 + $0x54] sm:$0xff] }
 0x1c0   : > { %4860 = vmatmul.msk.bf16.gmra.mxu0 %vm647_vm4, %v3894_v50  ;;  %v2450_v4 = vsel %vm5394_vm7, %v2448_v17, %v2449_v20  ;;  %v3240_v20 = vrot.slane %v3238_v49, 5  ;;  %v6118_v17 = vld [vmem:[%s5208_s15 + $0x70] sm:$0xf]  ;;  %v4603_v49 = vld [vmem:[%s5208_s15 + $0x60] sm:$0xe] }
 0x1c1   : > { %v1344_v60 = vpop.f32.mrf.mxu2  ;;  %4634 = vmatmul.msk.bf16.gmra.mxu1 %vm647_vm4, %v2553_v35  ;;  %v6096_v63 = vadd.f32 %v2286_v10, %v1676_v23  ;;  %v3785_v35 = vsel %vm5394_vm7, %v3783_v7, %v3784_v14  ;;  %v3225_v47 = vor.u32 %v3224_v9, %v3221_v25  ;;  %v2447_v10 = vsel %vm5394_vm7, %v4618_v0, %v2446_v61 }
 0x1c2   : > { %v1387_v50 = vadd.f32 %v1344_v60, %v992_v26  ;;  %v3235_v23 = vor.u32 %v3234_v3, %v6093_v38  ;;  %v995_v14 = vadd.f32 %v994_v43, %v5559_v39  ;;  %v3868_v26 = vunpack.c.l.b16 %v3782_v11  ;;  %v4779_v3 = vld [vmem:[%s5208_s15 + $0x6c] sm:$0xf] }
 0x1c3   : > { %v3869_v24 = vunpack.c.l.b16 %v3785_v35  ;;  %v2528_v7 = vunpack.c.l.b16 %v2447_v10  ;;  %v2529_v60 = vunpack.c.l.b16 %v2450_v4  ;;  %v3226_v25 = vrot.slane %v3225_v47, 4  ;;  %v5015_v10 = vld [vmem:[%s5208_s15 + $0x64] sm:$0xf] }
 0x1c4   : > { %v3236_v9 = vrot.slane %v3235_v23, 4  ;;  %v3788_v0 = vrot.slane %v6072_v34, 5  ;;  %v2453_v4 = vrot.slane %v5015_v10, 5  ;;  %v3243_v34 = vshrl.u32 %v4779_v3, 16 }
 0x1c5   : > { %v2288_v62 = vpop.f32.mrf.mxu0  ;;  %v2554_v48 = vpack.c.b16 %v2529_v60, %v2528_v7  ;;  %v3231_v47 = vsel %vm5220_vm3, %v3226_v25, %v6093_v38  ;;  %v3791_v38 = vrot.slane %v6099_v56, 5 }
 0x1c6   : > { %v1634_v28 = vpop.f32.mrf.mxu3  ;;  %4747 = vmatmul.msk.bf16.gmra.mxu2 %vm647_vm4, %v4913_v55  ;;  %v996_v41 = vpop.f32.mrf.mxu1  ;;  %v4829_v55 = vld [vmem:[%s5208_s15 + $0x60] sm:$0xe]  ;;  %v3472_v60 = vunpack.c.l.b16 %v3231_v47  ;;  %v6146_v47 = vld [vmem:[%s5208_s15 + $0x74] sm:$0x1] }
 0x1c7   : > { %v1677_v58 = vadd.f32 %v1634_v28, %v1387_v50  ;;  %v3895_v50 = vpack.c.b16 %v3869_v24, %v3868_v26  ;;  %v4845_v16 = vrot.slane %v4829_v55, 9  ;;  %v3241_v28 = vsel %vm5220_vm3, %v3236_v9, %v3240_v20  ;;  %v5016_v24 = vld [vmem:[%s5208_s15 + $0x68] sm:$0x1]  ;;  %v4914_v20 = vld [vmem:[%s5208_s15 + $0x60] sm:$0xff] }
 0x1c8   : > { %v3790_v26 = vrot.slane %v3788_v0, 4  ;;  %v4619_v55 = vrot.slane %v4603_v49, 9 }
 0x1c9   : > { %v1347_v37 = vpop.f32.mrf.mxu2  ;;  %v6120_v39 = vadd.f32 %v2288_v62, %v1677_v58  ;;  %v3246_v62 = vshll.u32 %v4779_v3, 16  ;;  %v3252_v58 = vshll.u32 %v6118_v17, 16  ;;  %v3789_v25 = vsel %vm5394_vm7, %v4845_v16, %v3788_v0 }
 0x1ca   : > { %v1388_v61 = vadd.f32 %v1347_v37, %v995_v14  ;;  %v997_v14 = vadd.f32 %v996_v41, %v5578_v6  ;;  %v2456_v37 = vrot.slane %v5016_v24, 5  ;;  %v2455_v3 = vrot.slane %v2453_v4, 4 }
 0x1cb   : > { %4812 = vmatmul.msk.bf16.gmra.mxu3 %vm647_vm4, %v3497_v33  ;;  %v3256_v33 = vshrl.u32 %v6118_v17, 16  ;;  %v3245_v6 = vrot.slane %v3243_v34, 4  ;;  %v3248_v41 = vrot.slane %v3246_v62, 5  ;;  %v6141_v56 = vrot.slane %v3252_v58, 5 }
 0x1cc   : > { %v3792_v10 = vsel %vm5394_vm7, %v3790_v26, %v3791_v38  ;;  %v3870_v16 = vunpack.c.l.b16 %v3789_v25  ;;  %v2454_v34 = vsel %vm5394_vm7, %v4619_v55, %v2453_v4  ;;  %v3262_v26 = vshll.u32 %v6146_v47, 16  ;;  %v6158_v25 = vld [vmem:[%s5208_s15 + $0x7c] sm:$0xf]  ;;  %v4830_v55 = vld [vmem:[%s5208_s15 + $0x6c] sm:$0xe] }
 0x1cd   : > { %v2291_v43 = vpop.f32.mrf.mxu0  ;;  %v3871_v62 = vunpack.c.l.b16 %v3792_v10  ;;  %v3249_v58 = vor.u32 %v3248_v41, %v3245_v6  ;;  %v2530_v24 = vunpack.c.l.b16 %v2454_v34  ;;  %v3276_v10 = vshll.u32 %v6158_v25, 16 }
 0x1ce   : > { %v1637_v11 = vpop.f32.mrf.mxu3  ;;  %v999_v35 = vpop.f32.mrf.mxu1 }
 0x1cf   : > { %v1678_v23 = vadd.f32 %v1637_v11, %v1388_v61  ;;  %v3473_v61 = vunpack.c.l.b16 %v3241_v28  ;;  %v3258_v11 = vrot.slane %v3256_v33, 4  ;;  %v3896_v4 = vpack.c.b16 %v3871_v62, %v3870_v16  ;;  %v4604_v16 = vld [vmem:[%s5208_s15 + $0x6c] sm:$0xe] }
 0x1d0   : > { %4861 = vmatmul.msk.bf16.gmra.mxu0 %vm647_vm4, %v3895_v50 }
 0x1d1   : > { %v1349_v7 = vpop.f32.mrf.mxu2  ;;  %4635 = vmatmul.msk.bf16.gmra.mxu1 %vm647_vm4, %v2554_v48  ;;  %v6139_v50 = vadd.f32 %v2291_v43, %v1678_v23  ;;  %v3498_v0 = vpack.c.b16 %v3473_v61, %v3472_v60  ;;  %v2457_v23 = vsel %vm5394_vm7, %v2455_v3, %v2456_v37  ;;  %v3259_v33 = vor.u32 %v3258_v11, %v6141_v56  ;;  %v4782_v60 = vld [vmem:[%s5208_s15 + $0x78] sm:$0xf] }
 0x1d2   : > { %v1389_v9 = vadd.f32 %v1349_v7, %v997_v14  ;;  %v1000_v14 = vadd.f32 %v999_v35, %v5597_v45  ;;  %v2531_v7 = vunpack.c.l.b16 %v2457_v23  ;;  %v3250_v37 = vrot.slane %v3249_v58, 4  ;;  %v5017_v23 = vld [vmem:[%s5208_s15 + $0x70] sm:$0xf] }
 0x1d3   : > { %v3795_v45 = vrot.slane %v6118_v17, 5  ;;  %v3267_v35 = vshrl.u32 %v4782_v60, 16  ;;  %v3270_v11 = vshll.u32 %v4782_v60, 16  ;;  %v2460_v62 = vrot.slane %v5017_v23, 5 }
 0x1d4   : > { %v2555_v41 = vpack.c.b16 %v2531_v7, %v2530_v24  ;;  %v3255_v17 = vsel %vm5220_vm3, %v3250_v37, %v6141_v56  ;;  %v4620_v7 = vrot.slane %v4604_v16, 9  ;;  %v3278_v56 = vrot.slane %v3276_v10, 5 }
 0x1d5   : > { %v2293_v48 = vpop.f32.mrf.mxu0  ;;  %v3272_v60 = vrot.slane %v3270_v11, 5 }
 0x1d6   : > { %v1639_v28 = vpop.f32.mrf.mxu3  ;;  %4748 = vmatmul.msk.bf16.gmra.mxu2 %vm647_vm4, %v4914_v20  ;;  %v1001_v43 = vpop.f32.mrf.mxu1  ;;  %v3264_v20 = vrot.slane %v3262_v26, 5  ;;  %v3797_v26 = vrot.slane %v3795_v45, 4 }
 0x1d7   : > { %v1679_v49 = vadd.f32 %v1639_v28, %v1389_v9  ;;  %v3260_v9 = vrot.slane %v3259_v33, 4  ;;  %v3280_v28 = vshrl.u32 %v6158_v25, 16  ;;  %v1002_v33 = vadd.f32 %v1001_v43, %v5620_v12 }
 0x1d8   : > { %v3474_v12 = vunpack.c.l.b16 %v3255_v17 }
 0x1d9   : > { %v1352_v38 = vpop.f32.mrf.mxu2  ;;  %v6163_v3 = vadd.f32 %v2293_v48, %v1679_v49  ;;  %v4846_v48 = vrot.slane %v4830_v55, 9  ;;  %v3798_v49 = vrot.slane %v6146_v47, 5  ;;  %v4915_v55 = vld [vmem:[%s5208_s15 + $0x6c] sm:$0xff]  ;;  %v2462_v47 = vrot.slane %v2460_v62, 4 }
 0x1da   : > { %v1390_v61 = vadd.f32 %v1352_v38, %v1000_v14  ;;  %v3265_v14 = vsel %vm5220_vm3, %v3260_v9, %v3264_v20  ;;  %v3269_v38 = vrot.slane %v3267_v35, 4  ;;  %v6183_v9 = vld [vmem:[%s5208_s15 + $0x80] sm:$0x1] }
 0x1db   : > { %4813 = vmatmul.msk.bf16.gmra.mxu3 %vm647_vm4, %v3498_v0  ;;  %v3475_v43 = vunpack.c.l.b16 %v3265_v14  ;;  %v3796_v35 = vsel %vm5394_vm7, %v4846_v48, %v3795_v45  ;;  %v3286_v17 = vshll.u32 %v6183_v9, 16 }
 0x1dc   : > { %v3273_v11 = vor.u32 %v3272_v60, %v3269_v38 }
 0x1dd   : > { %v2296_v6 = vpop.f32.mrf.mxu0  ;;  %v3499_v48 = vpack.c.b16 %v3475_v43, %v3474_v12 }
 0x1de   : > { %v1642_v0 = vpop.f32.mrf.mxu3  ;;  %v1004_v34 = vpop.f32.mrf.mxu1  ;;  %v3274_v60 = vrot.slane %v3273_v11, 4 }
 0x1df   : > { %v1680_v58 = vadd.f32 %v1642_v0, %v1390_v61  ;;  %v3282_v61 = vrot.slane %v3280_v28, 4  ;;  %v5018_v0 = vld [vmem:[%s5208_s15 + $0x74] sm:$0x1] }
 0x1e0   : > { %4862 = vmatmul.msk.bf16.gmra.mxu0 %vm647_vm4, %v3896_v4  ;;  %v2463_v4 = vrot.slane %v5018_v0, 5  ;;  %v3288_v0 = vrot.slane %v3286_v17, 5  ;;  %v4605_v17 = vld [vmem:[%s5208_s15 + $0x78] sm:$0xe] }
 0x1e1   : > { %v1354_v24 = vpop.f32.mrf.mxu2  ;;  %4636 = vmatmul.msk.bf16.gmra.mxu1 %vm647_vm4, %v2555_v41  ;;  %v6180_v23 = vadd.f32 %v2296_v6, %v1680_v58  ;;  %v3799_v41 = vsel %vm5394_vm7, %v3797_v26, %v3798_v49  ;;  %v2461_v6 = vsel %vm5394_vm7, %v4620_v7, %v2460_v62  ;;  %v3283_v58 = vor.u32 %v3282_v61, %v3278_v56 }
 0x1e2   : > { %v1391_v37 = vadd.f32 %v1354_v24, %v1002_v33  ;;  %v2464_v16 = vsel %vm5394_vm7, %v2462_v47, %v2463_v4  ;;  %v1005_v49 = vadd.f32 %v1004_v34, %v5639_v59  ;;  %v3872_v33 = vunpack.c.l.b16 %v3796_v35  ;;  %v4785_v47 = vld [vmem:[%s5208_s15 + $0x84] sm:$0xf]  ;;  %v6201_v34 = vld [vmem:[%s5208_s15 + $0x88] sm:$0xf] }
 0x1e3   : > { %v3873_v14 = vunpack.c.l.b16 %v3799_v41  ;;  %v2532_v38 = vunpack.c.l.b16 %v2461_v6  ;;  %v2533_v24 = vunpack.c.l.b16 %v2464_v16  ;;  %v3284_v7 = vrot.slane %v3283_v58, 4 }
 0x1e4   : > { %v3802_v61 = vrot.slane %v6158_v25, 5  ;;  %v3279_v35 = vsel %vm5220_vm3, %v3274_v60, %v3278_v56  ;;  %v3291_v41 = vshrl.u32 %v4785_v47, 16  ;;  %v3294_v11 = vshll.u32 %v4785_v47, 16  ;;  %v5020_v47 = vld [vmem:[%s5208_s15 + $0x80] sm:$0x1] }
 0x1e5   : > { %v2298_v20 = vpop.f32.mrf.mxu0  ;;  %v2556_v43 = vpack.c.b16 %v2533_v24, %v2532_v38  ;;  %v3289_v6 = vsel %vm5220_vm3, %v3284_v7, %v3288_v0  ;;  %v3805_v58 = vrot.slane %v6183_v9, 5  ;;  %v3300_v56 = vshll.u32 %v6201_v34, 16  ;;  %v4916_v7 = vld [vmem:[%s5208_s15 + $0x78] sm:$0xff] }
 0x1e6   : > { %v1644_v10 = vpop.f32.mrf.mxu3  ;;  %4749 = vmatmul.msk.bf16.gmra.mxu2 %vm647_vm4, %v4915_v55  ;;  %v1006_v28 = vpop.f32.mrf.mxu1  ;;  %v4831_v55 = vld [vmem:[%s5208_s15 + $0x78] sm:$0xe]  ;;  %v3804_v16 = vrot.slane %v3802_v61, 4  ;;  %v3477_v24 = vunpack.c.l.b16 %v3289_v6  ;;  %v4621_v60 = vrot.slane %v4605_v17, 9 }
 0x1e7   : > { %v1681_v45 = vadd.f32 %v1644_v10, %v1391_v37  ;;  %v3897_v37 = vpack.c.b16 %v3873_v14, %v3872_v33  ;;  %v4847_v59 = vrot.slane %v4831_v55, 9  ;;  %v3304_v33 = vshrl.u32 %v6201_v34, 16 }
 0x1e8   : > { %v1007_v14 = vadd.f32 %v1006_v28, %v5656_v32  ;;  %v3296_v55 = vrot.slane %v3294_v11, 5  ;;  %v3806_v32 = vsel %vm5394_vm7, %v3804_v16, %v3805_v58  ;;  %v6226_v28 = vrot.slane %v3300_v56, 5 }
 0x1e9   : > { %v1357_v26 = vpop.f32.mrf.mxu2  ;;  %v6203_v4 = vadd.f32 %v2298_v20, %v1681_v45  ;;  %v3803_v9 = vsel %vm5394_vm7, %v4847_v59, %v3802_v61  ;;  %v3306_v61 = vrot.slane %v3304_v33, 4  ;;  %v6229_v59 = vld [vmem:[%s5208_s15 + $0x8c] sm:$0x1]  ;;  %v4788_v33 = vld [vmem:[%s5208_s15 + $0x90] sm:$0xf] }
 0x1ea   : > { %v1392_v62 = vadd.f32 %v1357_v26, %v1005_v49  ;;  %v3476_v26 = vunpack.c.l.b16 %v3279_v35  ;;  %v3310_v56 = vshll.u32 %v6229_v59, 16 }
 0x1eb   : > { %4814 = vmatmul.msk.bf16.gmra.mxu3 %vm647_vm4, %v3499_v48  ;;  %v5019_v48 = vld [vmem:[%s5208_s15 + $0x7c] sm:$0xf] }
 0x1ec   : > { %v2467_v49 = vrot.slane %v5019_v48, 5  ;;  %v3500_v35 = vpack.c.b16 %v3477_v24, %v3476_v26 }
 0x1ed   : > { %v2301_v12 = vpop.f32.mrf.mxu0 }
 0x1ee   : > { %v1647_v10 = vpop.f32.mrf.mxu3  ;;  %v2624_v25 = vpop.f32.mrf.mxu1  ;;  %v2469_v0 = vrot.slane %v2467_v49, 4 }
 0x1ef   : > { %v1682_v20 = vadd.f32 %v1647_v10, %v1392_v62  ;;  %v2704_v45 = vadd.f32 %v2624_v25, %v5673_v46  ;;  %v3293_v46 = vrot.slane %v3291_v41, 4  ;;  %v2470_v10 = vrot.slane %v5020_v47, 5 }
 0x1f0   : > { %4863 = vmatmul.msk.bf16.gmra.mxu0 %vm647_vm4, %v3897_v37  ;;  %v3874_v41 = vunpack.c.l.b16 %v3803_v9  ;;  %v3875_v25 = vunpack.c.l.b16 %v3806_v32 }
 0x1f1   : > { %v1359_v38 = vpop.f32.mrf.mxu2  ;;  %4637 = vmatmul.msk.bf16.gmra.mxu1 %vm647_vm4, %v2556_v43  ;;  %v6222_v37 = vadd.f32 %v2301_v12, %v1682_v20  ;;  %v2468_v12 = vsel %vm5394_vm7, %v4621_v60, %v2467_v49  ;;  %v2471_v16 = vsel %vm5394_vm7, %v2469_v0, %v2470_v10  ;;  %v3297_v58 = vor.u32 %v3296_v55, %v3293_v46 }
 0x1f2   : > { %v1393_v62 = vadd.f32 %v1359_v38, %v1007_v14  ;;  %v3307_v20 = vor.u32 %v3306_v61, %v6226_v28  ;;  %v2534_v26 = vunpack.c.l.b16 %v2468_v12  ;;  %v2535_v9 = vunpack.c.l.b16 %v2471_v16  ;;  %v6241_v38 = vld [vmem:[%s5208_s15 + $0x94] sm:$0xf] }
 0x1f3   : > { %v3898_v24 = vpack.c.b16 %v3875_v25, %v3874_v41  ;;  %v3298_v60 = vrot.slane %v3297_v58, 4  ;;  %v3312_v55 = vrot.slane %v3310_v56, 5  ;;  %v3324_v0 = vshll.u32 %v6241_v38, 16  ;;  %v5021_v25 = vld [vmem:[%s5208_s15 + $0x88] sm:$0xf] }
 0x1f4   : > { %v3308_v46 = vrot.slane %v3307_v20, 4  ;;  %v3328_v47 = vshrl.u32 %v6241_v38, 16  ;;  %v2557_v61 = vpack.c.b16 %v2535_v9, %v2534_v26  ;;  %v3812_v9 = vrot.slane %v6229_v59, 5 }
 0x1f5   : > { %v2303_v43 = vpop.f32.mrf.mxu0  ;;  %v3303_v58 = vsel %vm5220_vm3, %v3298_v60, %v6226_v28  ;;  %v6259_v56 = vrot.slane %v3324_v0, 5  ;;  %v6264_v28 = vld [vmem:[%s5208_s15 + $0x98] sm:$0x1]  ;;  %v4917_v60 = vld [vmem:[%s5208_s15 + $0x84] sm:$0xff] }
 0x1f6   : > { %v1649_v11 = vpop.f32.mrf.mxu3  ;;  %4750 = vmatmul.msk.bf16.gmra.mxu2 %vm647_vm4, %v4916_v7  ;;  %v2626_v6 = vpop.f32.mrf.mxu1  ;;  %v3318_v7 = vshll.u32 %v4788_v33, 16  ;;  %v3334_v59 = vshll.u32 %v6264_v28, 16 }
 0x1f7   : > { %v1683_v17 = vadd.f32 %v1649_v11, %v1393_v62  ;;  %v2705_v48 = vadd.f32 %v2626_v6, %v5686_v42  ;;  %v4832_v62 = vld [vmem:[%s5208_s15 + $0x84] sm:$0xe]  ;;  %v3315_v42 = vshrl.u32 %v4788_v33, 16  ;;  %v2474_v6 = vrot.slane %v5021_v25, 5 }
 0x1f8   : > { %v4848_v11 = vrot.slane %v4832_v62, 9  ;;  %v3320_v20 = vrot.slane %v3318_v7, 5  ;;  %v3330_v33 = vrot.slane %v3328_v47, 4  ;;  %v5022_v62 = vld [vmem:[%s5208_s15 + $0x8c] sm:$0x1] }
 0x1f9   : > { %v2914_v14 = vpop.f32.mrf.mxu2  ;;  %v6247_v10 = vadd.f32 %v2303_v43, %v1683_v17  ;;  %v3313_v43 = vsel %vm5220_vm3, %v3308_v46, %v3312_v55  ;;  %v4606_v17 = vld [vmem:[%s5208_s15 + $0x84] sm:$0xe]  ;;  %v2476_v55 = vrot.slane %v2474_v6, 4 }
 0x1fa   : > { %v2994_v49 = vadd.f32 %v2914_v14, %v2704_v45  ;;  %v3809_v45 = vrot.slane %v6201_v34, 5  ;;  %v3317_v34 = vrot.slane %v3315_v42, 4  ;;  %v4622_v46 = vrot.slane %v4606_v17, 9  ;;  %v4791_v17 = vld [vmem:[%s5208_s15 + $0x9c] sm:$0xf] }
 0x1fb   : > { %4815 = vmatmul.msk.bf16.gmra.mxu3 %vm647_vm4, %v3500_v35  ;;  %6548 = vst [vmem:[#allocation7_spill] sm:$0xff] %v6247_v10  ;;  %v3478_v42 = vunpack.c.l.b16 %v3303_v58  ;;  %v3479_v7 = vunpack.c.l.b16 %v3313_v43  ;;  %v3816_v10 = vrot.slane %v6241_v38, 5 }
 0x1fc   : > { %v3810_v0 = vsel %vm5394_vm7, %v4848_v11, %v3809_v45  ;;  %v3321_v47 = vor.u32 %v3320_v20, %v3317_v34  ;;  %v2475_v25 = vsel %vm5394_vm7, %v4622_v46, %v2474_v6  ;;  %v6282_v34 = vld [vmem:[%s5208_s15 + $0xa0] sm:$0xf]  ;;  %v4833_v46 = vld [vmem:[%s5208_s15 + $0x90] sm:$0xe] }
 0x1fd   : > { %v3966_v32 = vpop.f32.mrf.mxu0  ;;  %v3876_v58 = vunpack.c.l.b16 %v3810_v0 }
 0x1fe   : > { %v3568_v41 = vpop.f32.mrf.mxu3  ;;  %v2629_v35 = vpop.f32.mrf.mxu1 }
 0x1ff   : > { %v3648_v12 = vadd.f32 %v3568_v41, %v2994_v49  ;;  %v2706_v16 = vadd.f32 %v2629_v35, %v5699_v15  ;;  %v3811_v15 = vrot.slane %v3809_v45, 4 }
 0x200   : > { %4864 = vmatmul.msk.bf16.gmra.mxu0 %vm647_vm4, %v3898_v24  ;;  %v2477_v24 = vrot.slane %v5022_v62, 5  ;;  %v2536_v62 = vunpack.c.l.b16 %v2475_v25 }
 0x201   : > { %v4046_v14 = vadd.f32 %v3966_v32, %v3648_v12  ;;  %v2916_v26 = vpop.f32.mrf.mxu2  ;;  %4638 = vmatmul.msk.bf16.gmra.mxu1 %vm647_vm4, %v2557_v61  ;;  %v3331_v32 = vor.u32 %v3330_v33, %v6259_v56  ;;  %v3501_v12 = vpack.c.b16 %v3479_v7, %v3478_v42  ;;  %v3322_v33 = vrot.slane %v3321_v47, 4 }
 0x202   : > { %v2995_v49 = vadd.f32 %v2916_v26, %v2705_v48  ;;  %v3813_v48 = vsel %vm5394_vm7, %v3811_v15, %v3812_v9  ;;  %v2478_v45 = vsel %vm5394_vm7, %v2476_v55, %v2477_v24  ;;  %v3336_v15 = vrot.slane %v3334_v59, 5 }
 0x203   : > { %v3877_v20 = vunpack.c.l.b16 %v3813_v48  ;;  %v3332_v26 = vrot.slane %v3331_v32, 4  ;;  %v2537_v6 = vunpack.c.l.b16 %v2478_v45  ;;  %v3342_v24 = vshll.u32 %v4791_v17, 16 }
 0x204   : > { %v4116_v42 = vmul.f32 %v4046_v14, %v4046_v14  ;;  %v3352_v47 = vshrl.u32 %v6282_v34, 16  ;;  %v4849_v59 = vrot.slane %v4833_v46, 9  ;;  %v5024_v46 = vld [vmem:[%s5208_s15 + $0x98] sm:$0x1] }
 0x205   : > { %v3968_v61 = vpop.f32.mrf.mxu0  ;;  %v3899_v32 = vpack.c.b16 %v3877_v20, %v3876_v58  ;;  %v4607_v58 = vld [vmem:[%s5208_s15 + $0x90] sm:$0xe] }
 0x206   : > { %v3570_v41 = vpop.f32.mrf.mxu3  ;;  %4751 = vmatmul.msk.bf16.gmra.mxu2 %vm647_vm4, %v4917_v60  ;;  %v2631_v35 = vpop.f32.mrf.mxu1 }
 0x207   : > { %v3649_v11 = vadd.f32 %v3570_v41, %v2995_v49  ;;  %v2707_v43 = vadd.f32 %v2631_v35, %v5712_v13  ;;  %v3339_v49 = vshrl.u32 %v4791_v17, 16  ;;  %v3348_v13 = vshll.u32 %v6282_v34, 16  ;;  %v5023_v35 = vld [vmem:[%s5208_s15 + $0x94] sm:$0xf] }
 0x208   : > { %v3327_v41 = vsel %vm5220_vm3, %v3322_v33, %v6259_v56  ;;  %v2481_v25 = vrot.slane %v5023_v35, 5  ;;  %v3354_v56 = vrot.slane %v3352_v47, 4 }
 0x209   : > { %v4047_v9 = vadd.f32 %v3968_v61, %v3649_v11  ;;  %v2919_v60 = vpop.f32.mrf.mxu2  ;;  %v3819_v61 = vrot.slane %v6264_v28, 5  ;;  %v3337_v11 = vsel %vm5220_vm3, %v3332_v26, %v3336_v15  ;;  %v3341_v17 = vrot.slane %v3339_v49, 4  ;;  %v6304_v49 = vld [vmem:[%s5208_s15 + $0xa4] sm:$0x1] }
 0x20a   : > { %v2996_v55 = vadd.f32 %v2919_v60, %v2706_v16  ;;  %v2558_v16 = vpack.c.b16 %v2537_v6, %v2536_v62  ;;  %v3344_v28 = vrot.slane %v3342_v24, 5  ;;  %v6298_v60 = vrot.slane %v3348_v13, 5 }
 0x20b   : > { %v4078_v7 = vadd.f32 %v4047_v9, %v4046_v14  ;;  %v4117_v0 = vmul.f32 %v4047_v9, %v4047_v9  ;;  %4816 = vmatmul.msk.bf16.gmra.mxu3 %vm647_vm4, %v3501_v12  ;;  %v3818_v12 = vrot.slane %v3816_v10, 4  ;;  %v3480_v33 = vunpack.c.l.b16 %v3327_v41 }
 0x20c   : > { %v4623_v26 = vrot.slane %v4607_v58, 9  ;;  %v2483_v15 = vrot.slane %v2481_v25, 4  ;;  %v3358_v41 = vshll.u32 %v6304_v49, 16 }
 0x20d   : > { %v4148_v48 = vadd.f32 %v4117_v0, %v4116_v42  ;;  %v3971_v38 = vpop.f32.mrf.mxu0  ;;  %v2484_v42 = vrot.slane %v5024_v46, 5  ;;  %v3481_v0 = vunpack.c.l.b16 %v3337_v11  ;;  %v3820_v13 = vsel %vm5394_vm7, %v3818_v12, %v3819_v61 }
 0x20e   : > { %v3573_v14 = vpop.f32.mrf.mxu3  ;;  %v2634_v45 = vpop.f32.mrf.mxu1  ;;  %v3879_v61 = vunpack.c.l.b16 %v3820_v13  ;;  %v6329_v13 = vld [vmem:[%s5208_s15 + $0xac] sm:$0xf] }
 0x20f   : > { %v3650_v20 = vadd.f32 %v3573_v14, %v2996_v55  ;;  %v2708_v9 = vadd.f32 %v2634_v45, %v5725_v57  ;;  %v4918_v55 = vld [vmem:[%s5208_s15 + $0x90] sm:$0xff]  ;;  %v3817_v57 = vsel %vm5394_vm7, %v4849_v59, %v3816_v10  ;;  %v2485_v45 = vsel %vm5394_vm7, %v2483_v15, %v2484_v42 }
 0x210   : > { %4865 = vmatmul.msk.bf16.gmra.mxu0 %vm647_vm4, %v3899_v32  ;;  %v3502_v59 = vpack.c.b16 %v3481_v0, %v3480_v33  ;;  %v4794_v33 = vld [vmem:[%s5208_s15 + $0xa8] sm:$0xf] }
 0x211   : > { %v4048_v62 = vadd.f32 %v3971_v38, %v3650_v20  ;;  %v2921_v6 = vpop.f32.mrf.mxu2  ;;  %4639 = vmatmul.msk.bf16.gmra.mxu1 %vm647_vm4, %v2558_v16  ;;  %v3345_v38 = vor.u32 %v3344_v28, %v3341_v17  ;;  %v3355_v16 = vor.u32 %v3354_v56, %v6298_v60  ;;  %v2539_v20 = vunpack.c.l.b16 %v2485_v45 }
 0x212   : > { %v2997_v24 = vadd.f32 %v2921_v6, %v2707_v43  ;;  %v2482_v43 = vsel %vm5394_vm7, %v4623_v26, %v2481_v25  ;;  %v3360_v56 = vrot.slane %v3358_v41, 5  ;;  %v4834_v25 = vld [vmem:[%s5208_s15 + $0x9c] sm:$0xe] }
 0x213   : > { %v4079_v47 = vadd.f32 %v4078_v7, %v4048_v62  ;;  %v4118_v32 = vmul.f32 %v4048_v62, %v4048_v62  ;;  %v3878_v7 = vunpack.c.l.b16 %v3817_v57  ;;  %v3356_v17 = vrot.slane %v3355_v16, 4 }
 0x214   : > { %v2538_v28 = vunpack.c.l.b16 %v2482_v43  ;;  %v3823_v62 = vrot.slane %v6282_v34, 5  ;;  %v3366_v16 = vshll.u32 %v4794_v33, 16  ;;  %v5025_v43 = vld [vmem:[%s5208_s15 + $0xa0] sm:$0xf] }
 0x215   : > { %v4149_v35 = vadd.f32 %v4148_v48, %v4118_v32  ;;  %v3973_v14 = vpop.f32.mrf.mxu0  ;;  %v3346_v48 = vrot.slane %v3345_v38, 4  ;;  %v3361_v34 = vsel %vm5220_vm3, %v3356_v17, %v3360_v56  ;;  %v3826_v32 = vrot.slane %v6304_v49, 5  ;;  %v4919_v56 = vld [vmem:[%s5208_s15 + $0x9c] sm:$0xff] }
 0x216   : > { %v3575_v10 = vpop.f32.mrf.mxu3  ;;  %4752 = vmatmul.msk.bf16.gmra.mxu2 %vm647_vm4, %v4918_v55  ;;  %v2636_v11 = vpop.f32.mrf.mxu1  ;;  %v2559_v55 = vpack.c.b16 %v2539_v20, %v2538_v28  ;;  %v3825_v57 = vrot.slane %v3823_v62, 4  ;;  %v3363_v38 = vshrl.u32 %v4794_v33, 16  ;;  %v2488_v45 = vrot.slane %v5025_v43, 5 }
 0x217   : > { %v3651_v12 = vadd.f32 %v3575_v10, %v2997_v24  ;;  %v2709_v58 = vadd.f32 %v2636_v11, %v5738_v54  ;;  %v3900_v24 = vpack.c.b16 %v3879_v61, %v3878_v7  ;;  %v4850_v54 = vrot.slane %v4834_v25, 9 }
 0x218   : > { %v3351_v0 = vsel %vm5220_vm3, %v3346_v48, %v6298_v60  ;;  %v3372_v7 = vshll.u32 %v6329_v13, 16  ;;  %v3376_v61 = vshrl.u32 %v6329_v13, 16  ;;  %v3483_v49 = vunpack.c.l.b16 %v3361_v34 }
 0x219   : > { %v4049_v6 = vadd.f32 %v3973_v14, %v3651_v12  ;;  %v2924_v26 = vpop.f32.mrf.mxu2  ;;  %v3824_v11 = vsel %vm5394_vm7, %v4850_v54, %v3823_v62  ;;  %v3365_v17 = vrot.slane %v3363_v38, 4  ;;  %v3368_v28 = vrot.slane %v3366_v16, 5  ;;  %v6348_v54 = vld [vmem:[%s5208_s15 + $0xb0] sm:$0x1] }
 0x21a   : > { %v2998_v15 = vadd.f32 %v2924_v26, %v2708_v9  ;;  %v5026_v26 = vld [vmem:[%s5208_s15 + $0xa4] sm:$0x1]  ;;  %v3378_v62 = vrot.slane %v3376_v61, 4  ;;  %v3382_v43 = vshll.u32 %v6348_v54, 16 }
 0x21b   : > { %v4080_v46 = vadd.f32 %v4079_v47, %v4049_v6  ;;  %v4119_v42 = vmul.f32 %v4049_v6, %v4049_v6  ;;  %4817 = vmatmul.msk.bf16.gmra.mxu3 %vm647_vm4, %v3502_v59  ;;  %v4608_v59 = vld [vmem:[%s5208_s15 + $0x9c] sm:$0xe]  ;;  %v2490_v6 = vrot.slane %v2488_v45, 4  ;;  %v3369_v16 = vor.u32 %v3368_v28, %v3365_v17  ;;  %v4835_v28 = vld [vmem:[%s5208_s15 + $0xa8] sm:$0xe] }
 0x21c   : > { %v4624_v25 = vrot.slane %v4608_v59, 9  ;;  %v3384_v17 = vrot.slane %v3382_v43, 5 }
 0x21d   : > { %v4150_v9 = vadd.f32 %v4149_v35, %v4119_v42  ;;  %v3976_v47 = vpop.f32.mrf.mxu0  ;;  %v3482_v35 = vunpack.c.l.b16 %v3351_v0 }
 0x21e   : > { %v3578_v41 = vpop.f32.mrf.mxu3  ;;  %v2639_v14 = vpop.f32.mrf.mxu1 }
 0x21f   : > { %v3652_v10 = vadd.f32 %v3578_v41, %v2998_v15  ;;  %v2710_v60 = vadd.f32 %v2639_v14, %v5750_v31  ;;  %v3827_v31 = vsel %vm5394_vm7, %v3825_v57, %v3826_v32  ;;  %v2491_v15 = vrot.slane %v5026_v26, 5 }
 0x220   : > { %4866 = vmatmul.msk.bf16.gmra.mxu0 %vm647_vm4, %v3900_v24  ;;  %v6345_v24 = vrot.slane %v3372_v7, 5  ;;  %v3503_v34 = vpack.c.b16 %v3483_v49, %v3482_v35  ;;  %v4797_v35 = vld [vmem:[%s5208_s15 + $0xb4] sm:$0xf]  ;;  %v6360_v49 = vld [vmem:[%s5208_s15 + $0xb8] sm:$0xf] }
 0x221   : > { %v4050_v12 = vadd.f32 %v3976_v47, %v3652_v10  ;;  %v2926_v48 = vpop.f32.mrf.mxu2  ;;  %4640 = vmatmul.msk.bf16.gmra.mxu1 %vm647_vm4, %v2559_v55  ;;  %v3880_v47 = vunpack.c.l.b16 %v3824_v11  ;;  %v2492_v38 = vsel %vm5394_vm7, %v2490_v6, %v2491_v15  ;;  %v3400_v6 = vshrl.u32 %v6360_v49, 16 }
 0x222   : > { %v2999_v20 = vadd.f32 %v2926_v48, %v2709_v58  ;;  %v3881_v58 = vunpack.c.l.b16 %v3827_v31  ;;  %v3379_v14 = vor.u32 %v3378_v62, %v6345_v24  ;;  %v2541_v61 = vunpack.c.l.b16 %v2492_v38 }
 0x223   : > { %v4081_v33 = vadd.f32 %v4080_v46, %v4050_v12  ;;  %v4120_v42 = vmul.f32 %v4050_v12, %v4050_v12  ;;  %v2489_v46 = vsel %vm5394_vm7, %v4624_v25, %v2488_v45  ;;  %v3370_v12 = vrot.slane %v3369_v16, 4 }
 0x224   : > { %v2540_v7 = vunpack.c.l.b16 %v2489_v46  ;;  %v3901_v45 = vpack.c.b16 %v3881_v58, %v3880_v47  ;;  %v3396_v25 = vshll.u32 %v6360_v49, 16  ;;  %v5027_v47 = vld [vmem:[%s5208_s15 + $0xac] sm:$0xf]  ;;  %v4609_v46 = vld [vmem:[%s5208_s15 + $0xa8] sm:$0xe] }
 0x225   : > { %v4151_v0 = vadd.f32 %v4150_v9, %v4120_v42  ;;  %v3978_v55 = vpop.f32.mrf.mxu0 }
 0x226   : > { %v3580_v57 = vpop.f32.mrf.mxu3  ;;  %4753 = vmatmul.msk.bf16.gmra.mxu2 %vm647_vm4, %v4919_v56  ;;  %v2641_v32 = vpop.f32.mrf.mxu1  ;;  %v3390_v56 = vshll.u32 %v4797_v35, 16  ;;  %v2560_v42 = vpack.c.b16 %v2541_v61, %v2540_v7  ;;  %v6376_v16 = vrot.slane %v3396_v25, 5  ;;  %v4920_v7 = vld [vmem:[%s5208_s15 + $0xa8] sm:$0xff]  ;;  %v4625_v61 = vrot.slane %v4609_v46, 9 }
 0x227   : > { %v3653_v41 = vadd.f32 %v3580_v57, %v2999_v20  ;;  %v2711_v9 = vadd.f32 %v2641_v32, %v5763_v44  ;;  %v3380_v44 = vrot.slane %v3379_v14, 4  ;;  %v3387_v20 = vshrl.u32 %v4797_v35, 16 }
 0x228   : > { %v3375_v32 = vsel %vm5220_vm3, %v3370_v12, %v6345_v24  ;;  %v3392_v38 = vrot.slane %v3390_v56, 5  ;;  %v6381_v24 = vld [vmem:[%s5208_s15 + $0xbc] sm:$0x1] }
 0x229   : > { %v4051_v10 = vadd.f32 %v3978_v55, %v3653_v41  ;;  %v2929_v59 = vpop.f32.mrf.mxu2  ;;  %v4851_v55 = vrot.slane %v4835_v28, 9  ;;  %v3402_v41 = vrot.slane %v3400_v6, 4 }
 0x22a   : > { %v3000_v11 = vadd.f32 %v2929_v59, %v2710_v60  ;;  %v3830_v60 = vrot.slane %v6329_v13, 5  ;;  %v3389_v13 = vrot.slane %v3387_v20, 4 }
 0x22b   : > { %v4082_v48 = vadd.f32 %v4081_v33, %v4051_v10  ;;  %v4121_v31 = vmul.f32 %v4051_v10, %v4051_v10  ;;  %4818 = vmatmul.msk.bf16.gmra.mxu3 %vm647_vm4, %v3503_v34  ;;  %v2495_v34 = vrot.slane %v5027_v47, 5  ;;  %v3833_v10 = vrot.slane %v6348_v54, 5 }
 0x22c   : > { %v3831_v28 = vsel %vm5394_vm7, %v4851_v55, %v3830_v60  ;;  %v3393_v20 = vor.u32 %v3392_v38, %v3389_v13  ;;  %v3403_v56 = vor.u32 %v3402_v41, %v6376_v16  ;;  %v3406_v54 = vshll.u32 %v6381_v24, 16 }
 0x22d   : > { %v4152_v26 = vadd.f32 %v4151_v0, %v4121_v31  ;;  %v3981_v15 = vpop.f32.mrf.mxu0  ;;  %v3385_v0 = vsel %vm5220_vm3, %v3380_v44, %v3384_v17  ;;  %v2497_v35 = vrot.slane %v2495_v34, 4  ;;  %v3484_v44 = vunpack.c.l.b16 %v3375_v32 }
 0x22e   : > { %v3583_v33 = vpop.f32.mrf.mxu3  ;;  %v2644_v62 = vpop.f32.mrf.mxu1  ;;  %v3485_v17 = vunpack.c.l.b16 %v3385_v0  ;;  %v3882_v55 = vunpack.c.l.b16 %v3831_v28  ;;  %v3404_v32 = vrot.slane %v3403_v56, 4  ;;  %v3408_v0 = vrot.slane %v3406_v54, 5  ;;  %v5029_v28 = vld [vmem:[%s5208_s15 + $0xb8] sm:$0xf]  ;;  %v4610_v54 = vld [vmem:[%s5208_s15 + $0xb4] sm:$0xe] }
 0x22f   : > { %v3654_v57 = vadd.f32 %v3583_v33, %v3000_v11  ;;  %v2712_v58 = vadd.f32 %v2644_v62, %v5777_v30  ;;  %v3832_v30 = vrot.slane %v3830_v60, 4  ;;  %v5028_v11 = vld [vmem:[%s5208_s15 + $0xb0] sm:$0x1] }
 0x230   : > { %4867 = vmatmul.msk.bf16.gmra.mxu0 %vm647_vm4, %v3901_v45  ;;  %v2498_v45 = vrot.slane %v5028_v11, 5  ;;  %v3504_v62 = vpack.c.b16 %v3485_v17, %v3484_v44 }
 0x231   : > { %v4052_v14 = vadd.f32 %v3981_v15, %v3654_v57  ;;  %v2931_v43 = vpop.f32.mrf.mxu2  ;;  %4641 = vmatmul.msk.bf16.gmra.mxu1 %vm647_vm4, %v2560_v42  ;;  %v2496_v42 = vsel %vm5394_vm7, %v4625_v61, %v2495_v34  ;;  %v3394_v57 = vrot.slane %v3393_v20, 4  ;;  %v4800_v34 = vld [vmem:[%s5208_s15 + $0xc0] sm:$0xf]  ;;  %v6406_v61 = vld [vmem:[%s5208_s15 + $0xc4] sm:$0xf]  ;;  %v2502_v20 = vrot.slane %v5029_v28, 5 }
 0x232   : > { %v3001_v59 = vadd.f32 %v2931_v43, %v2711_v9  ;;  %v3834_v9 = vsel %vm5394_vm7, %v3832_v30, %v3833_v10  ;;  %v2499_v60 = vsel %vm5394_vm7, %v2497_v35, %v2498_v45  ;;  %v2542_v38 = vunpack.c.l.b16 %v2496_v42  ;;  %v4836_v45 = vld [vmem:[%s5208_s15 + $0xb4] sm:$0xe] }
 0x233   : > { %v4083_v12 = vadd.f32 %v4082_v48, %v4052_v14  ;;  %v4122_v31 = vmul.f32 %v4052_v14, %v4052_v14  ;;  %v3883_v47 = vunpack.c.l.b16 %v3834_v9  ;;  %v2543_v41 = vunpack.c.l.b16 %v2499_v60 }
 0x235   : > { %v4153_v25 = vadd.f32 %v4152_v26, %v4122_v31  ;;  %v3983_v6 = vpop.f32.mrf.mxu0  ;;  %v3902_v10 = vpack.c.b16 %v3883_v47, %v3882_v55  ;;  %v2561_v11 = vpack.c.b16 %v2543_v41, %v2542_v38  ;;  %v3414_v31 = vshll.u32 %v4800_v34, 16  ;;  %v4921_v47 = vld [vmem:[%s5208_s15 + $0xb4] sm:$0xff] }
 0x236   : > { %v3585_v15 = vpop.f32.mrf.mxu3  ;;  %4754 = vmatmul.msk.bf16.gmra.mxu2 %vm647_vm4, %v4920_v7  ;;  %v2646_v48 = vpop.f32.mrf.mxu1  ;;  %v3837_v7 = vrot.slane %v6360_v49, 5  ;;  %v3424_v49 = vshrl.u32 %v6406_v61, 16 }
 0x237   : > { %v3655_v33 = vadd.f32 %v3585_v15, %v3001_v59  ;;  %v2713_v26 = vadd.f32 %v2646_v48, %v5790_v51  ;;  %v3399_v51 = vsel %vm5220_vm3, %v3394_v57, %v6376_v16  ;;  %v3409_v59 = vsel %vm5220_vm3, %v3404_v32, %v3408_v0  ;;  %v5030_v0 = vld [vmem:[%s5208_s15 + $0xbc] sm:$0x1] }
 0x238   : > { %v3487_v9 = vunpack.c.l.b16 %v3409_v59  ;;  %v4852_v15 = vrot.slane %v4836_v45, 9  ;;  %v3839_v48 = vrot.slane %v3837_v7, 4  ;;  %v4626_v57 = vrot.slane %v4610_v54, 9 }
 0x239   : > { %v4053_v46 = vadd.f32 %v3983_v6, %v3655_v33  ;;  %v2934_v13 = vpop.f32.mrf.mxu2  ;;  %v3420_v6 = vshll.u32 %v6406_v61, 16  ;;  %v2504_v32 = vrot.slane %v2502_v20, 4 }
 0x23a   : > { %v3002_v14 = vadd.f32 %v2934_v13, %v2712_v58 }
 0x23b   : > { %v4084_v43 = vadd.f32 %v4083_v12, %v4053_v46  ;;  %v4123_v30 = vmul.f32 %v4053_v46, %v4053_v46  ;;  %4819 = vmatmul.msk.bf16.gmra.mxu3 %vm647_vm4, %v3504_v62  ;;  %v3411_v12 = vshrl.u32 %v4800_v34, 16  ;;  %v3416_v62 = vrot.slane %v3414_v31, 5  ;;  %v6420_v34 = vld [vmem:[%s5208_s15 + $0xc8] sm:$0x1] }
 0x23c   : > { %v2505_v46 = vrot.slane %v5030_v0, 5  ;;  %v3422_v41 = vrot.slane %v3420_v6, 5 }
 0x23d   : > { %v4154_v58 = vadd.f32 %v4153_v25, %v4123_v30  ;;  %v3986_v35 = vpop.f32.mrf.mxu0  ;;  %v3486_v25 = vunpack.c.l.b16 %v3399_v51  ;;  %v3413_v33 = vrot.slane %v3411_v12, 4  ;;  %v3838_v51 = vsel %vm5394_vm7, %v4852_v15, %v3837_v7  ;;  %v6549_v12 = vld [vmem:[#allocation5_spill] sm:$0xff] }
 0x23e   : > { %v3588_v44 = vpop.f32.mrf.mxu3  ;;  %v2649_v17 = vpop.f32.mrf.mxu1  ;;  %v3430_v7 = vshll.u32 %v6420_v34, 16 }
 0x23f   : > { %v3656_v56 = vadd.f32 %v3588_v44, %v3002_v14  ;;  %v2714_v16 = vadd.f32 %v2649_v17, %v5806_v1  ;;  %v3840_v1 = vrot.slane %v6381_v24, 5  ;;  %v3426_v14 = vrot.slane %v3424_v49, 4 }
 0x240   : > { %4868 = vmatmul.msk.bf16.gmra.mxu0 %vm647_vm4, %v3902_v10  ;;  %v3505_v59 = vpack.c.b16 %v3487_v9, %v3486_v25  ;;  %v3417_v45 = vor.u32 %v3416_v62, %v3413_v33  ;;  %v3884_v17 = vunpack.c.l.b16 %v3838_v51 }
 0x241   : > { %v4054_v42 = vadd.f32 %v3986_v35, %v3656_v56  ;;  %v2936_v60 = vpop.f32.mrf.mxu2  ;;  %4642 = vmatmul.msk.bf16.gmra.mxu1 %vm647_vm4, %v2561_v11  ;;  %v3841_v24 = vsel %vm5394_vm7, %v3839_v48, %v3840_v1  ;;  %v2506_v11 = vsel %vm5394_vm7, %v2504_v32, %v2505_v46  ;;  %v3427_v44 = vor.u32 %v3426_v14, %v3422_v41  ;;  %v4837_v1 = vld [vmem:[%s5208_s15 + $0xc0] sm:$0xe]  ;;  %v6438_v32 = vld [vmem:[%s5208_s15 + $0xd0] sm:$0xf] }
 0x242   : > { %v3003_v55 = vadd.f32 %v2936_v60, %v2713_v26  ;;  %v3885_v28 = vunpack.c.l.b16 %v3841_v24  ;;  %v2545_v49 = vunpack.c.l.b16 %v2506_v11  ;;  %v3418_v25 = vrot.slane %v3417_v45, 4  ;;  %v4611_v24 = vld [vmem:[%s5208_s15 + $0xc0] sm:$0xe] }
 0x243   : > { %v4085_v13 = vadd.f32 %v4084_v43, %v4054_v42  ;;  %v4124_v38 = vmul.f32 %v4054_v42, %v4054_v42  ;;  %v2503_v43 = vsel %vm5394_vm7, %v4626_v57, %v2502_v20  ;;  %v3428_v48 = vrot.slane %v3427_v44, 4  ;;  %v4803_v57 = vld [vmem:[%s5208_s15 + $0xcc] sm:$0xf] }
 0x244   : > { %v2544_v6 = vunpack.c.l.b16 %v2503_v43  ;;  %v3432_v42 = vrot.slane %v3430_v7, 5  ;;  %v3903_v60 = vpack.c.b16 %v3885_v28, %v3884_v17  ;;  %v3423_v46 = vsel %vm5220_vm3, %v3418_v25, %v3422_v41  ;;  %v5032_v17 = vld [vmem:[%s5208_s15 + $0xc8] sm:$0x1] }
 0x245   : > { %v4155_v30 = vadd.f32 %v4154_v58, %v4124_v38  ;;  %v3988_v10 = vpop.f32.mrf.mxu0  ;;  %v4853_v51 = vrot.slane %v4837_v1, 9  ;;  %v3448_v41 = vshrl.u32 %v6438_v32, 16  ;;  %v3847_v45 = vrot.slane %v6420_v34, 5 }
 0x246   : > { %v3590_v26 = vpop.f32.mrf.mxu3  ;;  %4755 = vmatmul.msk.bf16.gmra.mxu2 %vm647_vm4, %v4921_v47  ;;  %v2651_v35 = vpop.f32.mrf.mxu1  ;;  %v3844_v47 = vrot.slane %v6406_v61, 5  ;;  %v3435_v61 = vshrl.u32 %v4803_v57, 16  ;;  %v4627_v44 = vrot.slane %v4611_v24, 9  ;;  %v2512_v28 = vrot.slane %v5032_v17, 5 }
 0x247   : > { %v3657_v58 = vadd.f32 %v3590_v26, %v3003_v55  ;;  %v2715_v31 = vadd.f32 %v2651_v35, %v6549_v12  ;;  %v2562_v55 = vpack.c.b16 %v2545_v49, %v2544_v6  ;;  %v3438_v26 = vshll.u32 %v4803_v57, 16  ;;  %v4922_v12 = vld [vmem:[%s5208_s15 + $0xc0] sm:$0xff] }
 0x248   : > { %v3846_v11 = vrot.slane %v3844_v47, 4  ;;  %v3845_v49 = vsel %vm5394_vm7, %v4853_v51, %v3844_v47 }
 0x249   : > { %v4055_v56 = vadd.f32 %v3988_v10, %v3657_v58  ;;  %v2939_v54 = vpop.f32.mrf.mxu2  ;;  %v3440_v25 = vrot.slane %v3438_v26, 5 }
 0x24a   : > { %v3004_v20 = vadd.f32 %v2939_v54, %v2714_v16  ;;  %v3848_v34 = vsel %vm5394_vm7, %v3846_v11, %v3847_v45 }
 0x24b   : > { %v4086_v9 = vadd.f32 %v4085_v13, %v4055_v56  ;;  %v4125_v15 = vmul.f32 %v4055_v56, %v4055_v56  ;;  %4820 = vmatmul.msk.bf16.gmra.mxu3 %vm647_vm4, %v3505_v59  ;;  %v5031_v13 = vld [vmem:[%s5208_s15 + $0xc4] sm:$0xf]  ;;  %v3444_v59 = vshll.u32 %v6438_v32, 16 }
 0x24c   : > { %v2509_v38 = vrot.slane %v5031_v13, 5 }
 0x24d   : > { %v4156_v33 = vadd.f32 %v4155_v30, %v4125_v15  ;;  %v3991_v62 = vpop.f32.mrf.mxu0  ;;  %v3433_v30 = vsel %vm5220_vm3, %v3428_v48, %v3432_v42  ;;  %v3446_v15 = vrot.slane %v3444_v59, 5  ;;  %v3450_v48 = vrot.slane %v3448_v41, 4 }
 0x24e   : > { %v3593_v16 = vpop.f32.mrf.mxu3  ;;  %v2654_v0 = vpop.f32.mrf.mxu1  ;;  %v2511_v7 = vrot.slane %v2509_v38, 4  ;;  %v3489_v6 = vunpack.c.l.b16 %v3433_v30 }
 0x24f   : > { %v3658_v14 = vadd.f32 %v3593_v16, %v3004_v20  ;;  %v2716_v10 = vadd.f32 %v2654_v0, %v5842_v52  ;;  %v3488_v52 = vunpack.c.l.b16 %v3423_v46  ;;  %v3437_v20 = vrot.slane %v3435_v61, 4 }
 0x250   : > { %4869 = vmatmul.msk.bf16.gmra.mxu0 %vm647_vm4, %v3903_v60  ;;  %v3886_v16 = vunpack.c.l.b16 %v3845_v49  ;;  %v3887_v0 = vunpack.c.l.b16 %v3848_v34  ;;  %v3451_v13 = vor.u32 %v3450_v48, %v3446_v15  ;;  %v4923_v48 = vld [vmem:[%s5208_s15 + $0xcc] sm:$0xff] }
 0x251   : > { %v4056_v35 = vadd.f32 %v3991_v62, %v3658_v14  ;;  %v2941_v43 = vpop.f32.mrf.mxu2  ;;  %4643 = vmatmul.msk.bf16.gmra.mxu1 %vm647_vm4, %v2562_v55  ;;  %v2513_v55 = vsel %vm5394_vm7, %v2511_v7, %v2512_v28  ;;  %v3506_v57 = vpack.c.b16 %v3489_v6, %v3488_v52  ;;  %v3441_v46 = vor.u32 %v3440_v25, %v3437_v20  ;;  %v4838_v7 = vld [vmem:[%s5208_s15 + $0xcc] sm:$0xe] }
 0x252   : > { %v3005_v58 = vadd.f32 %v2941_v43, %v2715_v31  ;;  %v4805_v31 = vld [vmem:[%s5208_s15 + $0xd4] sm:$0x1]  ;;  %v2547_v61 = vunpack.c.l.b16 %v2513_v55  ;;  %v3904_v41 = vpack.c.b16 %v3887_v0, %v3886_v16  ;;  %v3452_v43 = vrot.slane %v3451_v13, 4  ;;  %s5047_s15 = sshra.s32 %s4203_s8, 4  ;;  %s5048_s15 = int_to_ptr.hbm [resolvable:$true] %s5047_s15 }
 0x253   : > { %v4087_v56 = vadd.f32 %v4086_v9, %v4056_v35  ;;  %v4126_v54 = vmul.f32 %v4056_v35, %v4056_v35  ;;  %v2510_v9 = vsel %vm5394_vm7, %v4627_v44, %v2509_v38  ;;  %v3454_v14 = vshll.u32 %v4805_v31, 16  ;;  %s5049_s16 = scalar_lea.hbm %s5048_s15, 2  ;;  %p5054_p1 = scmp.lt.s32.totalorder %s5048_s15, %s6539_s2 }
 0x254   : > { %v2546_v24 = vunpack.c.l.b16 %v2510_v9  ;;  %v3442_v35 = vrot.slane %v3441_v46, 4  ;;  %v3854_v20 = vrot.slane %v4805_v31, 5  ;;  %p5050_p12 = scmp.ne.s32.totalorder %s5048_s15, %s5049_s16  ;;  %p5055_p2 = scmp.lt.s32.totalorder %s5053_s23, %s5049_s16 }
 0x255   : > { %v4157_v42 = vadd.f32 %v4156_v33, %v4126_v54  ;;  %v3993_v60 = vpop.f32.mrf.mxu0  ;;  %v3456_v52 = vrot.slane %v3454_v14, 5 }
 0x256   : > { %v3595_v1 = vpop.f32.mrf.mxu3  ;;  %4756 = vmatmul.msk.bf16.gmra.mxu2 %vm647_vm4, %v4922_v12  ;;  %v2656_v62 = vpop.f32.mrf.mxu1  ;;  %v2563_v45 = vpack.c.b16 %v2547_v61, %v2546_v24  ;;  %v3447_v28 = vsel %vm5220_vm3, %v3442_v35, %v3446_v15  ;;  %p5051_p13 = pnand %p5050_p12, %p5168_p4  ;;  %p5056_p3 = por %p5055_p2, %p5054_p1 }
 0x257   : > { %v3659_v47 = vadd.f32 %v3595_v1, %v3005_v58  ;;  %v2717_v33 = vadd.f32 %v2656_v62, %v5862_v21  ;;  %v3851_v58 = vrot.slane %v6438_v32, 5  ;;  %v4854_v32 = vrot.slane %v4838_v7, 9 }
 0x258   : > { %p5052_p0 = pneg %p5051_p13 }
 0x259   : > { %v4057_v30 = vadd.f32 %v3993_v60, %v3659_v47  ;;  %v2944_v51 = vpop.f32.mrf.mxu2  ;;  %v3853_v49 = vrot.slane %v3851_v58, 4  ;;  %v3852_v15 = vsel %vm5394_vm7, %v4854_v32, %v3851_v58 }
 0x25a   : > { %v3006_v26 = vadd.f32 %v2944_v51, %v2716_v10  ;;  %p5057_p5 = pnand %p5056_p3, %p5052_p0 }
 0x25b   : > { %v4088_v59 = vadd.f32 %v4087_v56, %v4057_v30  ;;  %v4127_v38 = vmul.f32 %v4057_v30, %v4057_v30  ;;  %4821 = vmatmul.msk.bf16.gmra.mxu3 %vm647_vm4, %v3506_v57  ;;  %v3457_v56 = vsel %vm5220_vm3, %v3452_v43, %v3456_v52  ;;  %v3855_v36 = vsel %vm5394_vm7, %v3853_v49, %v3854_v20  ;;  %v6550_v57 = vld [vmem:[#allocation6_spill] sm:$0xff] }
 0x25c   : > { %v3491_v34 = vunpack.c.l.b16 %v3457_v56  ;;  %v3889_v0 = vunpack.c.l.b16 %v3855_v36 }
 0x25d   : > { %v4158_v11 = vadd.f32 %v4157_v42, %v4127_v38  ;;  %v3996_v21 = vpop.f32.mrf.mxu0 }
 0x25e   : > { %v3598_v12 = vpop.f32.mrf.mxu3  ;;  %v2659_v44 = vpop.f32.mrf.mxu1 }
 0x25f   : > { %v3660_v17 = vadd.f32 %v3598_v12, %v3006_v26  ;;  %v2718_v10 = vadd.f32 %v2659_v44, %v5881_v29  ;;  %v3490_v29 = vunpack.c.l.b16 %v3447_v28 }
 0x260   : > { %4870 = vmatmul.msk.bf16.gmra.mxu0 %vm647_vm4, %v3904_v41 }
 0x261   : > { %v4058_v54 = vadd.f32 %v3996_v21, %v3660_v17  ;;  %v2946_v6 = vpop.f32.mrf.mxu2  ;;  %4644 = vmatmul.msk.bf16.gmra.mxu1 %vm647_vm4, %v2563_v45  ;;  %v3507_v31 = vpack.c.b16 %v3491_v34, %v3490_v29 }
 0x262   : > { %v3007_v25 = vadd.f32 %v2946_v6, %v2717_v33  ;;  %v3888_v33 = vunpack.c.l.b16 %v3852_v15 }
 0x263   : > { %v4089_v42 = vadd.f32 %v4088_v59, %v4058_v54  ;;  %v4128_v60 = vmul.f32 %v4058_v54, %v4058_v54 }
 0x264   : > { %v3905_v24 = vpack.c.b16 %v3889_v0, %v3888_v33 }
 0x265   : > { %v4159_v1 = vadd.f32 %v4158_v11, %v4128_v60  ;;  %v3998_v62 = vpop.f32.mrf.mxu0 }
 0x266   : > { %v3600_v9 = vpop.f32.mrf.mxu3  ;;  %4757 = vmatmul.msk.bf16.gmra.mxu2 %vm647_vm4, %v4923_v48  ;;  %v2661_v55 = vpop.f32.mrf.mxu1 }
 0x267   : > { %v3661_v47 = vadd.f32 %v3600_v9, %v3007_v25  ;;  %v2719_v16 = vadd.f32 %v2661_v55, %v6550_v57 }
 0x269   : > { %v4059_v46 = vadd.f32 %v3998_v62, %v3661_v47  ;;  %v2949_v13 = vpop.f32.mrf.mxu2 }
 0x26a   : > { %v3008_v14 = vadd.f32 %v2949_v13, %v2718_v10 }
 0x26b   : > { %v4090_v30 = vadd.f32 %v4089_v42, %v4059_v46  ;;  %v4129_v51 = vmul.f32 %v4059_v46, %v4059_v46  ;;  %4822 = vmatmul.msk.bf16.gmra.mxu3 %vm647_vm4, %v3507_v31 }
 0x26d   : > { %v4160_v18 = vadd.f32 %v4159_v1, %v4129_v51  ;;  %v4001_v61 = vpop.f32.mrf.mxu0 }
 0x26e   : > { %v3603_v26 = vpop.f32.mrf.mxu3  ;;  %v2664_v59 = vpop.f32.mrf.mxu1 }
 0x26f   : > { %v3662_v38 = vadd.f32 %v3603_v26, %v3008_v14  ;;  %v2720_v41 = vadd.f32 %v2664_v59, %v5924_v5 }
 0x270   : > { %4871 = vmatmul.msk.bf16.gmra.mxu0 %vm647_vm4, %v3905_v24 }
 0x271   : > { %v4060_v35 = vadd.f32 %v4001_v61, %v3662_v38  ;;  %v2951_v43 = vpop.f32.mrf.mxu2 }
 0x272   : > { %v3009_v52 = vadd.f32 %v2951_v43, %v2719_v16 }
 0x273   : > { %v4091_v11 = vadd.f32 %v4090_v30, %v4060_v35  ;;  %v4130_v21 = vmul.f32 %v4060_v35, %v4060_v35 }
 0x275   : > { %v4161_v45 = vadd.f32 %v4160_v18, %v4130_v21  ;;  %v4003_v58 = vpop.f32.mrf.mxu0 }
 0x276   : > { %v3605_v12 = vpop.f32.mrf.mxu3  ;;  %v2666_v44 = vpop.f32.mrf.mxu1 }
 0x277   : > { %v3663_v7 = vadd.f32 %v3605_v12, %v3009_v52  ;;  %v2721_v17 = vadd.f32 %v2666_v44, %v5948_v22 }
 0x279   : > { %v4061_v10 = vadd.f32 %v4003_v58, %v3663_v7  ;;  %v2954_v28 = vpop.f32.mrf.mxu2 }
 0x27a   : > { %v3010_v56 = vadd.f32 %v2954_v28, %v2720_v41 }
 0x27b   : > { %v4092_v54 = vadd.f32 %v4091_v11, %v4061_v10  ;;  %v4131_v6 = vmul.f32 %v4061_v10, %v4061_v10 }
 0x27d   : > { %v4162_v5 = vadd.f32 %v4161_v45, %v4131_v6  ;;  %v4006_v32 = vpop.f32.mrf.mxu0 }
 0x27e   : > { %v3608_v49 = vpop.f32.mrf.mxu3  ;;  %v2669_v20 = vpop.f32.mrf.mxu1 }
 0x27f   : > { %v3664_v25 = vadd.f32 %v3608_v49, %v3010_v56  ;;  %v2722_v48 = vadd.f32 %v2669_v20, %v5967_v19 }
 0x281   : > { %v4062_v42 = vadd.f32 %v4006_v32, %v3664_v25  ;;  %v2956_v60 = vpop.f32.mrf.mxu2 }
 0x282   : > { %v3011_v29 = vadd.f32 %v2956_v60, %v2721_v17 }
 0x283   : > { %v4093_v34 = vadd.f32 %v4092_v54, %v4062_v42  ;;  %v4132_v1 = vmul.f32 %v4062_v42, %v4062_v42 }
 0x285   : > { %v4163_v62 = vadd.f32 %v4162_v5, %v4132_v1  ;;  %v4008_v15 = vpop.f32.mrf.mxu0 }
 0x286   : > { %v3610_v22 = vpop.f32.mrf.mxu3  ;;  %v2671_v36 = vpop.f32.mrf.mxu1 }
 0x287   : > { %v3665_v9 = vadd.f32 %v3610_v22, %v3011_v29  ;;  %v2723_v55 = vadd.f32 %v2671_v36, %v5991_v53 }
 0x289   : > { %v4063_v47 = vadd.f32 %v4008_v15, %v3665_v9  ;;  %v2959_v31 = vpop.f32.mrf.mxu2 }
 0x28a   : > { %v3012_v57 = vadd.f32 %v2959_v31, %v2722_v48 }
 0x28b   : > { %v4094_v16 = vadd.f32 %v4093_v34, %v4063_v47  ;;  %v4133_v33 = vmul.f32 %v4063_v47, %v4063_v47 }
 0x28d   : > { %v4164_v0 = vadd.f32 %v4163_v62, %v4133_v33  ;;  %v4011_v46 = vpop.f32.mrf.mxu0 }
 0x28e   : > { %v3613_v19 = vpop.f32.mrf.mxu3  ;;  %v2674_v13 = vpop.f32.mrf.mxu1 }
 0x28f   : > { %v3666_v14 = vadd.f32 %v3613_v19, %v3012_v57  ;;  %v2724_v30 = vadd.f32 %v2674_v13, %v6010_v2 }
 0x291   : > { %v4064_v51 = vadd.f32 %v4011_v46, %v3666_v14  ;;  %v2961_v24 = vpop.f32.mrf.mxu2 }
 0x292   : > { %v3013_v18 = vadd.f32 %v2961_v24, %v2723_v55 }
 0x293   : > { %v4095_v61 = vadd.f32 %v4094_v16, %v4064_v51  ;;  %v4134_v26 = vmul.f32 %v4064_v51, %v4064_v51 }
 0x295   : > { %v4165_v59 = vadd.f32 %v4164_v0, %v4134_v26  ;;  %v4013_v38 = vpop.f32.mrf.mxu0 }
 0x296   : > { %v3615_v53 = vpop.f32.mrf.mxu3  ;;  %v2676_v41 = vpop.f32.mrf.mxu1 }
 0x297   : > { %v3667_v35 = vadd.f32 %v3615_v53, %v3013_v18  ;;  %v2725_v10 = vadd.f32 %v2676_v41, %v6034_v40 }
 0x299   : > { %v4065_v43 = vadd.f32 %v4013_v38, %v3667_v35  ;;  %v2964_v52 = vpop.f32.mrf.mxu2 }
 0x29a   : > { %v3014_v11 = vadd.f32 %v2964_v52, %v2724_v30 }
 0x29b   : > { %v4096_v21 = vadd.f32 %v4095_v61, %v4065_v43  ;;  %v4135_v45 = vmul.f32 %v4065_v43, %v4065_v43 }
 0x29d   : > { %v4166_v58 = vadd.f32 %v4165_v59, %v4135_v45  ;;  %v4016_v12 = vpop.f32.mrf.mxu0 }
 0x29e   : > { %v3618_v44 = vpop.f32.mrf.mxu3  ;;  %v2679_v7 = vpop.f32.mrf.mxu1 }
 0x29f   : > { %v3668_v2 = vadd.f32 %v3618_v44, %v3014_v11  ;;  %v2726_v42 = vadd.f32 %v2679_v7, %v6053_v8 }
 0x2a1   : > { %v4066_v17 = vadd.f32 %v4016_v12, %v3668_v2  ;;  %v2966_v28 = vpop.f32.mrf.mxu2 }
 0x2a2   : > { %v3015_v6 = vadd.f32 %v2966_v28, %v2725_v10 }
 0x2a3   : > { %v4097_v56 = vadd.f32 %v4096_v21, %v4066_v17  ;;  %v4136_v54 = vmul.f32 %v4066_v17, %v4066_v17 }
 0x2a5   : > { %v4167_v5 = vadd.f32 %v4166_v58, %v4136_v54  ;;  %v4018_v32 = vpop.f32.mrf.mxu0 }
 0x2a6   : > { %v3620_v49 = vpop.f32.mrf.mxu3  ;;  %v2681_v20 = vpop.f32.mrf.mxu1 }
 0x2a7   : > { %v3669_v25 = vadd.f32 %v3620_v49, %v3015_v6  ;;  %v2727_v55 = vadd.f32 %v2681_v20, %v6077_v27 }
 0x2a9   : > { %v4067_v48 = vadd.f32 %v4018_v32, %v3669_v25  ;;  %v2969_v60 = vpop.f32.mrf.mxu2 }
 0x2aa   : > { %v3016_v1 = vadd.f32 %v2969_v60, %v2726_v42 }
 0x2ab   : > { %v4098_v29 = vadd.f32 %v4097_v56, %v4067_v48  ;;  %v4137_v34 = vmul.f32 %v4067_v48, %v4067_v48 }
 0x2ad   : > { %v4168_v62 = vadd.f32 %v4167_v5, %v4137_v34  ;;  %v4021_v15 = vpop.f32.mrf.mxu0 }
 0x2ae   : > { %v3623_v22 = vpop.f32.mrf.mxu3  ;;  %v2684_v40 = vpop.f32.mrf.mxu1 }
 0x2af   : > { %v3670_v36 = vadd.f32 %v3623_v22, %v3016_v1  ;;  %v2728_v14 = vadd.f32 %v2684_v40, %v6096_v63 }
 0x2b1   : > { %v4068_v9 = vadd.f32 %v4021_v15, %v3670_v36  ;;  %v2971_v47 = vpop.f32.mrf.mxu2 }
 0x2b2   : > { %v3017_v16 = vadd.f32 %v2971_v47, %v2727_v55 }
 0x2b3   : > { %v4099_v31 = vadd.f32 %v4098_v29, %v4068_v9  ;;  %v4138_v57 = vmul.f32 %v4068_v9, %v4068_v9 }
 0x2b5   : > { %v4169_v33 = vadd.f32 %v4168_v62, %v4138_v57  ;;  %v4023_v0 = vpop.f32.mrf.mxu0 }
 0x2b6   : > { %v3625_v46 = vpop.f32.mrf.mxu3  ;;  %v2686_v8 = vpop.f32.mrf.mxu1 }
 0x2b7   : > { %v3671_v19 = vadd.f32 %v3625_v46, %v3017_v16  ;;  %v2729_v41 = vadd.f32 %v2686_v8, %v6120_v39 }
 0x2b9   : > { %v4069_v13 = vadd.f32 %v4023_v0, %v3671_v19  ;;  %v2974_v30 = vpop.f32.mrf.mxu2 }
 0x2ba   : > { %v3018_v18 = vadd.f32 %v2974_v30, %v2728_v14 }
 0x2bb   : > { %v4100_v51 = vadd.f32 %v4099_v31, %v4069_v13  ;;  %v4139_v24 = vmul.f32 %v4069_v13, %v4069_v13 }
 0x2bd   : > { %v4170_v61 = vadd.f32 %v4169_v33, %v4139_v24  ;;  %v4026_v26 = vpop.f32.mrf.mxu0 }
 0x2be   : > { %v3628_v59 = vpop.f32.mrf.mxu3  ;;  %v2689_v27 = vpop.f32.mrf.mxu1 }
 0x2bf   : > { %v3672_v38 = vadd.f32 %v3628_v59, %v3018_v18  ;;  %v2730_v7 = vadd.f32 %v2689_v27, %v6139_v50 }
 0x2c1   : > { %v4070_v53 = vadd.f32 %v4026_v26, %v3672_v38  ;;  %v2976_v35 = vpop.f32.mrf.mxu2 }
 0x2c2   : > { %v3019_v11 = vadd.f32 %v2976_v35, %v2729_v41 }
 0x2c3   : > { %v4101_v43 = vadd.f32 %v4100_v51, %v4070_v53  ;;  %v4140_v52 = vmul.f32 %v4070_v53, %v4070_v53 }
 0x2c5   : > { %v4171_v21 = vadd.f32 %v4170_v61, %v4140_v52  ;;  %v4028_v45 = vpop.f32.mrf.mxu0 }
 0x2c6   : > { %v3630_v58 = vpop.f32.mrf.mxu3  ;;  %v2691_v63 = vpop.f32.mrf.mxu1 }
 0x2c7   : > { %v3673_v12 = vadd.f32 %v3630_v58, %v3019_v11  ;;  %v2731_v49 = vadd.f32 %v2691_v63, %v6163_v3 }
 0x2c9   : > { %v4071_v44 = vadd.f32 %v4028_v45, %v3673_v12  ;;  %v2979_v2 = vpop.f32.mrf.mxu2 }
 0x2ca   : > { %v3020_v28 = vadd.f32 %v2979_v2, %v2730_v7 }
 0x2cb   : > { %v4102_v17 = vadd.f32 %v4101_v43, %v4071_v44  ;;  %v4141_v10 = vmul.f32 %v4071_v44, %v4071_v44  ;;  %v6551_v43 = vld [vmem:[#allocation7_spill] sm:$0xff] }
 0x2cd   : > { %v4172_v56 = vadd.f32 %v4171_v21, %v4141_v10  ;;  %v4031_v54 = vpop.f32.mrf.mxu0 }
 0x2ce   : > { %v3633_v6 = vpop.f32.mrf.mxu3  ;;  %v2694_v5 = vpop.f32.mrf.mxu1 }
 0x2cf   : > { %v3674_v39 = vadd.f32 %v3633_v6, %v3020_v28  ;;  %v2732_v62 = vadd.f32 %v2694_v5, %v6180_v23 }
 0x2d1   : > { %v4072_v32 = vadd.f32 %v4031_v54, %v3674_v39  ;;  %v2981_v20 = vpop.f32.mrf.mxu2 }
 0x2d2   : > { %v3021_v42 = vadd.f32 %v2981_v20, %v2731_v49 }
 0x2d3   : > { %v4103_v25 = vadd.f32 %v4102_v17, %v4072_v32  ;;  %v4142_v48 = vmul.f32 %v4072_v32, %v4072_v32 }
 0x2d5   : > { %v4173_v60 = vadd.f32 %v4172_v56, %v4142_v48  ;;  %v4033_v29 = vpop.f32.mrf.mxu0 }
 0x2d6   : > { %v3635_v34 = vpop.f32.mrf.mxu3  ;;  %v2696_v22 = vpop.f32.mrf.mxu1 }
 0x2d7   : > { %v3675_v50 = vadd.f32 %v3635_v34, %v3021_v42  ;;  %v2733_v16 = vadd.f32 %v2696_v22, %v6203_v4 }
 0x2d9   : > { %v4073_v1 = vadd.f32 %v4033_v29, %v3675_v50  ;;  %v2984_v15 = vpop.f32.mrf.mxu2 }
 0x2da   : > { %v3022_v9 = vadd.f32 %v2984_v15, %v2732_v62 }
 0x2db   : > { %v4104_v40 = vadd.f32 %v4103_v25, %v4073_v1  ;;  %v4143_v36 = vmul.f32 %v4073_v1, %v4073_v1 }
 0x2dd   : > { %v4174_v55 = vadd.f32 %v4173_v60, %v4143_v36  ;;  %v4036_v47 = vpop.f32.mrf.mxu0 }
 0x2de   : > { %v3638_v31 = vpop.f32.mrf.mxu3  ;;  %v2699_v19 = vpop.f32.mrf.mxu1 }
 0x2df   : > { %v3676_v3 = vadd.f32 %v3638_v31, %v3022_v9  ;;  %v2734_v24 = vadd.f32 %v2699_v19, %v6222_v37 }
 0x2e1   : > { %v4074_v57 = vadd.f32 %v4036_v47, %v3676_v3  ;;  %v2986_v33 = vpop.f32.mrf.mxu2 }
 0x2e2   : > { %v3023_v8 = vadd.f32 %v2986_v33, %v2733_v16 }
 0x2e3   : > { %v4105_v0 = vadd.f32 %v4104_v40, %v4074_v57  ;;  %v4144_v46 = vmul.f32 %v4074_v57, %v4074_v57 }
 0x2e5   : > { %v4175_v13 = vadd.f32 %v4174_v55, %v4144_v46  ;;  %v4038_v14 = vpop.f32.mrf.mxu0 }
 0x2e6   : > { %v3640_v23 = vpop.f32.mrf.mxu3  ;;  %v2701_v38 = vpop.f32.mrf.mxu1 }
 0x2e7   : > { %v3677_v30 = vadd.f32 %v3640_v23, %v3023_v8  ;;  %v2735_v52 = vadd.f32 %v2701_v38, %v6551_v43 }
 0x2e9   : > { %v4075_v51 = vadd.f32 %v4038_v14, %v3677_v30  ;;  %v2989_v18 = vpop.f32.mrf.mxu2 }
 0x2ea   : > { %v3024_v59 = vadd.f32 %v2989_v18, %v2734_v24 }
 0x2eb   : > { %v4106_v61 = vadd.f32 %v4105_v0, %v4075_v51  ;;  %v4145_v26 = vmul.f32 %v4075_v51, %v4075_v51 }
 0x2ed   : > { %v4176_v27 = vadd.f32 %v4175_v13, %v4145_v26  ;;  %v4041_v53 = vpop.f32.mrf.mxu0 }
 0x2ee   : > { %v3643_v4 = vpop.f32.mrf.mxu3 }
 0x2ef   : > { %v3678_v41 = vadd.f32 %v3643_v4, %v3024_v59 }
 0x2f1   : > { %v4076_v35 = vadd.f32 %v4041_v53, %v3678_v41  ;;  %v2991_v11 = vpop.f32.mrf.mxu2 }
 0x2f2   : > { %v3025_v58 = vadd.f32 %v2991_v11, %v2735_v52 }
 0x2f3   : > { %v4107_v21 = vadd.f32 %v4106_v61, %v4076_v35  ;;  %v4146_v45 = vmul.f32 %v4076_v35, %v4076_v35 }
 0x2f5   : > { %v4177_v63 = vadd.f32 %v4176_v27, %v4146_v45  ;;  %v4043_v44 = vpop.f32.mrf.mxu0 }
 0x2f6   : > { %v3645_v37 = vpop.f32.mrf.mxu3 }
 0x2f7   : > { %v3679_v12 = vadd.f32 %v3645_v37, %v3025_v58 }
 0x2f9   : > { %v4077_v7 = vadd.f32 %v4043_v44, %v3679_v12 }
 0x2fb   : > { %v4108_v2 = vadd.f32 %v4107_v21, %v4077_v7  ;;  %v4147_v17 = vmul.f32 %v4077_v7, %v4077_v7 }
 0x2fd   : > { %v4109_v10 = vrot.slane %v4108_v2, 4  ;;  %v4178_v28 = vadd.f32 %v4177_v63, %v4147_v17 }
 0x2ff   : > { %v4110_v56 = vadd.f32 %v4109_v10, %v4108_v2  ;;  %v4179_v54 = vrot.slane %v4178_v28, 4 }
 0x301   : > { %v4111_v6 = vrot.slane %v4110_v56, 2  ;;  %v4180_v39 = vadd.f32 %v4179_v54, %v4178_v28 }
 0x303   : > { %v4112_v5 = vadd.f32 %v4111_v6, %v4110_v56  ;;  %v4181_v32 = vrot.slane %v4180_v39, 2 }
 0x305   : > { %v4113_v49 = vrot.slane %v4112_v5, 1  ;;  %v4182_v20 = vadd.f32 %v4181_v32, %v4180_v39 }
 0x307   : > { %v4114_v25 = vadd.f32 %v4113_v49, %v4112_v5  ;;  %v4183_v48 = vrot.slane %v4182_v20, 1 }
 0x309   : > { %4115 = vst [vmem:[%s150_s6] sm:$0x1] %v4114_v25  ;;  %v4184_v42 = vadd.f32 %v4183_v48, %v4182_v20 }
 0x30b   : > { %4185 = vst [vmem:[%s150_s6 + $0x1] sm:$0x1] %v4184_v42 }
 0x30c   : > { %5060 = shalt.err (!%p5057_p5)
}
 0x30d   : > { %4928 = dma.vmem_to_hbm [thread:$0]  (%p5168_p4), %s4201_s7, 32, %s4203_s8, %s4187_s12  }
 0x30e PF: > { %p4934_p6 = scmp.ge.s32.totalorder %s5111_s14, 2  ;;  %s4214_s26 = sand.u32 1, %s5091_s9  }
 0x30f   : > { %s4215_s27 = scalar_lea.sflag [#allocation3], %s4214_s26 }
 0x310   : > { %p4931_p7 = pnand %p4934_p6, %p5175_p8 }
 0x312   : > { %p4932_p9 = pneg %p4931_p7 }
 0x314   : > { %5086 = dma.done.wait (%p4932_p9), %s4215_s27, 32  }
 0x315   : > { %5088 = vsyncadd (%p4932_p9), %s4215_s27, 4294967264  ;;  %s15_s14 = sadd.s32 1, %s5111_s14   ;;  %s6552_s9 = smov %s5095_s10 }
 0x316   : > { %p12_p10 = scmp.ge.s32.totalorder %s15_s14, 4   ;;  %s6553_s10 = smov %s5099_s11 }
 0x317   : > { %s6554_s11 = smov %s5181_s22  ;;  %s6555_s12 = smov %s5107_s13 }
 0x318   : > { %s6556_s13 = smov %s6558_s17  ;;  %14 = sbr.rel (!%p12_p10) target bundleno = 4 (0x4), region = 74 }
 0x31d   :  { %4221 = vsyncpa [#allocation3], 1 }
 0x31e   :  { %4223 = vsyncpa [#allocation3 + $0x1], 1 }

</bundles_post_ra>
